<compile_context>
chip_gen: v6e
topology: v6e:2x2x1
jax: 0.10.0
libtpu: 0.0.40
codegen_flags: <defaults>
</compile_context>

<pallas_src>
import jax
import jax.numpy as jnp
from jax.experimental import pallas as pl
from jax.experimental.pallas import tpu as pltpu


BATCH_BLOCK = 8   # images per grid step (review: ~8 on v5e, 8-16 fine on v6e/v7x)


# ------------------------------ fused kernel --------------------------------

def _net_kernel(x_ref, t1_ref, b1_ref, sh1_ref, t2_ref, b2_ref,
                wf1_ref, sel_ref, bf1_ref, wf2_ref, bf2_ref, out_ref):
    f32, bf16 = jnp.float32, jnp.bfloat16
    bb = x_ref.shape[0]                                    # images in this block

    # ---- conv1: (bb,28,28) -> s1 (bb*24, 240), col = c*24 + w_out ----------
    xb = x_ref[...].astype(bf16)                           # hoisted cast
    s1 = jnp.dot(xb[:, 0:24, :].reshape(bb * 24, 28), t1_ref[0],
                 preferred_element_type=f32)
    for kh in range(1, 5):
        lhs = xb[:, kh:kh + 24, :].reshape(bb * 24, 28)    # aligned collapse (24%8==0)
        s1 = s1 + jnp.dot(lhs, t1_ref[kh], preferred_element_type=f32)
    s1 = s1 + b1_ref[...]                                  # bias row (1,240)

    # ---- maxpool(2) pair-maxes in f32 (VPU); odd offsets are garbage -------
    m1 = jnp.maximum(s1[:, 0:bb * 0 + 239], s1[:, 1:240])  # W-pair max (bb*24, 239)
    m2 = jnp.maximum(m1[0:bb * 24 - 1, :], m1[1:bb * 24, :])  # H-pair max (bb*24-1, 239)

    # stride-2 row selection (block-diag 0/1) + zero-pad to 16 rows/image, ReLU
    p1 = jnp.dot(sh1_ref[...], m2.astype(bf16), preferred_element_type=f32)
    p1 = jnp.maximum(p1, 0.0)                              # (bb*16, 239) f32
    p1b = p1.astype(bf16).reshape(bb, 16, 239)             # aligned split (16%8==0)

    # ---- conv2 (Dropout2d = identity at eval); W-downsample folded in band --
    s2 = jnp.dot(p1b[:, 0:8, :].reshape(bb * 8, 239), t2_ref[0],
                 preferred_element_type=f32)
    for kh in range(1, 5):
        lhs = p1b[:, kh:kh + 8, :].reshape(bb * 8, 239)
        s2 = s2 + jnp.dot(lhs, t2_ref[kh], preferred_element_type=f32)
    s2 = s2 + b2_ref[...]                                  # (bb*8, 160), col = oc*8+ow

    # ---- maxpool(2) pair-maxes + ReLU ---------------------------------------
    n1 = jnp.maximum(s2[:, 0:159], s2[:, 1:160])           # (bb*8, 159)
    n2 = jnp.maximum(n1[0:bb * 8 - 1, :], n1[1:bb * 8, :]) # (bb*8-1, 159)
    r2 = jnp.maximum(n2, 0.0)

    # ---- fc1: pool2 W-downsample + torch flatten folded into wf1_ref --------
    # z[row, oh*50+f] = sum_col r2[row, col] * wf1w[col, oh*50+f]
    z = jnp.dot(r2.astype(bf16), wf1_ref[...], preferred_element_type=f32)  # (bb*8-1, 200)
    # gather y[b,f] = sum_oh z[b*8+2*oh, oh*50+f]  (4 tiny exact f32 matmuls)
    y = jnp.dot(sel_ref[0], z[:, 0:50], preferred_element_type=f32)
    for oh in range(1, 4):
        y = y + jnp.dot(sel_ref[oh], z[:, oh * 50:(oh + 1) * 50],
                        preferred_element_type=f32)
    y = jnp.maximum(y + bf1_ref[...], 0.0)                 # (bb, 50)
    # F.dropout: identity in eval mode.

    # ---- fc2 + log_softmax (f32) --------------------------------------------
    logits = jnp.dot(y, wf2_ref[...], preferred_element_type=f32) + bf2_ref[...]
    zmax = jnp.max(logits, axis=-1, keepdims=True)
    zs = logits - zmax
    lse = jnp.log(jnp.sum(jnp.exp(zs), axis=-1, keepdims=True))
    out_ref[...] = (zs - lse).astype(out_ref.dtype)        # dense (bb, 10) store


# ------------------------- one-time parameter prep --------------------------

def prepare_params(params, batch_block=BATCH_BLOCK, mxu_dtype=jnp.bfloat16):
    """Precompute Toeplitz conv bands, block-diagonal pooling row-selection
    matrices and fused/permuted FC weights (done ONCE, outside the call path)."""
    f32 = jnp.float32
    bb = batch_block
    w1 = params["w1"].astype(f32)          # (10, 1, 5, 5)
    w2 = params["w2"].astype(f32)          # (20, 10, 5, 5)

    # conv1 bands: T1[kh, w_out+kw, c*24+w_out] = w1[c, 0, kh, kw]
    T1 = jnp.zeros((5, 28, 240), f32)
    for kh in range(5):
        for kw in range(5):
            rows = jnp.arange(24) + kw
            cols = jnp.arange(10)[:, None] * 24 + jnp.arange(24)[None, :]
            vals = jnp.broadcast_to(w1[:, 0, kh, kw][:, None], (10, 24))
            T1 = T1.at[kh, rows[None, :], cols].set(vals)

    # pool1 row selection (block-diag, stride 2, padded to 16 rows/image):
    # sh1[b*16+oh, b*24+2*oh] = 1  for oh in 0..11
    r = (jnp.arange(bb)[:, None] * 16 + jnp.arange(12)[None, :]).reshape(-1)
    c = (jnp.arange(bb)[:, None] * 24 + 2 * jnp.arange(12)[None, :]).reshape(-1)
    sh1 = jnp.zeros((bb * 16, bb * 24 - 1), f32).at[r, c].set(1.0)

    # conv2 wide bands (pool1 stride-2 column selection folded in):
    # T2w[kh, c*24 + 2*(ow+kw), oc*8+ow] = w2[oc, c, kh, kw]
    T2w = jnp.zeros((5, 239, 160), f32)
    for kh in range(5):
        for kw in range(5):
            rows = jnp.arange(10)[:, None] * 24 + 2 * (jnp.arange(8)[None, :] + kw)
            cols = jnp.arange(20)[:, None] * 8 + jnp.arange(8)[None, :]
            vals = jnp.broadcast_to(w2[:, :, kh, kw][:, :, None], (20, 10, 8))
            T2w = T2w.at[kh, rows[None, :, :], cols[:, None, :]].set(vals)

    # fc1 wide weights (pool2 stride-2 column selection + torch flatten folded):
    # Wf1w[oc*8 + 2*ow, oh*50 + f] = wf1[f, oc*16 + oh*4 + ow]
    wf1 = params["wf1"].astype(f32)                                  # (50, 320)
    src = wf1.T.reshape(20, 4, 4, 50).transpose(0, 2, 1, 3)          # [oc, ow, oh, f]
    rows4 = (jnp.arange(20)[:, None] * 8 + 2 * jnp.arange(4)[None, :])[:, :, None, None]
    cols4 = (jnp.arange(4)[:, None] * 50 + jnp.arange(50)[None, :])[None, None, :, :]
    Wf1w = jnp.zeros((159, 200), f32).at[rows4, cols4].set(src)

    # fc1 output gather: sel[oh, b, b*8 + 2*oh] = 1
    ohv, bv = jnp.arange(4), jnp.arange(bb)
    sel = jnp.zeros((4, bb, bb * 8 - 1), f32).at[
        ohv[:, None], bv[None, :], bv[None, :] * 8 + 2 * ohv[:, None]].set(1.0)

    return {
        "t1": T1.astype(mxu_dtype),
        "b1row": jnp.repeat(params["b1"].astype(f32), 24).reshape(1, 240),
        "sh1": sh1.astype(mxu_dtype),
        "t2w": T2w.astype(mxu_dtype),
        "b2row": jnp.repeat(params["b2"].astype(f32), 8).reshape(1, 160),
        "wf1w": Wf1w.astype(mxu_dtype),
        "sel1": sel,                                                  # f32, exact gather
        "bf1row": params["bf1"].reshape(1, 50).astype(f32),
        "wf2t": params["wf2"].T.astype(f32),
        "bf2row": params["bf2"].reshape(1, 10).astype(f32),
    }


# ------------------------------- forward ------------------------------------

@jax.jit
def net_forward(x, consts):
    """x: (B, 1, 28, 28) float32 -> log-probabilities (B, 10)."""
    B = x.shape[0]
    bb = consts["sh1"].shape[0] // 16                      # batch block baked into consts
    Bp = ((B + bb - 1) // bb) * bb
    x3 = x.reshape(B, 28, 28).astype(jnp.float32)
    if Bp != B:
        x3 = jnp.pad(x3, ((0, Bp - B), (0, 0), (0, 0)))

    consts_list = [consts["t1"], consts["b1row"], consts["sh1"], consts["t2w"],
                   consts["b2row"], consts["wf1w"], consts["sel1"],
                   consts["bf1row"], consts["wf2t"], consts["bf2row"]]

    def cmap2(i): return (0, 0)
    def cmap3(i): return (0, 0, 0)
    in_specs = [pl.BlockSpec((bb, 28, 28), lambda i: (i, 0, 0))] + [
        pl.BlockSpec(a.shape, cmap3 if a.ndim == 3 else cmap2) for a in consts_list]

    out = pl.pallas_call(
        _net_kernel,
        out_shape=jax.ShapeDtypeStruct((Bp, 10), jnp.float32),
        grid=(Bp // bb,),
        in_specs=in_specs,
        out_specs=pl.BlockSpec((bb, 10), lambda i: (i, 0)),
        # On v7x, "parallel" lets the batch-block axis shard across the 2 TCs.
        compiler_params=pltpu.CompilerParams(
            dimension_semantics=("parallel",)),
    )(x3, *consts_list)
    return out[:B]


# ------------------------ params & pure-JAX reference ------------------------

def init_params(key):
    ks = jax.random.split(key, 8)
    scale = 0.05
    return {
        "w1":  scale * jax.random.normal(ks[0], (10, 1, 5, 5), jnp.float32),
        "b1":  scale * jax.random.normal(ks[1], (10,), jnp.float32),
        "w2":  scale * jax.random.normal(ks[2], (20, 10, 5, 5), jnp.float32),
        "b2":  scale * jax.random.normal(ks[3], (20,), jnp.float32),
        "wf1": scale * jax.random.normal(ks[4], (50, 320), jnp.float32),
        "bf1": scale * jax.random.normal(ks[5], (50,), jnp.float32),
        "wf2": scale * jax.random.normal(ks[6], (10, 50), jnp.float32),
        "bf2": scale * jax.random.normal(ks[7], (10,), jnp.float32),
    }


def net_forward_reference(x, params):
    """Pure-JAX/XLA reference of the PyTorch Net (eval mode)."""
    dn = ("NCHW", "OIHW", "NCHW")
    y = jax.lax.conv_general_dilated(x, params["w1"], (1, 1), "VALID",
                                     dimension_numbers=dn)
    y = y + params["b1"][None, :, None, None]
    y = jax.lax.reduce_window(y, -jnp.inf, jax.lax.max,
                              (1, 1, 2, 2), (1, 1, 2, 2), "VALID")
    y = jnp.maximum(y, 0.0)
    y = jax.lax.conv_general_dilated(y, params["w2"], (1, 1), "VALID",
                                     dimension_numbers=dn)
    y = y + params["b2"][None, :, None, None]
    y = jax.lax.reduce_window(y, -jnp.inf, jax.lax.max,
                              (1, 1, 2, 2), (1, 1, 2, 2), "VALID")
    y = jnp.maximum(y, 0.0)
    y = y.reshape(y.shape[0], 320)
    y = jnp.maximum(y @ params["wf1"].T + params["bf1"], 0.0)
    y = y @ params["wf2"].T + params["bf2"]
    return jax.nn.log_softmax(y, axis=-1)


# --------------------------------- main --------------------------------------

if __name__ == "__main__":
    key = jax.random.PRNGKey(0)
    kx, kp = jax.random.split(key)
    # MNIST-like input (28x28 is required by the 320-dim flatten); 16 images ->
    # two grid steps of BATCH_BLOCK=8 images each.
    x = jax.random.normal(kx, (16, 1, 28, 28), jnp.float32)
    params = init_params(kp)
    consts = prepare_params(params, batch_block=BATCH_BLOCK)

    out = jax.block_until_ready(net_forward(x, consts))

    assert out.shape == (16, 10)
    # log_softmax rows should exp-sum to 1.
    assert bool(jnp.allclose(jnp.sum(jnp.exp(out), axis=1), 1.0, atol=1e-4))
    # Numerical check against the pure-JAX reference (bf16 MXU operands, f32 acc).
    ref = net_forward_reference(x, params)
    err = float(jnp.max(jnp.abs(out - ref)))
    assert bool(jnp.allclose(out, ref, atol=5e-2)), err
    print("KERNEL_OK")
</pallas_src>

<mosaic_0001>
module attributes {stable_mosaic.version = 11 : i64} {
  func.func @_net_kernel(%arg0: i32, %arg1: memref<8x28x28xf32, #tpu.memory_space<vmem>>, %arg2: memref<5x28x240xbf16, #tpu.memory_space<vmem>>, %arg3: memref<1x240xf32, #tpu.memory_space<vmem>>, %arg4: memref<128x191xbf16, #tpu.memory_space<vmem>>, %arg5: memref<5x239x160xbf16, #tpu.memory_space<vmem>>, %arg6: memref<1x160xf32, #tpu.memory_space<vmem>>, %arg7: memref<159x200xbf16, #tpu.memory_space<vmem>>, %arg8: memref<4x8x63xf32, #tpu.memory_space<vmem>>, %arg9: memref<1x50xf32, #tpu.memory_space<vmem>>, %arg10: memref<50x10xf32, #tpu.memory_space<vmem>>, %arg11: memref<1x10xf32, #tpu.memory_space<vmem>>, %arg12: memref<8x10xf32, #tpu.memory_space<vmem>>) attributes {dimension_semantics = [#tpu.dimension_semantics<parallel>], iteration_bounds = array<i64: 2>, scalar_prefetch = 0 : i64, scratch_operands = 0 : i64, tpu.core_type = #tpu.core_type<tc>, window_params = [{transform_indices = @transform_0, window_bounds = array<i64: 8, 28, 28>}, {pipeline_mode = #tpu.pipeline_mode<synchronous>, transform_indices = @transform_1, window_bounds = array<i64: 5, 28, 240>}, {pipeline_mode = #tpu.pipeline_mode<synchronous>, transform_indices = @transform_2, window_bounds = array<i64: 1, 240>}, {pipeline_mode = #tpu.pipeline_mode<synchronous>, transform_indices = @transform_3, window_bounds = array<i64: 128, 191>}, {pipeline_mode = #tpu.pipeline_mode<synchronous>, transform_indices = @transform_4, window_bounds = array<i64: 5, 239, 160>}, {pipeline_mode = #tpu.pipeline_mode<synchronous>, transform_indices = @transform_5, window_bounds = array<i64: 1, 160>}, {pipeline_mode = #tpu.pipeline_mode<synchronous>, transform_indices = @transform_6, window_bounds = array<i64: 159, 200>}, {pipeline_mode = #tpu.pipeline_mode<synchronous>, transform_indices = @transform_7, window_bounds = array<i64: 4, 8, 63>}, {pipeline_mode = #tpu.pipeline_mode<synchronous>, transform_indices = @transform_8, window_bounds = array<i64: 1, 50>}, {pipeline_mode = #tpu.pipeline_mode<synchronous>, transform_indices = @transform_9, window_bounds = array<i64: 50, 10>}, {pipeline_mode = #tpu.pipeline_mode<synchronous>, transform_indices = @transform_10, window_bounds = array<i64: 1, 10>}, {transform_indices = @transform_11, window_bounds = array<i64: 8, 10>}]} {
    %c0 = arith.constant 0 : index
    %c0_0 = arith.constant 0 : index
    %c0_1 = arith.constant 0 : index
    %0 = vector.load %arg1[%c0, %c0_0, %c0_1] : memref<8x28x28xf32, #tpu.memory_space<vmem>>, vector<8x28x28xf32>
    %1 = arith.truncf %0 : vector<8x28x28xf32> to vector<8x28x28xbf16>
    %2 = vector.extract_strided_slice %1 {offsets = [0, 0, 0], sizes = [8, 24, 28], strides = [1, 1, 1]} : vector<8x28x28xbf16> to vector<8x24x28xbf16>
    %3 = vector.shape_cast %2 : vector<8x24x28xbf16> to vector<192x28xbf16>
    %c0_2 = arith.constant 0 : index
    %c0_3 = arith.constant 0 : index
    %c0_4 = arith.constant 0 : index
    %4 = vector.load %arg2[%c0_2, %c0_3, %c0_4] : memref<5x28x240xbf16, #tpu.memory_space<vmem>>, vector<1x28x240xbf16>
    %5 = vector.shape_cast %4 : vector<1x28x240xbf16> to vector<28x240xbf16>
    %cst = arith.constant dense<0.000000e+00> : vector<192x240xf32>
    %6 = tpu.matmul %3, %5, %cst {dimension_numbers = #tpu.dot_dimension_numbers<[1], [0], [0], [1], [0, 0, 1, 1], [], []>} : vector<192x28xbf16>, vector<28x240xbf16>, vector<192x240xf32> -> vector<192x240xf32>
    %7 = vector.extract_strided_slice %1 {offsets = [0, 1, 0], sizes = [8, 24, 28], strides = [1, 1, 1]} : vector<8x28x28xbf16> to vector<8x24x28xbf16>
    %8 = vector.shape_cast %7 : vector<8x24x28xbf16> to vector<192x28xbf16>
    %c1 = arith.constant 1 : index
    %c0_5 = arith.constant 0 : index
    %c0_6 = arith.constant 0 : index
    %9 = vector.load %arg2[%c1, %c0_5, %c0_6] : memref<5x28x240xbf16, #tpu.memory_space<vmem>>, vector<1x28x240xbf16>
    %10 = vector.shape_cast %9 : vector<1x28x240xbf16> to vector<28x240xbf16>
    %cst_7 = arith.constant dense<0.000000e+00> : vector<192x240xf32>
    %11 = tpu.matmul %8, %10, %cst_7 {dimension_numbers = #tpu.dot_dimension_numbers<[1], [0], [0], [1], [0, 0, 1, 1], [], []>} : vector<192x28xbf16>, vector<28x240xbf16>, vector<192x240xf32> -> vector<192x240xf32>
    %12 = arith.addf %6, %11 : vector<192x240xf32>
    %13 = vector.extract_strided_slice %1 {offsets = [0, 2, 0], sizes = [8, 24, 28], strides = [1, 1, 1]} : vector<8x28x28xbf16> to vector<8x24x28xbf16>
    %14 = vector.shape_cast %13 : vector<8x24x28xbf16> to vector<192x28xbf16>
    %c2 = arith.constant 2 : index
    %c0_8 = arith.constant 0 : index
    %c0_9 = arith.constant 0 : index
    %15 = vector.load %arg2[%c2, %c0_8, %c0_9] : memref<5x28x240xbf16, #tpu.memory_space<vmem>>, vector<1x28x240xbf16>
    %16 = vector.shape_cast %15 : vector<1x28x240xbf16> to vector<28x240xbf16>
    %cst_10 = arith.constant dense<0.000000e+00> : vector<192x240xf32>
    %17 = tpu.matmul %14, %16, %cst_10 {dimension_numbers = #tpu.dot_dimension_numbers<[1], [0], [0], [1], [0, 0, 1, 1], [], []>} : vector<192x28xbf16>, vector<28x240xbf16>, vector<192x240xf32> -> vector<192x240xf32>
    %18 = arith.addf %12, %17 : vector<192x240xf32>
    %19 = vector.extract_strided_slice %1 {offsets = [0, 3, 0], sizes = [8, 24, 28], strides = [1, 1, 1]} : vector<8x28x28xbf16> to vector<8x24x28xbf16>
    %20 = vector.shape_cast %19 : vector<8x24x28xbf16> to vector<192x28xbf16>
    %c3 = arith.constant 3 : index
    %c0_11 = arith.constant 0 : index
    %c0_12 = arith.constant 0 : index
    %21 = vector.load %arg2[%c3, %c0_11, %c0_12] : memref<5x28x240xbf16, #tpu.memory_space<vmem>>, vector<1x28x240xbf16>
    %22 = vector.shape_cast %21 : vector<1x28x240xbf16> to vector<28x240xbf16>
    %cst_13 = arith.constant dense<0.000000e+00> : vector<192x240xf32>
    %23 = tpu.matmul %20, %22, %cst_13 {dimension_numbers = #tpu.dot_dimension_numbers<[1], [0], [0], [1], [0, 0, 1, 1], [], []>} : vector<192x28xbf16>, vector<28x240xbf16>, vector<192x240xf32> -> vector<192x240xf32>
    %24 = arith.addf %18, %23 : vector<192x240xf32>
    %25 = vector.extract_strided_slice %1 {offsets = [0, 4, 0], sizes = [8, 24, 28], strides = [1, 1, 1]} : vector<8x28x28xbf16> to vector<8x24x28xbf16>
    %26 = vector.shape_cast %25 : vector<8x24x28xbf16> to vector<192x28xbf16>
    %c4 = arith.constant 4 : index
    %c0_14 = arith.constant 0 : index
    %c0_15 = arith.constant 0 : index
    %27 = vector.load %arg2[%c4, %c0_14, %c0_15] : memref<5x28x240xbf16, #tpu.memory_space<vmem>>, vector<1x28x240xbf16>
    %28 = vector.shape_cast %27 : vector<1x28x240xbf16> to vector<28x240xbf16>
    %cst_16 = arith.constant dense<0.000000e+00> : vector<192x240xf32>
    %29 = tpu.matmul %26, %28, %cst_16 {dimension_numbers = #tpu.dot_dimension_numbers<[1], [0], [0], [1], [0, 0, 1, 1], [], []>} : vector<192x28xbf16>, vector<28x240xbf16>, vector<192x240xf32> -> vector<192x240xf32>
    %30 = arith.addf %24, %29 : vector<192x240xf32>
    %c0_17 = arith.constant 0 : index
    %c0_18 = arith.constant 0 : index
    %31 = vector.load %arg3[%c0_17, %c0_18] : memref<1x240xf32, #tpu.memory_space<vmem>>, vector<1x240xf32>
    %32 = vector.broadcast %31 : vector<1x240xf32> to vector<192x240xf32>
    %33 = arith.addf %30, %32 : vector<192x240xf32>
    %34 = vector.extract_strided_slice %33 {offsets = [0, 0], sizes = [192, 239], strides = [1, 1]} : vector<192x240xf32> to vector<192x239xf32>
    %35 = vector.extract_strided_slice %33 {offsets = [0, 1], sizes = [192, 239], strides = [1, 1]} : vector<192x240xf32> to vector<192x239xf32>
    %36 = arith.maximumf %34, %35 : vector<192x239xf32>
    %37 = vector.extract_strided_slice %36 {offsets = [0, 0], sizes = [191, 239], strides = [1, 1]} : vector<192x239xf32> to vector<191x239xf32>
    %38 = vector.extract_strided_slice %36 {offsets = [1, 0], sizes = [191, 239], strides = [1, 1]} : vector<192x239xf32> to vector<191x239xf32>
    %39 = arith.maximumf %37, %38 : vector<191x239xf32>
    %c0_19 = arith.constant 0 : index
    %c0_20 = arith.constant 0 : index
    %40 = vector.load %arg4[%c0_19, %c0_20] : memref<128x191xbf16, #tpu.memory_space<vmem>>, vector<128x191xbf16>
    %41 = arith.truncf %39 : vector<191x239xf32> to vector<191x239xbf16>
    %cst_21 = arith.constant dense<0.000000e+00> : vector<128x239xf32>
    %42 = tpu.matmul %40, %41, %cst_21 {dimension_numbers = #tpu.dot_dimension_numbers<[1], [0], [0], [1], [0, 0, 1, 1], [], []>} : vector<128x191xbf16>, vector<191x239xbf16>, vector<128x239xf32> -> vector<128x239xf32>
    %cst_22 = arith.constant 0.000000e+00 : f32
    %43 = vector.broadcast %cst_22 : f32 to vector<128x239xf32>
    %44 = arith.maximumf %42, %43 : vector<128x239xf32>
    %45 = arith.truncf %44 : vector<128x239xf32> to vector<128x239xbf16>
    %46 = vector.shape_cast %45 : vector<128x239xbf16> to vector<8x16x239xbf16>
    %47 = vector.extract_strided_slice %46 {offsets = [0, 0, 0], sizes = [8, 8, 239], strides = [1, 1, 1]} : vector<8x16x239xbf16> to vector<8x8x239xbf16>
    %48 = vector.shape_cast %47 : vector<8x8x239xbf16> to vector<64x239xbf16>
    %c0_23 = arith.constant 0 : index
    %c0_24 = arith.constant 0 : index
    %c0_25 = arith.constant 0 : index
    %49 = vector.load %arg5[%c0_23, %c0_24, %c0_25] : memref<5x239x160xbf16, #tpu.memory_space<vmem>>, vector<1x239x160xbf16>
    %50 = vector.shape_cast %49 : vector<1x239x160xbf16> to vector<239x160xbf16>
    %cst_26 = arith.constant dense<0.000000e+00> : vector<64x160xf32>
    %51 = tpu.matmul %48, %50, %cst_26 {dimension_numbers = #tpu.dot_dimension_numbers<[1], [0], [0], [1], [0, 0, 1, 1], [], []>} : vector<64x239xbf16>, vector<239x160xbf16>, vector<64x160xf32> -> vector<64x160xf32>
    %52 = vector.extract_strided_slice %46 {offsets = [0, 1, 0], sizes = [8, 8, 239], strides = [1, 1, 1]} : vector<8x16x239xbf16> to vector<8x8x239xbf16>
    %53 = vector.shape_cast %52 : vector<8x8x239xbf16> to vector<64x239xbf16>
    %c1_27 = arith.constant 1 : index
    %c0_28 = arith.constant 0 : index
    %c0_29 = arith.constant 0 : index
    %54 = vector.load %arg5[%c1_27, %c0_28, %c0_29] : memref<5x239x160xbf16, #tpu.memory_space<vmem>>, vector<1x239x160xbf16>
    %55 = vector.shape_cast %54 : vector<1x239x160xbf16> to vector<239x160xbf16>
    %cst_30 = arith.constant dense<0.000000e+00> : vector<64x160xf32>
    %56 = tpu.matmul %53, %55, %cst_30 {dimension_numbers = #tpu.dot_dimension_numbers<[1], [0], [0], [1], [0, 0, 1, 1], [], []>} : vector<64x239xbf16>, vector<239x160xbf16>, vector<64x160xf32> -> vector<64x160xf32>
    %57 = arith.addf %51, %56 : vector<64x160xf32>
    %58 = vector.extract_strided_slice %46 {offsets = [0, 2, 0], sizes = [8, 8, 239], strides = [1, 1, 1]} : vector<8x16x239xbf16> to vector<8x8x239xbf16>
    %59 = vector.shape_cast %58 : vector<8x8x239xbf16> to vector<64x239xbf16>
    %c2_31 = arith.constant 2 : index
    %c0_32 = arith.constant 0 : index
    %c0_33 = arith.constant 0 : index
    %60 = vector.load %arg5[%c2_31, %c0_32, %c0_33] : memref<5x239x160xbf16, #tpu.memory_space<vmem>>, vector<1x239x160xbf16>
    %61 = vector.shape_cast %60 : vector<1x239x160xbf16> to vector<239x160xbf16>
    %cst_34 = arith.constant dense<0.000000e+00> : vector<64x160xf32>
    %62 = tpu.matmul %59, %61, %cst_34 {dimension_numbers = #tpu.dot_dimension_numbers<[1], [0], [0], [1], [0, 0, 1, 1], [], []>} : vector<64x239xbf16>, vector<239x160xbf16>, vector<64x160xf32> -> vector<64x160xf32>
    %63 = arith.addf %57, %62 : vector<64x160xf32>
    %64 = vector.extract_strided_slice %46 {offsets = [0, 3, 0], sizes = [8, 8, 239], strides = [1, 1, 1]} : vector<8x16x239xbf16> to vector<8x8x239xbf16>
    %65 = vector.shape_cast %64 : vector<8x8x239xbf16> to vector<64x239xbf16>
    %c3_35 = arith.constant 3 : index
    %c0_36 = arith.constant 0 : index
    %c0_37 = arith.constant 0 : index
    %66 = vector.load %arg5[%c3_35, %c0_36, %c0_37] : memref<5x239x160xbf16, #tpu.memory_space<vmem>>, vector<1x239x160xbf16>
    %67 = vector.shape_cast %66 : vector<1x239x160xbf16> to vector<239x160xbf16>
    %cst_38 = arith.constant dense<0.000000e+00> : vector<64x160xf32>
    %68 = tpu.matmul %65, %67, %cst_38 {dimension_numbers = #tpu.dot_dimension_numbers<[1], [0], [0], [1], [0, 0, 1, 1], [], []>} : vector<64x239xbf16>, vector<239x160xbf16>, vector<64x160xf32> -> vector<64x160xf32>
    %69 = arith.addf %63, %68 : vector<64x160xf32>
    %70 = vector.extract_strided_slice %46 {offsets = [0, 4, 0], sizes = [8, 8, 239], strides = [1, 1, 1]} : vector<8x16x239xbf16> to vector<8x8x239xbf16>
    %71 = vector.shape_cast %70 : vector<8x8x239xbf16> to vector<64x239xbf16>
    %c4_39 = arith.constant 4 : index
    %c0_40 = arith.constant 0 : index
    %c0_41 = arith.constant 0 : index
    %72 = vector.load %arg5[%c4_39, %c0_40, %c0_41] : memref<5x239x160xbf16, #tpu.memory_space<vmem>>, vector<1x239x160xbf16>
    %73 = vector.shape_cast %72 : vector<1x239x160xbf16> to vector<239x160xbf16>
    %cst_42 = arith.constant dense<0.000000e+00> : vector<64x160xf32>
    %74 = tpu.matmul %71, %73, %cst_42 {dimension_numbers = #tpu.dot_dimension_numbers<[1], [0], [0], [1], [0, 0, 1, 1], [], []>} : vector<64x239xbf16>, vector<239x160xbf16>, vector<64x160xf32> -> vector<64x160xf32>
    %75 = arith.addf %69, %74 : vector<64x160xf32>
    %c0_43 = arith.constant 0 : index
    %c0_44 = arith.constant 0 : index
    %76 = vector.load %arg6[%c0_43, %c0_44] : memref<1x160xf32, #tpu.memory_space<vmem>>, vector<1x160xf32>
    %77 = vector.broadcast %76 : vector<1x160xf32> to vector<64x160xf32>
    %78 = arith.addf %75, %77 : vector<64x160xf32>
    %79 = vector.extract_strided_slice %78 {offsets = [0, 0], sizes = [64, 159], strides = [1, 1]} : vector<64x160xf32> to vector<64x159xf32>
    %80 = vector.extract_strided_slice %78 {offsets = [0, 1], sizes = [64, 159], strides = [1, 1]} : vector<64x160xf32> to vector<64x159xf32>
    %81 = arith.maximumf %79, %80 : vector<64x159xf32>
    %82 = vector.extract_strided_slice %81 {offsets = [0, 0], sizes = [63, 159], strides = [1, 1]} : vector<64x159xf32> to vector<63x159xf32>
    %83 = vector.extract_strided_slice %81 {offsets = [1, 0], sizes = [63, 159], strides = [1, 1]} : vector<64x159xf32> to vector<63x159xf32>
    %84 = arith.maximumf %82, %83 : vector<63x159xf32>
    %cst_45 = arith.constant 0.000000e+00 : f32
    %85 = vector.broadcast %cst_45 : f32 to vector<63x159xf32>
    %86 = arith.maximumf %84, %85 : vector<63x159xf32>
    %87 = arith.truncf %86 : vector<63x159xf32> to vector<63x159xbf16>
    %c0_46 = arith.constant 0 : index
    %c0_47 = arith.constant 0 : index
    %88 = vector.load %arg7[%c0_46, %c0_47] : memref<159x200xbf16, #tpu.memory_space<vmem>>, vector<159x200xbf16>
    %cst_48 = arith.constant dense<0.000000e+00> : vector<63x200xf32>
    %89 = tpu.matmul %87, %88, %cst_48 {dimension_numbers = #tpu.dot_dimension_numbers<[1], [0], [0], [1], [0, 0, 1, 1], [], []>} : vector<63x159xbf16>, vector<159x200xbf16>, vector<63x200xf32> -> vector<63x200xf32>
    %c0_49 = arith.constant 0 : index
    %c0_50 = arith.constant 0 : index
    %c0_51 = arith.constant 0 : index
    %90 = vector.load %arg8[%c0_49, %c0_50, %c0_51] : memref<4x8x63xf32, #tpu.memory_space<vmem>>, vector<1x8x63xf32>
    %91 = vector.shape_cast %90 : vector<1x8x63xf32> to vector<8x63xf32>
    %92 = vector.extract_strided_slice %89 {offsets = [0, 0], sizes = [63, 50], strides = [1, 1]} : vector<63x200xf32> to vector<63x50xf32>
    %cst_52 = arith.constant dense<0.000000e+00> : vector<8x50xf32>
    %93 = tpu.matmul %91, %92, %cst_52 {dimension_numbers = #tpu.dot_dimension_numbers<[1], [0], [0], [1], [0, 0, 1, 1], [], []>} : vector<8x63xf32>, vector<63x50xf32>, vector<8x50xf32> -> vector<8x50xf32>
    %c1_53 = arith.constant 1 : index
    %c0_54 = arith.constant 0 : index
    %c0_55 = arith.constant 0 : index
    %94 = vector.load %arg8[%c1_53, %c0_54, %c0_55] : memref<4x8x63xf32, #tpu.memory_space<vmem>>, vector<1x8x63xf32>
    %95 = vector.shape_cast %94 : vector<1x8x63xf32> to vector<8x63xf32>
    %96 = vector.extract_strided_slice %89 {offsets = [0, 50], sizes = [63, 50], strides = [1, 1]} : vector<63x200xf32> to vector<63x50xf32>
    %cst_56 = arith.constant dense<0.000000e+00> : vector<8x50xf32>
    %97 = tpu.matmul %95, %96, %cst_56 {dimension_numbers = #tpu.dot_dimension_numbers<[1], [0], [0], [1], [0, 0, 1, 1], [], []>} : vector<8x63xf32>, vector<63x50xf32>, vector<8x50xf32> -> vector<8x50xf32>
    %98 = arith.addf %93, %97 : vector<8x50xf32>
    %c2_57 = arith.constant 2 : index
    %c0_58 = arith.constant 0 : index
    %c0_59 = arith.constant 0 : index
    %99 = vector.load %arg8[%c2_57, %c0_58, %c0_59] : memref<4x8x63xf32, #tpu.memory_space<vmem>>, vector<1x8x63xf32>
    %100 = vector.shape_cast %99 : vector<1x8x63xf32> to vector<8x63xf32>
    %101 = vector.extract_strided_slice %89 {offsets = [0, 100], sizes = [63, 50], strides = [1, 1]} : vector<63x200xf32> to vector<63x50xf32>
    %cst_60 = arith.constant dense<0.000000e+00> : vector<8x50xf32>
    %102 = tpu.matmul %100, %101, %cst_60 {dimension_numbers = #tpu.dot_dimension_numbers<[1], [0], [0], [1], [0, 0, 1, 1], [], []>} : vector<8x63xf32>, vector<63x50xf32>, vector<8x50xf32> -> vector<8x50xf32>
    %103 = arith.addf %98, %102 : vector<8x50xf32>
    %c3_61 = arith.constant 3 : index
    %c0_62 = arith.constant 0 : index
    %c0_63 = arith.constant 0 : index
    %104 = vector.load %arg8[%c3_61, %c0_62, %c0_63] : memref<4x8x63xf32, #tpu.memory_space<vmem>>, vector<1x8x63xf32>
    %105 = vector.shape_cast %104 : vector<1x8x63xf32> to vector<8x63xf32>
    %106 = vector.extract_strided_slice %89 {offsets = [0, 150], sizes = [63, 50], strides = [1, 1]} : vector<63x200xf32> to vector<63x50xf32>
    %cst_64 = arith.constant dense<0.000000e+00> : vector<8x50xf32>
    %107 = tpu.matmul %105, %106, %cst_64 {dimension_numbers = #tpu.dot_dimension_numbers<[1], [0], [0], [1], [0, 0, 1, 1], [], []>} : vector<8x63xf32>, vector<63x50xf32>, vector<8x50xf32> -> vector<8x50xf32>
    %108 = arith.addf %103, %107 : vector<8x50xf32>
    %c0_65 = arith.constant 0 : index
    %c0_66 = arith.constant 0 : index
    %109 = vector.load %arg9[%c0_65, %c0_66] : memref<1x50xf32, #tpu.memory_space<vmem>>, vector<1x50xf32>
    %110 = vector.broadcast %109 : vector<1x50xf32> to vector<8x50xf32>
    %111 = arith.addf %108, %110 : vector<8x50xf32>
    %cst_67 = arith.constant 0.000000e+00 : f32
    %112 = vector.broadcast %cst_67 : f32 to vector<8x50xf32>
    %113 = arith.maximumf %111, %112 : vector<8x50xf32>
    %c0_68 = arith.constant 0 : index
    %c0_69 = arith.constant 0 : index
    %114 = vector.load %arg10[%c0_68, %c0_69] : memref<50x10xf32, #tpu.memory_space<vmem>>, vector<50x10xf32>
    %cst_70 = arith.constant dense<0.000000e+00> : vector<8x10xf32>
    %115 = tpu.matmul %113, %114, %cst_70 {dimension_numbers = #tpu.dot_dimension_numbers<[1], [0], [0], [1], [0, 0, 1, 1], [], []>} : vector<8x50xf32>, vector<50x10xf32>, vector<8x10xf32> -> vector<8x10xf32>
    %c0_71 = arith.constant 0 : index
    %c0_72 = arith.constant 0 : index
    %116 = vector.load %arg11[%c0_71, %c0_72] : memref<1x10xf32, #tpu.memory_space<vmem>>, vector<1x10xf32>
    %117 = vector.broadcast %116 : vector<1x10xf32> to vector<8x10xf32>
    %118 = arith.addf %115, %117 : vector<8x10xf32>
    %cst_73 = arith.constant dense<0xFF800000> : vector<8xf32>
    %119 = vector.multi_reduction <maximumf>, %118, %cst_73 [1] : vector<8x10xf32> to vector<8xf32>
    %120 = vector.shape_cast %119 : vector<8xf32> to vector<8x1xf32>
    %121 = vector.broadcast %120 : vector<8x1xf32> to vector<8x10xf32>
    %122 = arith.subf %118, %121 : vector<8x10xf32>
    %123 = math.exp %122 : vector<8x10xf32>
    %cst_74 = arith.constant dense<0.000000e+00> : vector<8xf32>
    %124 = vector.multi_reduction <add>, %123, %cst_74 [1] : vector<8x10xf32> to vector<8xf32>
    %125 = vector.shape_cast %124 : vector<8xf32> to vector<8x1xf32>
    %126 = math.log %125 : vector<8x1xf32>
    %127 = vector.broadcast %126 : vector<8x1xf32> to vector<8x10xf32>
    %128 = arith.subf %122, %127 : vector<8x10xf32>
    %c0_75 = arith.constant 0 : index
    %c0_76 = arith.constant 0 : index
    %129 = vector.load %arg12[%c0_75, %c0_76] : memref<8x10xf32, #tpu.memory_space<vmem>>, vector<8x10xf32>
    tpu.vector_store %arg12[%c0_75, %c0_76], %128 {strides = array<i32>} : memref<8x10xf32, #tpu.memory_space<vmem>>, vector<8x10xf32>,
    return
  }
  func.func @transform_0(%arg0: i32) -> (i32, i32, i32) {
    %c0_i32 = arith.constant 0 : i32
    %c0_i32_0 = arith.constant 0 : i32
    %c0_i32_1 = arith.constant 0 : i32
    return %arg0, %c0_i32, %c0_i32_0 : i32, i32, i32
  }
  func.func @transform_1(%arg0: i32) -> (i32, i32, i32) {
    %c0_i32 = arith.constant 0 : i32
    %c0_i32_0 = arith.constant 0 : i32
    %c0_i32_1 = arith.constant 0 : i32
    %c0_i32_2 = arith.constant 0 : i32
    return %c0_i32, %c0_i32_0, %c0_i32_1 : i32, i32, i32
  }
  func.func @transform_2(%arg0: i32) -> (i32, i32) {
    %c0_i32 = arith.constant 0 : i32
    %c0_i32_0 = arith.constant 0 : i32
    %c0_i32_1 = arith.constant 0 : i32
    return %c0_i32, %c0_i32_0 : i32, i32
  }
  func.func @transform_3(%arg0: i32) -> (i32, i32) {
    %c0_i32 = arith.constant 0 : i32
    %c0_i32_0 = arith.constant 0 : i32
    %c0_i32_1 = arith.constant 0 : i32
    return %c0_i32, %c0_i32_0 : i32, i32
  }
  func.func @transform_4(%arg0: i32) -> (i32, i32, i32) {
    %c0_i32 = arith.constant 0 : i32
    %c0_i32_0 = arith.constant 0 : i32
    %c0_i32_1 = arith.constant 0 : i32
    %c0_i32_2 = arith.constant 0 : i32
    return %c0_i32, %c0_i32_0, %c0_i32_1 : i32, i32, i32
  }
  func.func @transform_5(%arg0: i32) -> (i32, i32) {
    %c0_i32 = arith.constant 0 : i32
    %c0_i32_0 = arith.constant 0 : i32
    %c0_i32_1 = arith.constant 0 : i32
    return %c0_i32, %c0_i32_0 : i32, i32
  }
  func.func @transform_6(%arg0: i32) -> (i32, i32) {
    %c0_i32 = arith.constant 0 : i32
    %c0_i32_0 = arith.constant 0 : i32
    %c0_i32_1 = arith.constant 0 : i32
    return %c0_i32, %c0_i32_0 : i32, i32
  }
  func.func @transform_7(%arg0: i32) -> (i32, i32, i32) {
    %c0_i32 = arith.constant 0 : i32
    %c0_i32_0 = arith.constant 0 : i32
    %c0_i32_1 = arith.constant 0 : i32
    %c0_i32_2 = arith.constant 0 : i32
    return %c0_i32, %c0_i32_0, %c0_i32_1 : i32, i32, i32
  }
  func.func @transform_8(%arg0: i32) -> (i32, i32) {
    %c0_i32 = arith.constant 0 : i32
    %c0_i32_0 = arith.constant 0 : i32
    %c0_i32_1 = arith.constant 0 : i32
    return %c0_i32, %c0_i32_0 : i32, i32
  }
  func.func @transform_9(%arg0: i32) -> (i32, i32) {
    %c0_i32 = arith.constant 0 : i32
    %c0_i32_0 = arith.constant 0 : i32
    %c0_i32_1 = arith.constant 0 : i32
    return %c0_i32, %c0_i32_0 : i32, i32
  }
  func.func @transform_10(%arg0: i32) -> (i32, i32) {
    %c0_i32 = arith.constant 0 : i32
    %c0_i32_0 = arith.constant 0 : i32
    %c0_i32_1 = arith.constant 0 : i32
    return %c0_i32, %c0_i32_0 : i32, i32
  }
  func.func @transform_11(%arg0: i32) -> (i32, i32) {
    %c0_i32 = arith.constant 0 : i32
    %c0_i32_0 = arith.constant 0 : i32
    return %arg0, %c0_i32 : i32, i32
  }
}

</mosaic_0001>

<bundles_post_ra>
// kernel: net_forward.1
= control target key start
LH: loop header
LB: loop body
LE: loop exit
PB: predicated region body
PF: predicated region fallthrough
CT: control target
= control target key end

     0   :  { %s11425_s0 = inlined_call_operand.vmem [shape: f32[16,28,28], index: 0, kind: input, shape index: {}]   ;;  %s11426_s1 = inlined_call_operand.vmem [shape: bf16[5,28,240], index: 1, kind: input, shape index: {}]   ;;  %s11427_s2 = inlined_call_operand.vmem [shape: f32[1,240], index: 2, kind: input, shape index: {}]   ;;  %s11428_s3 = inlined_call_operand.vmem [shape: bf16[128,191], index: 3, kind: input, shape index: {}]   ;;  %s11429_s4 = inlined_call_operand.vmem [shape: bf16[5,239,160], index: 4, kind: input, shape index: {}]   ;;  %s11430_s5 = inlined_call_operand.vmem [shape: f32[1,160], index: 5, kind: input, shape index: {}]   ;;  %s11431_s6 = inlined_call_operand.vmem [shape: bf16[159,200], index: 6, kind: input, shape index: {}]   ;;  %s11432_s7 = inlined_call_operand.vmem [shape: f32[4,8,63], index: 7, kind: input, shape index: {}]   ;;  %s11433_s8 = inlined_call_operand.vmem [shape: f32[1,50], index: 8, kind: input, shape index: {}]   ;;  %s11434_s9 = inlined_call_operand.vmem [shape: f32[50,10], index: 9, kind: input, shape index: {}]   ;;  %s11435_s10 = inlined_call_operand.vmem [shape: f32[1,10], index: 10, kind: input, shape index: {}]   ;;  %s11436_s11 = inlined_call_operand.hbm [shape: f32[16,10], index: 11, kind: output, shape index: {}]  }
   0x1   :  { %11518 = sst [smem:[#allocation74_spill]] %s11425_s0 }
   0x2   :  { %16 = vsyncpa [#allocation3], 0 }
   0x3   :  { %18 = vsyncpa [#allocation3 + $0x1], 0  ;;  %s7748_s17 = smov 0   ;;  %s7750_s18 = smov 0  }
   0x4   :  { %s7752_s19 = smov 0   ;;  %s7754_s20 = smov 0  }
   0x5 LB: > { %s7769_s21 = sadd.s32 4294967295, %s7677_s20   ;;  %s6261_s22 = sadd.s32 4294967294, %s7677_s20   ;;  %s7677_s20 = sphi %s7754_s20, %s11800_s20   ;;  %s7673_s19 = sphi %s7752_s19, %s11799_s19   ;;  %s7669_s18 = sphi %s7750_s18, %s11798_s18   ;;  %s7665_s17 = sphi %s7748_s17, %s11797_s17  }
   0x6   : > { %s7773_s23 = sadd.s32 1, %s7677_s20   ;;  %s267_s24 = sadd.s32 1, %s7673_s19 }
   0x7   : > { %s264_s25 = ssub.s32 %s7677_s20, %s7773_s23  ;;  %p277_p0 = scmp.ne.s32.totalorder %s7673_s19, %s7669_s18 }
   0x8   : > { %p265_p1 = scmp.eq.s32.totalorder %s264_s25, 0  ;;  %p278_p2 = scmp.eq.s32.totalorder %s7769_s21, 1 }
   0x9   : > { %p283_p3 = scmp.ne.s32.totalorder %s7669_s18, %s7665_s17  ;;  %p284_p4 = scmp.eq.s32.totalorder %s6261_s22, 1 }
   0xa   : > { %s7784_s26 = scalar_select %p265_p1, %s7673_s19, %s267_s24  }
   0xb   : > { %p7786_p5 = por %p278_p2, %p277_p0  ;;  %p7790_p6 = por %p284_p4, %p283_p3 }
   0xc   : > { %11519 = sst [smem:[#allocation5_spill]] %s7784_s26  ;;  %p6264_p7 = scmp.ge.s32.totalorder %s7677_s20, 1 }
   0xd   : > { %p342_p8 = scmp.lt.s32.totalorder %s7677_s20, 3 }
   0xf   : > { %p343_p9 = pnand %p6264_p7, %p342_p8 }
  0x11   : > { %346 = sbr.rel (%p343_p9) target bundleno = 2478 (0x9ae), region = 64 }
  0x16   : > { %v7304_v0 = vld [vmem:[%s11426_s1 + $0x34] ss:$8 sps:$4 sm:$0x3f]   ;;  %vm894_vm0 = vcmask 1045504   ;;  %v11475_v3 = vmov 0   ;;  %s6266_s12 = sshll.u32 %s7769_s21, 3 }
  0x17   : > { %6321 = vmatprep.subr.msk.bf16.mxu0 %vm894_vm0, %v7304_v0  ;;  %v7306_v1 = vld [vmem:[%s11426_s1 + $0x14] ss:$8 sps:$4 sm:$0x3f]   ;;  %v7308_v2 = vld [vmem:[%s11426_s1 + $0x30] ss:$8 sps:$4 sm:$0x3f]   ;;  %933 = vmatprep.mubr.bf16.mxu0 %v11475_v3 }
  0x18   : > { %v7309_v4 = vld [vmem:[%s11426_s1 + $0x10] ss:$8 sps:$4 sm:$0x3f]   ;;  %v7310_v5 = vld [vmem:[%s11426_s1 + $0x24] ss:$8 sps:$4 sm:$0xff]   ;;  %1158 = vmatprep.mubr.bf16.mxu1 %v11475_v3  ;;  %6342 = vmatprep.subr.msk.bf16.mxu1 %vm894_vm0, %v7306_v1  ;;  %v896_v6 = vsel %vm894_vm0, %v7308_v2, 0 }
  0x19   : > { %v7312_v7 = vld [vmem:[%s11426_s1 + $0x4] ss:$8 sps:$4 sm:$0xff]   ;;  %914 = vmatpush1.bf16.msra.mxu0 %v896_v6  ;;  %v1121_v8 = vsel %vm894_vm0, %v7309_v4, 0  ;;  %v7314_v9 = vld [vmem:[%s11426_s1 + $0x20] ss:$8 sps:$4 sm:$0xff]   ;;  %p384_p10 = scmp.lt.s32.totalorder %s6266_s12, 15 }
  0x1a   : > { %1139 = vmatpush1.bf16.msra.mxu1 %v1121_v8  ;;  %915 = vmatprep.subr.bf16.mxu0 %v7310_v5  ;;  %v7315_v10 = vld [vmem:[%s11426_s1] ss:$8 sps:$4 sm:$0xff]   ;;  %v7316_v11 = vld [vmem:[%s11426_s1 + $0x54] ss:$8 sps:$4 sm:$0x3f]   ;;  %s11522_s0 = sld [smem:[#allocation74_spill]] }
  0x1b   : > { %1140 = vmatprep.subr.bf16.mxu1 %v7312_v7  ;;  %s11802_s12 = smov (!%p384_p10, %s6266_s12), 15  ;;  %v7319_v12 = vld [vmem:[%s11426_s1 + $0x74] ss:$8 sps:$4 sm:$0x3f]   ;;  %vm523_vm1 = vsmask.f32 3328 }
  0x1c   : > { %s6899_s25 = sshll.u32 %s11802_s12, 5  ;;  %vm857_vm2 = vcmask 228352   ;;  %vm524_vm3 = vsmask.f32 7440  ;;  %v11525_v47 = vmov 0  ;;  %vm1279_vm8 = vcmask 1042432  }
  0x1d   : > { %916 = vmatpush1.bf16.msra.mxu0 %v7314_v9  ;;  %v7318_v46 = vld [vmem:[%s11426_s1 + $0x50] ss:$8 sps:$4 sm:$0x3f]   ;;  %vm7886_vm4 = vmor %vm523_vm1, %vm524_vm3  ;;  %vm1664_vm5 = vsmask.f32 2304  ;;  %vm1280_vm9 = vcmask 1046532  }
  0x1e   : > { %1141 = vmatpush1.bf16.msra.mxu1 %v7315_v10  ;;  %6383 = vmatprep.subr.msk.bf16.mxu0 %vm894_vm0, %v7316_v11  ;;  %v11526_v47 = vsel %vm7886_vm4, 4294967295, %v11525_v47  ;;  %v1458_v2 = vsel %vm894_vm0, %v7318_v46, 0  ;;  %vm1665_vm6 = vsmask.f32 6416  ;;  %vm8453_vm10 = vmor %vm1279_vm8, %vm1280_vm9  ;;  %vm2129_vm11 = vcmask 1041408   ;;  %s7680_s15 = smov 127  }
  0x1f   : > { %6416 = vmatprep.subr.msk.bf16.mxu1 %vm894_vm0, %v7319_v12  ;;  %11527 = vst [vmem:[#allocation8_spill] sm:$0xff] %v11526_v47  ;;  %vm8292_vm7 = vmor %vm1664_vm5, %vm1665_vm6  ;;  %vm2130_vm12 = vcmask 1045508   ;;  %vm3190_vm14 = vcmask 515072   ;;  %vm2718_vm15 = vcmask 1039360   ;;  %vm3215_vm1 = vcmask 1047552   ;;  %s7685_s29 = smov 106  }
  0x20   : > { %s7836_s26 = scalar_lea.vmem %s11522_s0, %s6899_s25  ;;  %vm8725_vm13 = vmor %vm2129_vm11, %vm2130_vm12  ;;  %vm3798_vm3 = vcmask 908288   ;;  %s7684_s25 = smov 28   ;;  %vm7686_vm5 = vmmov 0   ;;  %vm6174_vm6 = vcmask 80896  }
  0x21   : > { %v391_v13 = vld [vmem:[%s7836_s26] sm:$0xff]  ;;  %v392_v14 = vld [vmem:[%s7836_s26 + $0x8] sm:$0xff]  ;;  %v393_v15 = vld [vmem:[%s7836_s26 + $0x10] sm:$0xff]  ;;  %s380_s16 = sand.u32 1, %s7669_s18   ;;  %s7687_s12 = smov [#allocation2]  }
  0x22   : > { %v7843_v16 = vpack.c.bf16 %v391_v13, %v391_v13  ;;  %v7845_v17 = vpack.c.bf16 %v392_v14, %v392_v14  ;;  %v7847_v18 = vpack.c.bf16 %v393_v15, %v393_v15  ;;  %v423_v19 = vpack.c.bf16 %v392_v14, %v391_v13  ;;  %v394_v20 = vld [vmem:[%s7836_s26 + $0x18] sm:$0xf]  ;;  %v7851_v21 = vld [vmem:[%s7836_s26 + $0x20] sm:$0xff]  ;;  %v7854_v22 = vld [vmem:[%s7836_s26 + $0x28] sm:$0xff]  ;;  %s6265_s22 = sshll.u32 %s380_s16, 3  ;;  %s6189_s13 = scalar_lea.sflag [#allocation3], %s380_s16 }
  0x23   : > { %v7856_v23 = vpack.c.bf16 %v394_v20, %v394_v20  ;;  %v7860_v24 = vpack.c.bf16 %v7851_v21, %v7851_v21  ;;  %v7864_v25 = vpack.c.bf16 %v7854_v22, %v7854_v22  ;;  %v6932_v33 = vpack.c.bf16 %v7851_v21, %v393_v15  ;;  %v397_v60 = vld [vmem:[%s7836_s26 + $0x30] sm:$0xff]  ;;  %v398_v61 = vld [vmem:[%s7836_s26 + $0x38] sm:$0xf]  ;;  %v7910_v1 = vld [vmem:[%s7836_s26 + $0x40] sm:$0xff]  ;;  %s382_s24 = scalar_lea.vmem [#allocation2], %s6265_s22  ;;  %s7621_s0 = sshll.u32 %s7687_s12, 4  ;;  %s7622_s0 = int_to_ptr.vmem [resolvable:$false] %s7621_s0 }
  0x24   : > { %v527_v26 = vshrl.u32 %v7843_v16, 16  ;;  %v530_v27 = vshll.u32 %v7843_v16, 16  ;;  %v536_v28 = vshll.u32 %v7845_v17, 16  ;;  %v540_v29 = vshrl.u32 %v7845_v17, 16  ;;  %6343 = vmatmul.mubr.msk.bf16.vlgmr.msra.gmra.mxu1 %vm857_vm2, %v423_v19  ;;  %v7919_v8 = vld [vmem:[%s7836_s26 + $0x48] sm:$0xff]  ;;  %v7935_v20 = vld [vmem:[%s7836_s26 + $0x50] sm:$0xff] }
  0x25   : > { %11523 = vst [vmem:[#allocation6_spill] sm:$0xff] %v7860_v24  ;;  %11524 = vst [vmem:[#allocation7_spill] sm:$0xff] %v7864_v25  ;;  %v546_v30 = vshll.u32 %v7847_v18, 16  ;;  %1168 = vmatprep.mubr.bf16.mxu1 %v11475_v3  ;;  %v550_v31 = vshrl.u32 %v7847_v18, 16  ;;  %v11468_v32 = vshrl.u32 %v7860_v24, 16  ;;  %v11470_v41 = vshll.u32 %v7856_v23, 16 }
  0x26   : > { %v529_v34 = vrot.slane %v527_v26, 4  ;;  %v532_v35 = vrot.slane %v530_v27, 5  ;;  %v538_v36 = vrot.slane %v536_v28, 5  ;;  %v542_v37 = vrot.slane %v540_v29, 4  ;;  %v7324_v13 = vld [vmem:[%s11426_s1 + $0x44] ss:$8 sps:$4 sm:$0xff]  }
  0x27   : > { %v7876_v38 = vrot.slane %v527_v26, 5  ;;  %v7878_v39 = vrot.slane %v530_v27, 6  ;;  %v1671_v40 = vrot.slane %v540_v29, 5  ;;  %v548_v44 = vrot.slane %v546_v30, 5  ;;  %v7322_v27 = vld [vmem:[%s11426_s1 + $0x40] ss:$8 sps:$4 sm:$0xff]  }
  0x28   : > { %v533_v42 = vor.u32 %v532_v35, %v529_v34  ;;  %v543_v43 = vor.u32 %v542_v37, %v538_v36  ;;  %v1672_v45 = vrot.slane %v536_v28, 6  ;;  %v1677_v49 = vrot.slane %v546_v30, 6  ;;  %v7967_v46 = vld [vmem:[%s7836_s26 + $0x60] sm:$0xff] }
  0x29   : > { %v552_v50 = vrot.slane %v550_v31, 4  ;;  %v563_v51 = vrot.slane %v11468_v32, 4  ;;  %v11466_v55 = vshll.u32 %v7860_v24, 16  ;;  %v558_v57 = vrot.slane %v11470_v41, 5 }
  0x2a   : > { %v534_v52 = vrot.slane %v533_v42, 4  ;;  %v544_v53 = vrot.slane %v543_v43, 4  ;;  %v7894_v54 = vor.u32 %v1672_v45, %v1671_v40  ;;  %v11462_v58 = vshll.u32 %v7864_v25, 16 }
  0x2b   : > { %v553_v56 = vor.u32 %v552_v50, %v548_v44  ;;  %v1676_v59 = vrot.slane %v550_v31, 5  ;;  %v566_v0 = vrot.slane %v11466_v55, 5  ;;  %v7921_v10 = vpack.c.bf16 %v397_v60, %v397_v60 }
  0x2c   : > { %v539_v62 = vsel %vm7886_vm4, %v534_v52, %v538_v36  ;;  %v549_v63 = vsel %vm7886_vm4, %v544_v53, %v548_v44  ;;  %6344 = vmatmul.mubr.msk.bf16.gmra.mxu1 %vm857_vm2, %v6932_v33  ;;  %v572_v6 = vrot.slane %v11462_v58, 5  ;;  %v7923_v11 = vpack.c.bf16 %v398_v61, %v398_v61 }
  0x2d   : > { %v6305_v4 = vcombine.low %v539_v62, %v549_v63  ;;  %v554_v5 = vrot.slane %v553_v56, 4  ;;  %v7915_v7 = vor.u32 %v1677_v49, %v1676_v59  ;;  %1178 = vmatprep.mubr.bf16.mxu1 %v11475_v3  ;;  %v567_v9 = vor.u32 %v566_v0, %v563_v51  ;;  %v402_v59 = vld [vmem:[%s7836_s26 + $0x58] sm:$0xf] }
  0x2e   : > { %v11465_v12 = vshrl.u32 %v7864_v25, 16  ;;  %v425_v15 = vpack.c.bf16 %v7854_v22, %v7851_v21  ;;  %v426_v19 = vpack.c.bf16 %v398_v61, %v397_v60  ;;  %v7939_v26 = vpack.c.bf16 %v7910_v1, %v7910_v1 }
  0x2f   : > { %6322 = vmatmul.mubr.msk.bf16.vlgmr.msra.gmra.mxu0 %vm857_vm2, %v6305_v4  ;;  %v559_v14 = vsel %vm7886_vm4, %v554_v5, %v558_v57  ;;  %v568_v28 = vrot.slane %v567_v9, 4  ;;  %v11457_v30 = vshll.u32 %v7921_v10, 16  ;;  %v11459_v21 = vshrl.u32 %v7921_v10, 16  ;;  %v404_v9 = vld [vmem:[%s7836_s26 + $0x68] sm:$0xff] }
  0x30   : > { %943 = vmatprep.mubr.bf16.mxu0 %v11475_v3  ;;  %v576_v29 = vrot.slane %v11465_v12, 4  ;;  %1476 = vmatpush1.bf16.msra.mxu0 %v1458_v2  ;;  %v11455_v22 = vshll.u32 %v7923_v11, 16  ;;  %v459_v31 = vunpack.c.h.b16 %v425_v15  ;;  %v460_v33 = vunpack.c.l.b16 %v426_v19  ;;  %v7328_v2 = vld [vmem:[%s11426_s1 + $0x94] ss:$8 sps:$4 sm:$0x3f]  }
  0x31   : > { %v7952_v34 = vpack.c.bf16 %v7919_v8, %v7919_v8  ;;  %1477 = vmatprep.subr.bf16.mxu0 %v7324_v13  ;;  %v573_v35 = vsel %vm7886_vm4, %v568_v28, %v572_v6  ;;  %v582_v37 = vrot.slane %v11457_v30, 5  ;;  %v586_v40 = vrot.slane %v11459_v21, 4 }
  0x32   : > { %v577_v36 = vor.u32 %v576_v29, %v572_v6  ;;  %v6306_v42 = vcombine.low %v559_v14, %v573_v35  ;;  %v592_v43 = vrot.slane %v11455_v22, 5  ;;  %v1056_v44 = vpack.c.b16 %v460_v33, %v459_v31  ;;  %v405_v33 = vld [vmem:[%s7836_s26 + $0x70] sm:$0xff] }
  0x33   : > { %v7964_v45 = vpack.c.bf16 %v7935_v20, %v7935_v20  ;;  %v587_v50 = vor.u32 %v586_v40, %v582_v37  ;;  %v11454_v51 = vshrl.u32 %v7939_v26, 16  ;;  %v11453_v52 = vshll.u32 %v7939_v26, 16 }
  0x34   : > { %v578_v49 = vrot.slane %v577_v36, 4  ;;  %1478 = vmatpush1.bf16.msra.mxu0 %v7322_v27  ;;  %6345 = vmatmul.mubr.msk.bf16.gmra.mxu1 %vm857_vm2, %v1056_v44  ;;  %v11451_v53 = vshll.u32 %v7952_v34, 16  ;;  %v11452_v56 = vshrl.u32 %v7952_v34, 16  ;;  %v7997_v13 = vpack.c.bf16 %v7967_v46, %v7967_v46 }
  0x35   : > { %v11449_v57 = vshll.u32 %v7964_v45, 16  ;;  %v588_v60 = vrot.slane %v587_v50, 4  ;;  %1188 = vmatprep.mubr.bf16.mxu1 %v11475_v3  ;;  %v597_v61 = vrot.slane %v11454_v51, 4  ;;  %v600_v62 = vrot.slane %v11453_v52, 5  ;;  %6457 = vmatprep.subr.msk.bf16.mxu0 %vm894_vm0, %v7328_v2 }
  0x36   : > { %v606_v63 = vrot.slane %v11451_v53, 5  ;;  %v610_v0 = vrot.slane %v11452_v56, 4  ;;  %v583_v4 = vsel %vm7886_vm4, %v578_v49, %v582_v37  ;;  %v427_v15 = vpack.c.bf16 %v7919_v8, %v7910_v1 }
  0x37   : > { %6323 = vmatmul.mubr.msk.bf16.gmra.mxu0 %vm857_vm2, %v6306_v42  ;;  %v593_v5 = vsel %vm7886_vm4, %v588_v60, %v592_v43  ;;  %v601_v6 = vor.u32 %v600_v62, %v597_v61  ;;  %v11450_v19 = vshrl.u32 %v7964_v45, 16  ;;  %v616_v27 = vrot.slane %v11449_v57, 5  ;;  %v406_v43 = vld [vmem:[%s7836_s26 + $0x78] sm:$0xf] }
  0x38   : > { %953 = vmatprep.mubr.bf16.mxu0 %v11475_v3  ;;  %v611_v14 = vor.u32 %v610_v0, %v606_v63  ;;  %v8005_v28 = vpack.c.bf16 %v402_v59, %v402_v59  ;;  %v11438_v29 = vshrl.u32 %v7997_v13, 16  ;;  %v11437_v31 = vshll.u32 %v7997_v13, 16  ;;  %v8026_v59 = vld [vmem:[%s7836_s26 + $0x80] sm:$0xff]  ;;  %v8033_v0 = vld [vmem:[%s7836_s26 + $0x88] sm:$0xff] }
  0x39   : > { %v6307_v35 = vcombine.low %v583_v4, %v593_v5  ;;  %v602_v36 = vrot.slane %v601_v6, 4  ;;  %v8010_v1 = vpack.c.bf16 %v404_v9, %v404_v9  ;;  %v620_v8 = vrot.slane %v11450_v19, 4 }
  0x3a   : > { %11528 = vst [vmem:[#allocation9_spill] sm:$0xff] %v8005_v28  ;;  %v612_v37 = vrot.slane %v611_v14, 4  ;;  %v631_v40 = vrot.slane %v11438_v29, 4  ;;  %v634_v42 = vrot.slane %v11437_v31, 5  ;;  %v8020_v44 = vpack.c.bf16 %v405_v33, %v405_v33 }
  0x3b   : > { %v11443_v49 = vshll.u32 %v8005_v28, 16  ;;  %v11442_v50 = vshrl.u32 %v8010_v1, 16  ;;  %v11441_v60 = vshll.u32 %v8010_v1, 16  ;;  %v607_v2 = vsel %vm7886_vm4, %v602_v36, %v606_v63 }
  0x3c   : > { %6346 = vmatmul.mubr.msk.bf16.gmra.mxu1 %vm857_vm2, %v427_v15  ;;  %v11439_v61 = vshll.u32 %v8020_v44, 16  ;;  %v11440_v62 = vshrl.u32 %v8020_v44, 16  ;;  %v617_v4 = vsel %vm7886_vm4, %v612_v37, %v616_v27  ;;  %v621_v5 = vor.u32 %v620_v8, %v616_v27 }
  0x3d   : > { %1198 = vmatprep.mubr.bf16.mxu1 %v11475_v3  ;;  %v635_v6 = vor.u32 %v634_v42, %v631_v40  ;;  %v6933_v14 = vpack.c.bf16 %v7967_v46, %v7935_v20  ;;  %v429_v15 = vpack.c.bf16 %v404_v9, %v7967_v46  ;;  %v626_v31 = vrot.slane %v11443_v49, 5  ;;  %v8089_v49 = vld [vmem:[%s7836_s26 + $0xa8] sm:$0xff] }
  0x3e   : > { %v8045_v29 = vpack.c.bf16 %v406_v43, %v406_v43  ;;  %v644_v63 = vrot.slane %v11442_v50, 4  ;;  %v6308_v36 = vcombine.low %v607_v2, %v617_v4  ;;  %v650_v27 = vrot.slane %v11439_v61, 5 }
  0x3f   : > { %6324 = vmatmul.mubr.msk.bf16.gmra.mxu0 %vm857_vm2, %v6307_v35  ;;  %v430_v35 = vpack.c.bf16 %v406_v43, %v405_v33  ;;  %v654_v37 = vrot.slane %v11440_v62, 4  ;;  %v8055_v20 = vpack.c.bf16 %v8026_v59, %v8026_v59  ;;  %v622_v46 = vrot.slane %v621_v5, 4  ;;  %v8065_v43 = vld [vmem:[%s7836_s26 + $0x90] sm:$0xff]  ;;  %v8073_v62 = vld [vmem:[%s7836_s26 + $0xa0] sm:$0xff] }
  0x40   : > { %963 = vmatprep.mubr.bf16.mxu0 %v11475_v3  ;;  %v636_v9 = vrot.slane %v635_v6, 4  ;;  %v640_v33 = vrot.slane %v11441_v60, 5  ;;  %v8061_v8 = vpack.c.bf16 %v8033_v0, %v8033_v0  ;;  %v465_v40 = vunpack.c.h.b16 %v429_v15 }
  0x41   : > { %v466_v42 = vunpack.c.l.b16 %v430_v35  ;;  %v11444_v4 = vshll.u32 %v8045_v29, 16  ;;  %v655_v5 = vor.u32 %v654_v37, %v650_v27  ;;  %v11448_v6 = vshrl.u32 %v8055_v20, 16 }
  0x42   : > { %v645_v2 = vor.u32 %v644_v63, %v640_v33  ;;  %v11445_v61 = vshll.u32 %v8055_v20, 16  ;;  %v641_v15 = vsel %vm7886_vm4, %v636_v9, %v640_v33  ;;  %v11446_v35 = vshll.u32 %v8061_v8, 16 }
  0x43   : > { %v11447_v63 = vshrl.u32 %v8061_v8, 16  ;;  %v8084_v37 = vpack.c.bf16 %v8065_v43, %v8065_v43  ;;  %v660_v50 = vrot.slane %v11444_v4, 5  ;;  %v656_v9 = vrot.slane %v655_v5, 4 }
  0x44   : > { %6347 = vmatmul.mubr.msk.bf16.gmra.mxu1 %vm857_vm2, %v6933_v14  ;;  %v627_v14 = vsel %vm7886_vm4, %v622_v46, %v626_v31  ;;  %v646_v60 = vrot.slane %v645_v2, 4  ;;  %v8092_v31 = vld [vmem:[%s7836_s26 + $0xb0] sm:$0xff]  ;;  %v665_v33 = vrot.slane %v11448_v6, 4  ;;  %v8106_v4 = vpack.c.bf16 %v8073_v62, %v8073_v62 }
  0x45   : > { %1208 = vmatprep.mubr.bf16.mxu1 %v11475_v3  ;;  %v6309_v46 = vcombine.low %v627_v14, %v641_v15  ;;  %v678_v2 = vrot.slane %v11447_v63, 4  ;;  %v11456_v5 = vshll.u32 %v8084_v37, 16  ;;  %v410_v14 = vld [vmem:[%s7836_s26 + $0x98] sm:$0xf]  ;;  %v8113_v15 = vpack.c.bf16 %v8092_v31, %v8092_v31  ;;  %v8122_v63 = vld [vmem:[%s7836_s26 + $0xc8] sm:$0xff] }
  0x46   : > { %v8129_v57 = vpack.c.bf16 %v8089_v49, %v8089_v49  ;;  %v11458_v19 = vshrl.u32 %v8084_v37, 16  ;;  %v11461_v53 = vshll.u32 %v8106_v4, 16  ;;  %v8143_v52 = vpack.c.bf16 %v410_v14, %v410_v14 }
  0x47   : > { %6325 = vmatmul.mubr.msk.bf16.gmra.mxu0 %vm857_vm2, %v6308_v36  ;;  %v1059_v36 = vpack.c.b16 %v466_v42, %v465_v40  ;;  %v668_v40 = vrot.slane %v11445_v61, 5  ;;  %v8100_v42 = vrot.slane %v11446_v35, 5  ;;  %v8116_v61 = vld [vmem:[%s7836_s26 + $0xc0] sm:$0xff]  ;;  %v651_v35 = vsel %vm7886_vm4, %v646_v60, %v650_v27 }
  0x48   : > { %973 = vmatprep.mubr.bf16.mxu0 %v11475_v3  ;;  %v11460_v27 = vshrl.u32 %v8106_v4, 16  ;;  %v8148_v51 = vpack.c.bf16 %v8116_v61, %v8116_v61  ;;  %v702_v14 = vrot.slane %v11461_v53, 5  ;;  %v11477_v12 = vshll.u32 %v8143_v52, 16 }
  0x49   : > { %v669_v6 = vor.u32 %v668_v40, %v665_v33  ;;  %v679_v60 = vor.u32 %v678_v2, %v8100_v42  ;;  %v11464_v33 = vshrl.u32 %v8129_v57, 16  ;;  %v11463_v40 = vshll.u32 %v8113_v15, 16 }
  0x4a   : > { %v11467_v2 = vshrl.u32 %v8113_v15, 16 }
  0x4b   : > { %v670_v22 = vrot.slane %v669_v6, 4  ;;  %v680_v30 = vrot.slane %v679_v60, 4  ;;  %v8164_v6 = vld [vmem:[%s7836_s26 + $0xd0] sm:$0xff]  ;;  %v8171_v21 = vrot.slane %v11463_v40, 5  ;;  %v11472_v60 = vshrl.u32 %v8148_v51, 16 }
  0x4c   : > { %6348 = vmatmul.mubr.msk.bf16.gmra.mxu1 %vm857_vm2, %v1059_v36  ;;  %v661_v36 = vsel %vm7886_vm4, %v656_v9, %v660_v50  ;;  %v431_v50 = vpack.c.bf16 %v8033_v0, %v8026_v59  ;;  %v414_v9 = vld [vmem:[%s7836_s26 + $0xb8] sm:$0xf]  ;;  %v11469_v59 = vshll.u32 %v8129_v57, 16  ;;  %v8155_v0 = vpack.c.bf16 %v8122_v63, %v8122_v63 }
  0x4d   : > { %1218 = vmatprep.mubr.bf16.mxu1 %v11475_v3  ;;  %v6310_v56 = vcombine.low %v651_v35, %v661_v36  ;;  %v699_v35 = vrot.slane %v11460_v27, 4  ;;  %v6934_v36 = vpack.c.bf16 %v8073_v62, %v8065_v43  ;;  %v11471_v27 = vshll.u32 %v8148_v51, 16 }
  0x4e   : > { %v8176_v53 = vpack.c.bf16 %v414_v9, %v414_v9  ;;  %v722_v43 = vrot.slane %v11467_v2, 4  ;;  %v11474_v58 = vshrl.u32 %v8155_v0, 16  ;;  %v675_v40 = vsel %vm7886_vm4, %v670_v22, %v8100_v42 }
  0x4f   : > { %6326 = vmatmul.mubr.msk.bf16.gmra.mxu0 %vm857_vm2, %v6309_v46  ;;  %v684_v46 = vrot.slane %v11456_v5, 5  ;;  %v688_v5 = vrot.slane %v11458_v19, 4  ;;  %v712_v19 = vrot.slane %v11464_v33, 4  ;;  %v708_v55 = vrot.slane %v11469_v59, 5 }
  0x50   : > { %983 = vmatprep.mubr.bf16.mxu0 %v11475_v3  ;;  %v703_v32 = vor.u32 %v702_v14, %v699_v35  ;;  %v434_v22 = vpack.c.bf16 %v414_v9, %v8092_v31  ;;  %v733_v59 = vrot.slane %v11472_v60, 4  ;;  %v736_v41 = vrot.slane %v11471_v27, 5  ;;  %v8213_v31 = vld [vmem:[%s7836_s26 + $0xe0] sm:$0xff]  ;;  %v8218_v27 = vld [vmem:[%s7836_s26 + $0xe8] sm:$0xff] }
  0x51   : > { %v689_v33 = vor.u32 %v688_v5, %v684_v46  ;;  %v685_v2 = vsel %vm7886_vm4, %v680_v30, %v684_v46  ;;  %v713_v42 = vor.u32 %v712_v19, %v708_v55  ;;  %v8197_v5 = vpack.c.bf16 %v8164_v6, %v8164_v6 }
  0x52   : > { %v723_v30 = vor.u32 %v722_v43, %v8171_v21  ;;  %v746_v19 = vrot.slane %v11474_v58, 4  ;;  %v6311_v9 = vcombine.low %v675_v40, %v685_v2  ;;  %v694_v14 = vrot.slane %v11477_v12, 5 }
  0x53   : > { %v690_v35 = vrot.slane %v689_v33, 4  ;;  %v704_v43 = vrot.slane %v703_v32, 4  ;;  %v472_v48 = vunpack.c.l.b16 %v434_v22  ;;  %v714_v58 = vrot.slane %v713_v42, 4 }
  0x54   : > { %6349 = vmatmul.mubr.msk.bf16.gmra.mxu1 %vm857_vm2, %v431_v50  ;;  %v11473_v50 = vshll.u32 %v8155_v0, 16  ;;  %v737_v46 = vor.u32 %v736_v41, %v733_v59  ;;  %v8227_v33 = vpack.c.bf16 %v8213_v31, %v8213_v31  ;;  %v11530_v40 = vmov 0  }
  0x55   : > { %1228 = vmatprep.mubr.bf16.mxu1 %v11475_v3  ;;  %v724_v2 = vrot.slane %v723_v30, 4  ;;  %v11531_v32 = vshll.u32 %v8176_v53, 16  ;;  %v695_v41 = vsel %vm7886_vm4, %v690_v35, %v694_v14  ;;  %v709_v42 = vsel %vm7886_vm4, %v704_v43, %v708_v55  ;;  %v8264_v43 = vld [vmem:[%s7836_s26 + $0xf0] sm:$0xff] }
  0x56   : > { %11529 = vst [vmem:[#allocation10_spill] sm:$0xff] %v8227_v33  ;;  %v738_v12 = vrot.slane %v737_v46, 4  ;;  %v6312_v35 = vcombine.low %v695_v41, %v709_v42  ;;  %v11535_v41 = vshrl.u32 %v8227_v33, 16 }
  0x57   : > { %6327 = vmatmul.mubr.msk.bf16.gmra.mxu0 %vm857_vm2, %v6310_v56  ;;  %v433_v56 = vpack.c.bf16 %v8089_v49, %v8073_v62  ;;  %v8207_v49 = vrot.slane %v11473_v50, 5  ;;  %v418_v62 = vld [vmem:[%s7836_s26 + $0xd8] sm:$0xf] }
  0x58   : > { %993 = vmatprep.mubr.bf16.mxu0 %v11475_v3  ;;  %v7321_v50 = vld [vmem:[%s11426_s1 + $0x70] ss:$8 sps:$4 sm:$0x3f]   ;;  %v11478_v3 = vshll.u32 %v8197_v5, 16  ;;  %v8239_v59 = vpack.c.bf16 %v418_v62, %v418_v62  ;;  %v767_v42 = vrot.slane %v11535_v41, 4 }
  0x59   : > { %v471_v60 = vunpack.c.h.b16 %v433_v56  ;;  %v728_v56 = vrot.slane %v11531_v32, 5  ;;  %v747_v22 = vor.u32 %v746_v19, %v8207_v49  ;;  %v8246_v19 = vpack.c.bf16 %v8218_v27, %v8218_v27 }
  0x5a   : > { %11532 = vst [vmem:[#allocation11_spill] sm:$0xff] %v8239_v59  ;;  %v8254_v62 = vrot.slane %v11478_v3, 5  ;;  %v1675_v3 = vrot.slane %v7894_v54, 4  ;;  %v11480_v32 = vshll.u32 %v8239_v59, 16 }
  0x5b   : > { %v1062_v30 = vpack.c.b16 %v472_v48, %v471_v60  ;;  %v7325_v48 = vld [vmem:[%s11426_s1 + $0x60] ss:$8 sps:$4 sm:$0xff]   ;;  %v729_v55 = vsel %vm7886_vm4, %v724_v2, %v728_v56  ;;  %v748_v60 = vrot.slane %v747_v22, 4  ;;  %v11534_v2 = vshrl.u32 %v8197_v5, 16 }
  0x5c   : > { %6350 = vmatmul.mubr.msk.bf16.gmra.mxu1 %vm857_vm2, %v6934_v36  ;;  %v7327_v36 = vld [vmem:[%s11426_s1 + $0x64] ss:$8 sps:$4 sm:$0xff]   ;;  %v11479_v22 = vshll.u32 %v8246_v19, 16 }
  0x5d   : > { %1238 = vmatprep.mubr.bf16.mxu1 %v11530_v40  ;;  %v756_v56 = vrot.slane %v11534_v2, 4 }
  0x5f   : > { %6328 = vmatmul.mubr.msk.bf16.gmra.mxu0 %vm857_vm2, %v6311_v9  ;;  %v719_v9 = vsel %vm7886_vm4, %v714_v58, %v8171_v21  ;;  %v1923_v58 = vsel %vm894_vm0, %v7321_v50, 0  ;;  %v11533_v21 = vor.u32 %v7878_v39, %v7876_v38  ;;  %v435_v38 = vpack.c.bf16 %v8122_v63, %v8116_v61  ;;  %v8279_v39 = vld [vmem:[%s7836_s26 + $0xf8] sm:$0xf]  ;;  %s6896_s26 = sshll.u32 %s7769_s21, 7  ;;  %s7623_s21 = scalar_lea.vmem %s7622_s0, 256 }
  0x60   : > { %1003 = vmatprep.mubr.bf16.mxu0 %v11530_v40  ;;  %1941 = vmatpush1.bf16.msra.mxu1 %v1923_v58  ;;  %v6313_v14 = vcombine.low %v719_v9, %v729_v55  ;;  %v743_v50 = vsel %vm7886_vm4, %v738_v12, %v8207_v49  ;;  %v11537_v61 = vmov 0  ;;  %v6935_v63 = vpack.c.bf16 %v8213_v31, %v8164_v6  ;;  %s6200_s30 = scalar_lea.hbm %s11436_s11, %s6896_s26 }
  0x61   : > { %v1670_v46 = vrot.slane %v11533_v21, 4  ;;  %1942 = vmatprep.subr.bf16.mxu1 %v7327_v36  ;;  %v753_v36 = vsel %vm7886_vm4, %v748_v60, %v8254_v62  ;;  %v11538_v61 = vsel %vm8292_vm7, 4294967295, %v11537_v61  ;;  %v8301_v12 = vpack.c.bf16 %v8264_v43, %v8264_v43 }
  0x62   : > { %11539 = vst [vmem:[#allocation12_spill] sm:$0xff] %v11538_v61  ;;  %v757_v55 = vor.u32 %v756_v56, %v8254_v62  ;;  %v8310_v60 = vrot.slane %v11480_v32, 5  ;;  %v8314_v6 = vrot.slane %v11479_v22, 5  ;;  %v1681_v62 = vshrl.u32 %v7856_v23, 16 }
  0x63   : > { %v1674_v49 = vsel %vm8292_vm7, %v1670_v46, %v7894_v54  ;;  %v8321_v54 = vpack.c.bf16 %v8279_v39, %v8279_v39  ;;  %v11540_v46 = vshll.u32 %v7856_v23, 16  ;;  %v11541_v56 = vshrl.u32 %v7860_v24, 16 }
  0x64   : > { %6351 = vmatmul.mubr.msk.bf16.gmra.mxu1 %vm857_vm2, %v1062_v30  ;;  %v11536_v30 = vshll.u32 %v8227_v33, 16  ;;  %v11545_v33 = vshrl.u32 %v7921_v10, 16 }
  0x65   : > { %1248 = vmatprep.mubr.bf16.mxu1 %v11530_v40  ;;  %1943 = vmatpush1.bf16.msra.mxu1 %v7325_v48  ;;  %v6314_v48 = vcombine.low %v743_v50, %v753_v36  ;;  %v1684_v2 = vrot.slane %v11540_v46, 6  ;;  %v1687_v41 = vrot.slane %v11541_v56, 5  ;;  %v1683_v50 = vrot.slane %v1681_v62, 5 }
  0x66   : > { %v770_v9 = vrot.slane %v11536_v30, 5  ;;  %v11542_v30 = vshll.u32 %v7860_v24, 16  ;;  %v11543_v36 = vshrl.u32 %v7864_v25, 16  ;;  %v1696_v56 = vrot.slane %v11545_v33, 5 }
  0x67   : > { %6329 = vmatmul.mubr.msk.bf16.gmra.mxu0 %vm857_vm2, %v6312_v35  ;;  %v1679_v35 = vsel %vm8292_vm7, %v1675_v3, %v7915_v7  ;;  %v1680_v3 = vrot.slane %v7915_v7, 4  ;;  %v11546_v7 = vshll.u32 %v7921_v10, 16 }
  0x68   : > { %1013 = vmatprep.mubr.bf16.mxu0 %v11530_v40  ;;  %v8323_v58 = vcombine.low %v1674_v49, %v1679_v35  ;;  %v771_v21 = vor.u32 %v770_v9, %v767_v42  ;;  %v1688_v22 = vrot.slane %v11542_v30, 6  ;;  %v1691_v32 = vrot.slane %v11543_v36, 5 }
  0x69   : > { %v11544_v49 = vshll.u32 %v7864_v25, 16  ;;  %v11485_v42 = vshrl.u32 %v8246_v19, 16  ;;  %v1685_v30 = vor.u32 %v1684_v2, %v1683_v50  ;;  %v1697_v62 = vrot.slane %v11546_v7, 6 }
  0x6a   : > { %v1689_v46 = vor.u32 %v1688_v22, %v1687_v41  ;;  %v1701_v36 = vshrl.u32 %v7923_v11, 16  ;;  %v437_v9 = vpack.c.bf16 %v8218_v27, %v8213_v31  ;;  %v11547_v41 = vshll.u32 %v7923_v11, 16 }
  0x6b   : > { %v1692_v35 = vrot.slane %v11544_v49, 6  ;;  %v1698_v2 = vor.u32 %v1697_v62, %v1696_v56  ;;  %v772_v7 = vrot.slane %v771_v21, 4  ;;  %v438_v49 = vpack.c.bf16 %v8279_v39, %v8264_v43 }
  0x6c   : > { %6352 = vmatmul.mubr.msk.bf16.gmra.mxu1 %vm857_vm2, %v435_v38  ;;  %v1690_v22 = vrot.slane %v1689_v46, 4  ;;  %v1704_v33 = vrot.slane %v11547_v41, 6  ;;  %v1703_v50 = vrot.slane %v1701_v36, 5  ;;  %v780_v31 = vrot.slane %v11485_v42, 4 }
  0x6d   : > { %v1693_v59 = vor.u32 %v1692_v35, %v1691_v32  ;;  %1258 = vmatprep.mubr.bf16.mxu1 %v11530_v40  ;;  %v1686_v32 = vsel %vm8292_vm7, %v1680_v3, %v1685_v30  ;;  %v758_v35 = vrot.slane %v757_v55, 4  ;;  %v1700_v46 = vrot.slane %v1698_v2, 4 }
  0x6e   : > { %v11548_v56 = vshll.u32 %v8301_v12, 16  ;;  %v11549_v21 = vshrl.u32 %v8301_v12, 16  ;;  %v477_v39 = vunpack.c.h.b16 %v437_v9  ;;  %v1705_v30 = vor.u32 %v1704_v33, %v1703_v50 }
  0x6f   : > { %6330 = vmatmul.mubr.msk.bf16.gmra.mxu0 %vm857_vm2, %v6313_v14  ;;  %v1695_v38 = vrot.slane %v1693_v59, 4  ;;  %v1694_v27 = vsel %vm8292_vm7, %v1690_v22, %v1693_v59  ;;  %v11550_v59 = vshrl.u32 %v7939_v26, 16  ;;  %v11551_v36 = vshll.u32 %v7939_v26, 16 }
  0x70   : > { %1023 = vmatprep.mubr.bf16.mxu0 %v11530_v40  ;;  %v8361_v14 = vcombine.low %v1686_v32, %v1694_v27  ;;  %v8369_v55 = vrot.slane %v11548_v56, 5  ;;  %v790_v43 = vrot.slane %v11549_v21, 4  ;;  %v11552_v41 = vshrl.u32 %v7952_v34, 16 }
  0x71   : > { %v8365_v3 = vsel %vm8292_vm7, %v1695_v38, %v1698_v2  ;;  %v1707_v62 = vrot.slane %v11550_v59, 5  ;;  %v1708_v22 = vrot.slane %v11551_v36, 6  ;;  %v11553_v38 = vshll.u32 %v7952_v34, 16 }
  0x72   : > { %v1711_v32 = vrot.slane %v11552_v41, 5  ;;  %v478_v27 = vunpack.c.l.b16 %v438_v49  ;;  %v8383_v56 = vsel %vm8292_vm7, %v1700_v46, %v1705_v30  ;;  %v11554_v9 = vshrl.u32 %v7964_v45, 16 }
  0x73   : > { %v1712_v2 = vrot.slane %v11553_v38, 6  ;;  %v11555_v50 = vshll.u32 %v7964_v45, 16  ;;  %v1709_v36 = vor.u32 %v1708_v22, %v1707_v62  ;;  %v763_v49 = vsel %vm7886_vm4, %v758_v35, %v8310_v60 }
  0x74   : > { %v1716_v33 = vrot.slane %v11554_v9, 5  ;;  %6353 = vmatmul.mubr.msk.bf16.gmra.mxu1 %vm857_vm2, %v6935_v63  ;;  %v777_v46 = vsel %vm7886_vm4, %v772_v7, %v8314_v6  ;;  %v11488_v30 = vshll.u32 %v8321_v54, 16  ;;  %v781_v63 = vor.u32 %v780_v31, %v8314_v6 }
  0x75   : > { %v1717_v21 = vrot.slane %v11555_v50, 6  ;;  %v1713_v41 = vor.u32 %v1712_v2, %v1711_v32  ;;  %1268 = vmatprep.mubr.bf16.mxu1 %v11530_v40  ;;  %v1710_v9 = vrot.slane %v1709_v36, 4  ;;  %v1721_v22 = vshrl.u32 %v8005_v28, 16 }
  0x76   : > { %v791_v60 = vor.u32 %v790_v43, %v8369_v55  ;;  %v1065_v35 = vpack.c.b16 %v478_v27, %v477_v39  ;;  %v11556_v7 = vshll.u32 %v8005_v28, 16  ;;  %v11557_v2 = vshrl.u32 %v7997_v13, 16 }
  0x77   : > { %v1718_v38 = vor.u32 %v1717_v21, %v1716_v33  ;;  %6331 = vmatmul.mubr.msk.bf16.gmra.mxu0 %vm857_vm2, %v6314_v48  ;;  %v1715_v62 = vrot.slane %v1713_v41, 4  ;;  %v1714_v48 = vsel %vm8292_vm7, %v1710_v9, %v1713_v41  ;;  %v1723_v33 = vrot.slane %v1721_v22, 5 }
  0x78   : > { %1033 = vmatprep.mubr.bf16.mxu0 %v11530_v40  ;;  %v1724_v32 = vrot.slane %v11556_v7, 6  ;;  %v1727_v50 = vrot.slane %v11557_v2, 5  ;;  %v796_v21 = vrot.slane %v11488_v30, 5  ;;  %v11558_v43 = vshll.u32 %v7997_v13, 16 }
  0x79   : > { %v1719_v6 = vsel %vm8292_vm7, %v1715_v62, %v1718_v38  ;;  %v1720_v31 = vrot.slane %v1718_v38, 4  ;;  %v11559_v27 = vshrl.u32 %v8010_v1, 16  ;;  %v6315_v2 = vcombine.low %v763_v49, %v777_v46 }
  0x7a   : > { %v8415_v36 = vcombine.low %v1714_v48, %v1719_v6  ;;  %v1728_v39 = vrot.slane %v11558_v43, 6  ;;  %v782_v42 = vrot.slane %v781_v63, 4  ;;  %v1725_v59 = vor.u32 %v1724_v32, %v1723_v33 }
  0x7b   : > { %v1731_v7 = vrot.slane %v11559_v27, 5  ;;  %v11560_v41 = vshll.u32 %v8010_v1, 16  ;;  %v792_v62 = vrot.slane %v791_v60, 4  ;;  %v11561_v22 = vshrl.u32 %v8020_v44, 16 }
  0x7c   : > { %v1729_v38 = vor.u32 %v1728_v39, %v1727_v50  ;;  %v11562_v48 = vshll.u32 %v8020_v44, 16  ;;  %6354 = vmatmul.mubr.msk.bf16.gmra.mxu1 %vm857_vm2, %v1065_v35  ;;  %v1726_v43 = vsel %vm8292_vm7, %v1720_v31, %v1725_v59  ;;  %v1741_v60 = vshrl.u32 %v8045_v29, 16 }
  0x7d   : > { %v1732_v9 = vrot.slane %v11560_v41, 6  ;;  %v1736_v28 = vrot.slane %v11561_v22, 5  ;;  %1960 = vmatprep.mubr.bf16.mxu1 %v11530_v40  ;;  %v11563_v32 = vshll.u32 %v8045_v29, 16  ;;  %v787_v35 = vsel %vm7886_vm4, %v782_v42, %v8369_v55 }
  0x7e   : > { %v1737_v6 = vrot.slane %v11562_v48, 6  ;;  %v1730_v46 = vrot.slane %v1729_v38, 4  ;;  %v1284_v33 = vrot.slane %v7845_v17, 5  ;;  %v1743_v27 = vrot.slane %v1741_v60, 5 }
  0x7f   : > { %v1733_v49 = vor.u32 %v1732_v9, %v1731_v7  ;;  %v1744_v50 = vrot.slane %v11563_v32, 6  ;;  %6332 = vmatmul.mubr.msk.bf16.gmra.mxu0 %vm857_vm2, %v6315_v2  ;;  %v6355_v7 = vrot.slane %v7843_v16, 9  ;;  %v1287_v2 = vrot.slane %v7847_v18, 5 }
  0x80   : > { %v1738_v63 = vor.u32 %v1737_v6, %v1736_v28  ;;  %1043 = vmatprep.mubr.bf16.mxu0 %v11530_v40  ;;  %v797_v28 = vsel %vm7886_vm4, %v792_v62, %v796_v21  ;;  %v11564_v55 = vmov 0  ;;  %v11567_v9 = vshrl.u32 %v8055_v20, 16 }
  0x81   : > { %v1735_v59 = vrot.slane %v1733_v49, 4  ;;  %v1734_v31 = vsel %vm8292_vm7, %v1730_v46, %v1733_v49  ;;  %v11565_v55 = vsel %vm8453_vm10, 4294967295, %v11564_v55  ;;  %v1745_v21 = vor.u32 %v1744_v50, %v1743_v27 }
  0x82   : > { %v1740_v39 = vrot.slane %v1738_v63, 4  ;;  %v8446_v41 = vcombine.low %v1726_v43, %v1734_v31  ;;  %11566 = vst [vmem:[#allocation13_spill] sm:$0xff] %v11565_v55  ;;  %v1747_v62 = vrot.slane %v11567_v9, 5  ;;  %v11568_v38 = vshll.u32 %v8055_v20, 16 }
  0x83   : > { %v8450_v42 = vsel %vm8292_vm7, %v1735_v59, %v1738_v63  ;;  %v11569_v48 = vshrl.u32 %v8061_v8, 16  ;;  %v6316_v43 = vcombine.low %v787_v35, %v797_v28  ;;  %v1286_v49 = vrot.slane %v1284_v33, 4 }
  0x84   : > { %v1748_v22 = vrot.slane %v11568_v38, 6  ;;  %v11570_v46 = vshll.u32 %v8061_v8, 16  ;;  %v11571_v60 = vshrl.u32 %v8084_v37, 16  ;;  %v8469_v50 = vsel %vm8292_vm7, %v1740_v39, %v1745_v21  ;;  %6417 = vmatmul.mubr.msk.bf16.vlgmr.msra.gmra.mxu1 %vm857_vm2, %v8323_v58 }
  0x85   : > { %v1751_v6 = vrot.slane %v11569_v48, 5  ;;  %v11572_v31 = vshll.u32 %v8084_v37, 16  ;;  %v1285_v9 = vsel %vm8453_vm10, %v6355_v7, %v1284_v33  ;;  %v1289_v38 = vrot.slane %v1287_v2, 4  ;;  %1970 = vmatprep.mubr.bf16.mxu1 %v11530_v40 }
  0x86   : > { %v1752_v63 = vrot.slane %v11570_v46, 6  ;;  %v1756_v32 = vrot.slane %v11571_v60, 5  ;;  %v1749_v59 = vor.u32 %v1748_v22, %v1747_v62  ;;  %v1290_v48 = vrot.slane %v7856_v23, 5 }
  0x87   : > { %v1757_v27 = vrot.slane %v11572_v31, 6  ;;  %6333 = vmatmul.mubr.msk.bf16.gmra.mxu0 %vm857_vm2, %v6316_v43  ;;  %v1288_v62 = vsel %vm8453_vm10, %v1286_v49, %v1287_v2  ;;  %v6356_v33 = vrot.slane %v7860_v24, 9  ;;  %v1761_v58 = vshrl.u32 %v8143_v52, 16  ;;  %v7330_v2 = vld [vmem:[%s11426_s1 + $0x90] ss:$8 sps:$4 sm:$0x3f]  }
  0x88   : > { %v1753_v28 = vor.u32 %v1752_v63, %v1751_v6  ;;  %v1750_v39 = vrot.slane %v1749_v59, 4  ;;  %1495 = vmatprep.mubr.bf16.mxu0 %v11530_v40  ;;  %v1294_v22 = vrot.slane %v7864_v25, 5  ;;  %v11573_v46 = vshll.u32 %v8143_v52, 16 }
  0x89   : > { %v1758_v21 = vor.u32 %v1757_v27, %v1756_v32  ;;  %v11574_v43 = vshrl.u32 %v8106_v4, 16  ;;  %v1763_v59 = vrot.slane %v1761_v58, 5  ;;  %v11575_v31 = vshll.u32 %v8106_v4, 16 }
  0x8a   : > { %v1755_v7 = vrot.slane %v1753_v28, 4  ;;  %v1754_v6 = vsel %vm8292_vm7, %v1750_v39, %v1753_v28  ;;  %v1764_v63 = vrot.slane %v11573_v46, 6  ;;  %v11576_v28 = vshrl.u32 %v8129_v57, 16 }
  0x8b   : > { %v1767_v60 = vrot.slane %v11574_v43, 5  ;;  %v1760_v32 = vrot.slane %v1758_v21, 4  ;;  %v1768_v27 = vrot.slane %v11575_v31, 6  ;;  %v11577_v46 = vshll.u32 %v8129_v57, 16 }
  0x8c   : > { %v1759_v49 = vsel %vm8292_vm7, %v1755_v7, %v1758_v21  ;;  %v1771_v39 = vrot.slane %v11576_v28, 5  ;;  %v6367_v30 = vcombine.low %v1285_v9, %v1288_v62  ;;  %v1765_v47 = vor.u32 %v1764_v63, %v1763_v59  ;;  %6418 = vmatmul.mubr.msk.bf16.gmra.mxu1 %vm857_vm2, %v8361_v14 }
  0x8d   : > { %v8501_v35 = vcombine.low %v1754_v6, %v1759_v49  ;;  %v1772_v43 = vrot.slane %v11577_v46, 6  ;;  %v1769_v25 = vor.u32 %v1768_v27, %v1767_v60  ;;  %v1291_v24 = vsel %vm8453_vm10, %v1289_v38, %v1290_v48  ;;  %v7333_v38 = vld [vmem:[%s11426_s1 + $0x84] ss:$8 sps:$4 sm:$0xff]   ;;  %1980 = vmatprep.mubr.bf16.mxu1 %v11530_v40 }
  0x8e   : > { %v11578_v21 = vshrl.u32 %v8113_v15, 16  ;;  %v11579_v31 = vshll.u32 %v8113_v15, 16  ;;  %v1295_v49 = vsel %vm8453_vm10, %v6356_v33, %v1294_v22  ;;  %v2308_v9 = vsel %vm894_vm0, %v7330_v2, 0 }
  0x8f   : > { %v1773_v7 = vor.u32 %v1772_v43, %v1771_v39  ;;  %v1766_v62 = vsel %vm8292_vm7, %v1760_v32, %v1765_v47  ;;  %v1770_v63 = vrot.slane %v1769_v25, 4  ;;  %v1781_v59 = vshrl.u32 %v8176_v53, 16  ;;  %6384 = vmatmul.mubr.msk.bf16.vlgmr.msra.gmra.mxu0 %vm857_vm2, %v6367_v30  ;;  %v7331_v30 = vld [vmem:[%s11426_s1 + $0x80] ss:$8 sps:$4 sm:$0xff]  }
  0x90   : > { %v1776_v58 = vrot.slane %v11578_v21, 5  ;;  %v1777_v6 = vrot.slane %v11579_v31, 6  ;;  %v1297_v14 = vrot.slane %v7921_v10, 5  ;;  %v11580_v47 = vshll.u32 %v8176_v53, 16  ;;  %1505 = vmatprep.mubr.bf16.mxu0 %v11530_v40  ;;  %2326 = vmatpush1.bf16.msra.mxu0 %v2308_v9 }
  0x91   : > { %v1775_v48 = vrot.slane %v1773_v7, 4  ;;  %v1774_v33 = vsel %vm8292_vm7, %v1770_v63, %v1773_v7  ;;  %v6368_v2 = vcombine.low %v1291_v24, %v1295_v49  ;;  %v1296_v28 = vrot.slane %v1294_v22, 4  ;;  %2327 = vmatprep.subr.bf16.mxu0 %v7333_v38 }
  0x92   : > { %v1778_v60 = vor.u32 %v1777_v6, %v1776_v58  ;;  %v1784_v25 = vrot.slane %v11580_v47, 6  ;;  %v8532_v32 = vcombine.low %v1766_v62, %v1774_v33  ;;  %v1300_v39 = vrot.slane %v7923_v11, 5 }
  0x93   : > { %v1783_v43 = vrot.slane %v1781_v59, 5  ;;  %v11581_v7 = vshrl.u32 %v8148_v51, 16  ;;  %v11582_v21 = vshll.u32 %v8148_v51, 16  ;;  %v11583_v31 = vshrl.u32 %v8155_v0, 16 }
  0x94   : > { %v8536_v27 = vsel %vm8292_vm7, %v1775_v48, %v1778_v60  ;;  %v1780_v46 = vrot.slane %v1778_v60, 4  ;;  %v11584_v49 = vshll.u32 %v8155_v0, 16  ;;  %v1299_v62 = vrot.slane %v1297_v14, 4  ;;  %2328 = vmatpush1.bf16.msra.mxu0 %v7331_v30 }
  0x95   : > { %v1787_v24 = vrot.slane %v11581_v7, 5  ;;  %v1788_v58 = vrot.slane %v11582_v21, 6  ;;  %v1791_v6 = vrot.slane %v11583_v31, 5  ;;  %v1785_v63 = vor.u32 %v1784_v25, %v1783_v43 }
  0x96   : > { %v1792_v9 = vrot.slane %v11584_v49, 6  ;;  %v11585_v22 = vshrl.u32 %v8197_v5, 16  ;;  %v11586_v60 = vshll.u32 %v8197_v5, 16  ;;  %v11587_v47 = vcombine.low %v8365_v3, %v8383_v56  ;;  %v11588_v56 = vld [vmem:[#allocation11_spill] sm:$0xff] }
  0x97   : > { %v1789_v59 = vor.u32 %v1788_v58, %v1787_v24  ;;  %v8560_v7 = vsel %vm8292_vm7, %v1780_v46, %v1785_v63  ;;  %6385 = vmatmul.mubr.msk.bf16.gmra.mxu0 %vm857_vm2, %v6368_v2  ;;  %v1298_v30 = vsel %vm8453_vm10, %v1296_v28, %v1297_v14  ;;  %v1301_v3 = vsel %vm8453_vm10, %v1299_v62, %v1300_v39 }
  0x98   : > { %v1796_v48 = vrot.slane %v11585_v22, 5  ;;  %v1797_v38 = vrot.slane %v11586_v60, 6  ;;  %v1793_v33 = vor.u32 %v1792_v9, %v1791_v6  ;;  %6419 = vmatmul.mubr.msk.bf16.gmra.mxu1 %vm857_vm2, %v11587_v47  ;;  %v1801_v24 = vshrl.u32 %v11588_v56, 16  ;;  %1515 = vmatprep.mubr.bf16.mxu0 %v11530_v40  ;;  %v11590_v9 = vld [vmem:[#allocation10_spill] sm:$0xff] }
  0x99   : > { %1990 = vmatprep.mubr.bf16.mxu1 %v11530_v40  ;;  %v1790_v43 = vrot.slane %v1789_v59, 4  ;;  %v11589_v46 = vshll.u32 %v11588_v56, 16  ;;  %v1304_v6 = vrot.slane %v7952_v34, 5  ;;  %v11591_v14 = vshrl.u32 %v11590_v9, 16 }
  0x9a   : > { %v1798_v21 = vor.u32 %v1797_v38, %v1796_v48  ;;  %v1795_v31 = vrot.slane %v1793_v33, 4  ;;  %v1803_v62 = vrot.slane %v1801_v24, 5  ;;  %v11592_v22 = vshll.u32 %v11590_v9, 16 }
  0x9b   : > { %v1804_v58 = vrot.slane %v11589_v46, 6  ;;  %v1794_v49 = vsel %vm8292_vm7, %v1790_v43, %v1793_v33  ;;  %v1807_v28 = vrot.slane %v11591_v14, 5  ;;  %v6357_v60 = vrot.slane %v7939_v26, 9 }
  0x9c   : > { %v1799_v2 = vsel %vm8292_vm7, %v1795_v31, %v1798_v21  ;;  %v1800_v39 = vrot.slane %v1798_v21, 4  ;;  %v1808_v48 = vrot.slane %v11592_v22, 6  ;;  %v11593_v38 = vshrl.u32 %v8246_v19, 16 }
  0x9d   : > { %v8581_v63 = vcombine.low %v1794_v49, %v1799_v2  ;;  %v11594_v33 = vshll.u32 %v8246_v19, 16  ;;  %v6369_v43 = vcombine.low %v1298_v30, %v1301_v3  ;;  %v1805_v31 = vor.u32 %v1804_v58, %v1803_v62 }
  0x9e   : > { %v1811_v59 = vrot.slane %v11593_v38, 5  ;;  %v1809_v46 = vor.u32 %v1808_v48, %v1807_v28  ;;  %v11595_v14 = vshrl.u32 %v8301_v12, 16  ;;  %v1306_v2 = vrot.slane %v1304_v6, 4 }
  0x9f   : > { %v1812_v47 = vrot.slane %v11594_v33, 6  ;;  %v1307_v21 = vrot.slane %v7964_v45, 5  ;;  %v11596_v22 = vshll.u32 %v8301_v12, 16  ;;  %v1806_v38 = vsel %vm8292_vm7, %v1800_v39, %v1805_v31  ;;  %6386 = vmatmul.mubr.msk.bf16.gmra.mxu0 %vm857_vm2, %v6369_v43 }
  0xa0   : > { %v1816_v49 = vrot.slane %v11595_v14, 5  ;;  %6420 = vmatmul.mubr.msk.bf16.gmra.mxu1 %vm857_vm2, %v8415_v36  ;;  %v1810_v33 = vrot.slane %v1809_v46, 4  ;;  %v1821_v30 = vshrl.u32 %v8321_v54, 16  ;;  %v11597_v3 = vshll.u32 %v8321_v54, 16  ;;  %1525 = vmatprep.mubr.bf16.mxu0 %v11530_v40 }
  0xa1   : > { %v1813_v24 = vor.u32 %v1812_v47, %v1811_v59  ;;  %v1817_v25 = vrot.slane %v11596_v22, 6  ;;  %2000 = vmatprep.mubr.bf16.mxu1 %v11530_v40  ;;  %v1305_v48 = vsel %vm8453_vm10, %v6357_v60, %v1304_v6  ;;  %v1308_v39 = vsel %vm8453_vm10, %v1306_v2, %v1307_v21  ;;  %v11598_v60 = vld [vmem:[#allocation9_spill] sm:$0xff] }
  0xa2   : > { %v1824_v58 = vrot.slane %v11597_v3, 6  ;;  %v1823_v59 = vrot.slane %v1821_v30, 5  ;;  %v6370_v46 = vcombine.low %v1305_v48, %v1308_v39  ;;  %v1309_v14 = vrot.slane %v1307_v21, 4 }
  0xa3   : > { %v1815_v28 = vrot.slane %v1813_v24, 4  ;;  %v1818_v62 = vor.u32 %v1817_v25, %v1816_v49  ;;  %v1814_v36 = vsel %vm8292_vm7, %v1810_v33, %v1813_v24  ;;  %v1310_v49 = vrot.slane %v11598_v60, 5 }
  0xa4   : > { %v8611_v47 = vcombine.low %v1806_v38, %v1814_v36  ;;  %v1825_v43 = vor.u32 %v1824_v58, %v1823_v59  ;;  %v6358_v24 = vrot.slane %v7997_v13, 9  ;;  %v1314_v2 = vrot.slane %v8010_v1, 5 }
  0xa5   : > { %v8615_v31 = vsel %vm8292_vm7, %v1815_v28, %v1818_v62  ;;  %v1820_v25 = vrot.slane %v1818_v62, 4  ;;  %v1311_v21 = vsel %vm8453_vm10, %v1309_v14, %v1310_v49  ;;  %v1317_v33 = vrot.slane %v8020_v44, 5 }
  0xa6   : > { %v1315_v38 = vsel %vm8453_vm10, %v6358_v24, %v1314_v2  ;;  %v1316_v3 = vrot.slane %v1314_v2, 4  ;;  %v1320_v28 = vrot.slane %v8045_v29, 5  ;;  %v1324_v36 = vrot.slane %v8061_v8, 5 }
  0xa7   : > { %v8619_v6 = vsel %vm8292_vm7, %v1820_v25, %v1825_v43  ;;  %6387 = vmatmul.mubr.msk.bf16.gmra.mxu0 %vm857_vm2, %v6370_v46  ;;  %v6371_v30 = vcombine.low %v1311_v21, %v1315_v38  ;;  %v1319_v58 = vrot.slane %v1317_v33, 4  ;;  %v6359_v39 = vrot.slane %v8055_v20, 9 }
  0xa8   : > { %v6411_v22 = vcombine.low %v8615_v31, %v8619_v6  ;;  %6421 = vmatmul.mubr.msk.bf16.gmra.mxu1 %vm857_vm2, %v8446_v41  ;;  %1535 = vmatprep.mubr.bf16.mxu0 %v11530_v40  ;;  %v11599_v41 = vcombine.low %v8450_v42, %v8469_v50  ;;  %v1318_v62 = vsel %vm8453_vm10, %v1316_v3, %v1317_v33  ;;  %v1326_v42 = vrot.slane %v1324_v36, 4 }
  0xa9   : > { %2010 = vmatprep.mubr.bf16.mxu1 %v11530_v40  ;;  %v1321_v48 = vsel %vm8453_vm10, %v1319_v58, %v1320_v28  ;;  %v1327_v50 = vrot.slane %v8084_v37, 5  ;;  %v1325_v25 = vsel %vm8453_vm10, %v6359_v39, %v1324_v36  ;;  %v1330_v49 = vrot.slane %v8143_v52, 5 }
  0xaa   : > { %v6372_v59 = vcombine.low %v1318_v62, %v1321_v48  ;;  %v6360_v24 = vrot.slane %v8106_v4, 9  ;;  %v1337_v38 = vrot.slane %v8113_v15, 5  ;;  %v1340_v58 = vrot.slane %v8176_v53, 5 }
  0xab   : > { %v1328_v43 = vsel %vm8453_vm10, %v1326_v42, %v1327_v50  ;;  %v1329_v14 = vrot.slane %v1327_v50, 4  ;;  %v1344_v62 = vrot.slane %v8155_v0, 5  ;;  %v6361_v36 = vrot.slane %v8148_v51, 9 }
  0xac   : > { %v6373_v46 = vcombine.low %v1325_v25, %v1328_v43  ;;  %v1339_v3 = vrot.slane %v1337_v38, 4  ;;  %v1350_v25 = vrot.slane %v11588_v56, 5  ;;  %v6362_v43 = vrot.slane %v11590_v9, 9 }
  0xad   : > { %v1331_v2 = vsel %vm8453_vm10, %v1329_v14, %v1330_v49  ;;  %v1357_v49 = vrot.slane %v8301_v12, 5  ;;  %v6429_v31 = vrot.slane %v7843_v16, 10  ;;  %vm2887_vm0 = vcmask 1046528  }
  0xaf   : > { %6388 = vmatmul.mubr.msk.bf16.gmra.mxu0 %vm857_vm2, %v6371_v30 }
  0xb0   : > { %6422 = vmatmul.mubr.msk.bf16.gmra.mxu1 %vm857_vm2, %v11599_v41  ;;  %1545 = vmatprep.mubr.bf16.mxu0 %v11530_v40  ;;  %v1341_v41 = vsel %vm8453_vm10, %v1339_v3, %v1340_v58  ;;  %v11601_v58 = vmov 0 }
  0xb1   : > { %2020 = vmatprep.mubr.bf16.mxu1 %v11530_v40  ;;  %v11602_v58 = vsel %vm8725_vm13, 4294967295, %v11601_v58 }
  0xb2   : > { %11603 = vst [vmem:[#allocation11_spill] sm:$0xff] %v11602_v58 }
  0xb7   : > { %6389 = vmatmul.mubr.msk.bf16.gmra.mxu0 %vm857_vm2, %v6372_v59  ;;  %v1345_v59 = vsel %vm8453_vm10, %v6361_v36, %v1344_v62  ;;  %v2140_v36 = vrot.slane %v7856_v23, 6  ;;  %v2147_v23 = vrot.slane %v7921_v10, 6 }
  0xb8   : > { %6423 = vmatmul.mubr.msk.bf16.gmra.mxu1 %vm857_vm2, %v8501_v35  ;;  %1555 = vmatprep.mubr.bf16.mxu0 %v11530_v40  ;;  %v1334_v35 = vrot.slane %v8129_v57, 5 }
  0xb9   : > { %2030 = vmatprep.mubr.bf16.mxu1 %v11530_v40 }
  0xba   : > { %v1335_v21 = vsel %vm8453_vm10, %v6360_v24, %v1334_v35  ;;  %v1336_v30 = vrot.slane %v1334_v35, 4 }
  0xbb   : > { %v6374_v33 = vcombine.low %v1331_v2, %v1335_v21  ;;  %v1359_v2 = vrot.slane %v1357_v49, 4  ;;  %v1360_v21 = vrot.slane %v8321_v54, 5 }
  0xbc   : > { %v1338_v28 = vsel %vm8453_vm10, %v1336_v30, %v1337_v38 }
  0xbd   : > { %v6375_v48 = vcombine.low %v1338_v28, %v1341_v41  ;;  %v1361_v38 = vsel %vm8453_vm10, %v1359_v2, %v1360_v21 }
  0xbf   : > { %6390 = vmatmul.mubr.msk.bf16.gmra.mxu0 %vm857_vm2, %v6373_v46 }
  0xc0   : > { %6424 = vmatmul.mubr.msk.bf16.gmra.mxu1 %vm857_vm2, %v8532_v32  ;;  %1565 = vmatprep.mubr.bf16.mxu0 %v11530_v40  ;;  %v11600_v32 = vcombine.low %v8536_v27, %v8560_v7  ;;  %v1346_v27 = vrot.slane %v1344_v62, 4  ;;  %v1347_v7 = vrot.slane %v8197_v5, 5 }
  0xc1   : > { %2040 = vmatprep.mubr.bf16.mxu1 %v11530_v40 }
  0xc2   : > { %v1348_v39 = vsel %vm8453_vm10, %v1346_v27, %v1347_v7  ;;  %v1349_v50 = vrot.slane %v1347_v7, 4  ;;  %v11604_v27 = vld [vmem:[#allocation6_spill] sm:$0xff] }
  0xc3   : > { %v6376_v42 = vcombine.low %v1345_v59, %v1348_v39  ;;  %v6430_v7 = vrot.slane %v11604_v27, 10  ;;  %v11605_v59 = vld [vmem:[#allocation7_spill] sm:$0xff]  ;;  %v6431_v27 = vrot.slane %v7939_v26, 10 }
  0xc4   : > { %v1351_v46 = vsel %vm8453_vm10, %v1349_v50, %v1350_v25  ;;  %v2144_v39 = vrot.slane %v11605_v59, 6  ;;  %v2157_v59 = vrot.slane %v7964_v45, 6 }
  0xc7   : > { %6391 = vmatmul.mubr.msk.bf16.gmra.mxu0 %vm857_vm2, %v6374_v33  ;;  %v2134_v33 = vrot.slane %v7845_v17, 6 }
  0xc8   : > { %6425 = vmatmul.mubr.msk.bf16.gmra.mxu1 %vm857_vm2, %v11600_v32  ;;  %1575 = vmatprep.mubr.bf16.mxu0 %v11530_v40 }
  0xc9   : > { %2050 = vmatprep.mubr.bf16.mxu1 %v11530_v40  ;;  %v2136_v6 = vrot.slane %v2134_v33, 4  ;;  %v2135_v17 = vsel %vm8725_vm13, %v6429_v31, %v2134_v33  ;;  %v2150_v33 = vrot.slane %v7923_v11, 6 }
  0xcf   : > { %6392 = vmatmul.mubr.msk.bf16.gmra.mxu0 %vm857_vm2, %v6375_v48 }
  0xd0   : > { %6426 = vmatmul.mubr.msk.bf16.gmra.mxu1 %vm857_vm2, %v8581_v63  ;;  %1585 = vmatprep.mubr.bf16.mxu0 %v11530_v40  ;;  %v1354_v63 = vrot.slane %v8246_v19, 5 }
  0xd1   : > { %2060 = vmatprep.mubr.bf16.mxu1 %v11530_v40 }
  0xd2   : > { %v1355_v14 = vsel %vm8453_vm10, %v6362_v43, %v1354_v63  ;;  %v1356_v35 = vrot.slane %v1354_v63, 4  ;;  %v2145_v63 = vsel %vm8725_vm13, %v6430_v7, %v2144_v39 }
  0xd3   : > { %v6377_v24 = vcombine.low %v1351_v46, %v1355_v14 }
  0xd7   : > { %6393 = vmatmul.mubr.msk.bf16.gmra.mxu0 %vm857_vm2, %v6376_v42 }
  0xd8   : > { %6427 = vmatmul.mubr.msk.bf16.gmra.mxu1 %vm857_vm2, %v8611_v47  ;;  %1595 = vmatprep.mubr.bf16.mxu0 %v11530_v40  ;;  %v1358_v47 = vsel %vm8453_vm10, %v1356_v35, %v1357_v49 }
  0xd9   : > { %2070 = vmatprep.mubr.bf16.mxu1 %v11530_v40  ;;  %v6378_v30 = vcombine.low %v1358_v47, %v1361_v38  ;;  %v2146_v47 = vrot.slane %v2144_v39, 4  ;;  %v2149_v38 = vrot.slane %v2147_v23, 4 }
  0xdf   : > { %6394 = vmatmul.mubr.msk.bf16.gmra.mxu0 %vm857_vm2, %v6377_v24 }
  0xe0   : > { %6428 = vmatmul.mubr.msk.bf16.gmra.mxu1 %vm857_vm2, %v6411_v22  ;;  %1605 = vmatprep.mubr.bf16.mxu0 %v11530_v40  ;;  %v2137_v22 = vrot.slane %v7847_v18, 6 }
  0xe2   : > { %v2138_v28 = vsel %vm8725_vm13, %v2136_v6, %v2137_v22  ;;  %v2139_v48 = vrot.slane %v2137_v22, 4  ;;  %v2148_v22 = vsel %vm8725_vm13, %v2146_v47, %v2147_v23  ;;  %v2160_v47 = vrot.slane %v11598_v60, 6 }
  0xe3   : > { %v6441_v18 = vcombine.low %v2135_v17, %v2138_v28  ;;  %v2154_v17 = vrot.slane %v7952_v34, 6 }
  0xe4   : > { %v1160_v3 = vpop.f32.mrf.mxu1  ;;  %v2141_v43 = vsel %vm8725_vm13, %v2139_v48, %v2140_v36 }
  0xe5   : > { %v6442_v2 = vcombine.low %v2141_v43, %v2145_v63  ;;  %v2156_v7 = vrot.slane %v2154_v17, 4  ;;  %v2155_v63 = vsel %vm8725_vm13, %v6431_v27, %v2154_v17 }
  0xe6   : > { %v1162_v32 = vpop.f32.mrf.mxu1 }
  0xe7   : > { %6395 = vmatmul.mubr.msk.bf16.gmra.mxu0 %vm857_vm2, %v6378_v30  ;;  %v2158_v26 = vsel %vm8725_vm13, %v2156_v7, %v2157_v59 }
  0xe8   : > { %2345 = vmatprep.mubr.bf16.mxu0 %v11530_v40  ;;  %v1164_v16 = vpop.f32.mrf.mxu1 }
  0xea   : > { %v8735_v41 = vpop.f32.mrf.mxu1 }
  0xec   : > { %v1170_v62 = vpop.f32.mrf.mxu1 }
  0xee   : > { %v1172_v42 = vpop.f32.mrf.mxu1 }
  0xef   : > { %v935_v50 = vpop.f32.mrf.mxu0  ;;  %6458 = vmatmul.mubr.msk.bf16.vlgmr.msra.gmra.mxu0 %vm857_vm2, %v6441_v18 }
  0xf0   : > { %v8741_v25 = vadd.f32 %v1160_v3, %v935_v50  ;;  %2355 = vmatprep.mubr.bf16.mxu0 %v11530_v40  ;;  %v1174_v46 = vpop.f32.mrf.mxu1 }
  0xf1   : > { %v937_v14 = vpop.f32.mrf.mxu0 }
  0xf2   : > { %v8749_v49 = vadd.f32 %v1162_v32, %v937_v14  ;;  %v8751_v24 = vpop.f32.mrf.mxu1  ;;  %v2151_v32 = vsel %vm8725_vm13, %v2149_v38, %v2150_v33  ;;  %v2159_v33 = vrot.slane %v2157_v59, 4 }
  0xf3   : > { %v939_v35 = vpop.f32.mrf.mxu0  ;;  %v6443_v48 = vcombine.low %v2148_v22, %v2151_v32 }
  0xf4   : > { %v8753_v21 = vadd.f32 %v1164_v16, %v939_v35  ;;  %v1180_v3 = vpop.f32.mrf.mxu1  ;;  %v6444_v35 = vcombine.low %v2155_v63, %v2158_v26  ;;  %v2161_v60 = vsel %vm8725_vm13, %v2159_v33, %v2160_v47  ;;  %v2170_v26 = vrot.slane %v8045_v29, 6 }
  0xf5   : > { %v8756_v30 = vpop.f32.mrf.mxu0  ;;  %v2174_v33 = vrot.slane %v8061_v8, 6 }
  0xf6   : > { %v1182_v10 = vpop.f32.mrf.mxu1 }
  0xf7   : > { %v945_v31 = vpop.f32.mrf.mxu0  ;;  %6459 = vmatmul.mubr.msk.bf16.gmra.mxu0 %vm857_vm2, %v6442_v2 }
  0xf8   : > { %v8759_v6 = vadd.f32 %v1170_v62, %v945_v31  ;;  %2365 = vmatprep.mubr.bf16.mxu0 %v11530_v40  ;;  %v1184_v28 = vpop.f32.mrf.mxu1  ;;  %v2164_v31 = vrot.slane %v8010_v1, 6 }
  0xf9   : > { %v947_v11 = vpop.f32.mrf.mxu0 }
  0xfa   : > { %v8767_v16 = vadd.f32 %v1172_v42, %v947_v11  ;;  %v8769_v36 = vpop.f32.mrf.mxu1 }
  0xfb   : > { %v949_v18 = vpop.f32.mrf.mxu0  ;;  %11606 = vst [vmem:[#allocation10_spill] sm:$0xff] %v8769_v36 }
  0xfc   : > { %v8771_v62 = vadd.f32 %v1174_v46, %v949_v18  ;;  %v1190_v50 = vpop.f32.mrf.mxu1 }
  0xfd   : > { %v8775_v39 = vpop.f32.mrf.mxu0 }
  0xfe   : > { %v1192_v34 = vpop.f32.mrf.mxu1 }
  0xff   : > { %v955_v43 = vpop.f32.mrf.mxu0  ;;  %6460 = vmatmul.mubr.msk.bf16.gmra.mxu0 %vm857_vm2, %v6443_v48 }
 0x100   : > { %v8778_v42 = vadd.f32 %v1180_v3, %v955_v43  ;;  %2375 = vmatprep.mubr.bf16.mxu0 %v11530_v40  ;;  %v1194_v23 = vpop.f32.mrf.mxu1  ;;  %v6432_v3 = vrot.slane %v7997_v13, 10  ;;  %v2167_v13 = vrot.slane %v8020_v44, 6  ;;  %v2166_v43 = vrot.slane %v2164_v31, 4 }
 0x101   : > { %v957_v46 = vpop.f32.mrf.mxu0 }
 0x102   : > { %v8785_v45 = vadd.f32 %v1182_v10, %v957_v46  ;;  %v8787_v2 = vpop.f32.mrf.mxu1  ;;  %v2169_v63 = vrot.slane %v2167_v13, 4 }
 0x103   : > { %v959_v14 = vpop.f32.mrf.mxu0  ;;  %11607 = vst [vmem:[#allocation9_spill] sm:$0xff] %v8787_v2  ;;  %v2190_v2 = vrot.slane %v8176_v53, 6 }
 0x104   : > { %v8790_v38 = vadd.f32 %v1184_v28, %v959_v14  ;;  %v1200_v32 = vpop.f32.mrf.mxu1  ;;  %v2165_v28 = vsel %vm8725_vm13, %v6432_v3, %v2164_v31 }
 0x105   : > { %v8794_v22 = vpop.f32.mrf.mxu0  ;;  %v6445_v7 = vcombine.low %v2161_v60, %v2165_v28 }
 0x106   : > { %11608 = vst [vmem:[#allocation6_spill] sm:$0xff] %v8794_v22  ;;  %v1202_v10 = vpop.f32.mrf.mxu1 }
 0x107   : > { %v965_v17 = vpop.f32.mrf.mxu0  ;;  %6461 = vmatmul.mubr.msk.bf16.gmra.mxu0 %vm857_vm2, %v6444_v35 }
 0x108   : > { %v8797_v11 = vadd.f32 %v1190_v50, %v965_v17  ;;  %2385 = vmatprep.mubr.bf16.mxu0 %v11530_v40  ;;  %v1204_v18 = vpop.f32.mrf.mxu1 }
 0x109   : > { %v967_v1 = vpop.f32.mrf.mxu0 }
 0x10a   : > { %v8805_v48 = vadd.f32 %v1192_v34, %v967_v1  ;;  %v8807_v59 = vpop.f32.mrf.mxu1  ;;  %v2168_v34 = vsel %vm8725_vm13, %v2166_v43, %v2167_v13  ;;  %v6433_v1 = vrot.slane %v8055_v20, 10  ;;  %v2177_v13 = vrot.slane %v8084_v37, 6 }
 0x10b   : > { %v969_v27 = vpop.f32.mrf.mxu0  ;;  %11609 = vst [vmem:[#allocation7_spill] sm:$0xff] %v8807_v59 }
 0x10c   : > { %v8809_v50 = vadd.f32 %v1194_v23, %v969_v27  ;;  %v1210_v14 = vpop.f32.mrf.mxu1  ;;  %v2171_v23 = vsel %vm8725_vm13, %v2169_v63, %v2170_v26  ;;  %v2176_v27 = vrot.slane %v2174_v33, 4 }
 0x10d   : > { %v8812_v46 = vpop.f32.mrf.mxu0  ;;  %v6446_v60 = vcombine.low %v2168_v34, %v2171_v23 }
 0x10e   : > { %11610 = vst [vmem:[#allocation14_spill] sm:$0xff] %v8812_v46  ;;  %v1212_v44 = vpop.f32.mrf.mxu1  ;;  %v2178_v20 = vsel %vm8725_vm13, %v2176_v27, %v2177_v13 }
 0x10f   : > { %v975_v35 = vpop.f32.mrf.mxu0  ;;  %6462 = vmatmul.mubr.msk.bf16.gmra.mxu0 %vm857_vm2, %v6445_v7 }
 0x110   : > { %v8815_v47 = vadd.f32 %v1200_v32, %v975_v35  ;;  %2395 = vmatprep.mubr.bf16.mxu0 %v11530_v40  ;;  %v1214_v3 = vpop.f32.mrf.mxu1 }
 0x111   : > { %v977_v29 = vpop.f32.mrf.mxu0 }
 0x112   : > { %v8823_v31 = vadd.f32 %v1202_v10, %v977_v29  ;;  %v8825_v28 = vpop.f32.mrf.mxu1 }
 0x113   : > { %v979_v17 = vpop.f32.mrf.mxu0  ;;  %11611 = vst [vmem:[#allocation15_spill] sm:$0xff] %v8825_v28 }
 0x114   : > { %v8827_v32 = vadd.f32 %v1204_v18, %v979_v17  ;;  %v1220_v43 = vpop.f32.mrf.mxu1  ;;  %v2175_v18 = vsel %vm8725_vm13, %v6433_v1, %v2174_v33  ;;  %v2180_v17 = vrot.slane %v8143_v52, 6  ;;  %v2184_v33 = vrot.slane %v8129_v57, 6 }
 0x115   : > { %v8831_v7 = vpop.f32.mrf.mxu0  ;;  %v6447_v23 = vcombine.low %v2175_v18, %v2178_v20 }
 0x116   : > { %11612 = vst [vmem:[#allocation16_spill] sm:$0xff] %v8831_v7  ;;  %v1222_v8 = vpop.f32.mrf.mxu1 }
 0x117   : > { %v985_v63 = vpop.f32.mrf.mxu0  ;;  %6463 = vmatmul.mubr.msk.bf16.gmra.mxu0 %vm857_vm2, %v6446_v60  ;;  %v2179_v60 = vrot.slane %v2177_v13, 4 }
 0x118   : > { %v8834_v10 = vadd.f32 %v1210_v14, %v985_v63  ;;  %2405 = vmatprep.mubr.bf16.mxu0 %v11530_v40  ;;  %v1224_v35 = vpop.f32.mrf.mxu1  ;;  %v6434_v63 = vrot.slane %v8106_v4, 10  ;;  %v2187_v4 = vrot.slane %v8113_v15, 6 }
 0x119   : > { %v987_v26 = vpop.f32.mrf.mxu0  ;;  %v2181_v52 = vsel %vm8725_vm13, %v2179_v60, %v2180_v17 }
 0x11a   : > { %v8841_v37 = vadd.f32 %v1212_v44, %v987_v26  ;;  %v8843_v29 = vpop.f32.mrf.mxu1  ;;  %v2189_v61 = vrot.slane %v2187_v4, 4 }
 0x11b   : > { %v989_v34 = vpop.f32.mrf.mxu0 }
 0x11c   : > { %v8846_v14 = vadd.f32 %v1214_v3, %v989_v34  ;;  %v1230_v27 = vpop.f32.mrf.mxu1  ;;  %v2185_v3 = vsel %vm8725_vm13, %v6434_v63, %v2184_v33 }
 0x11d   : > { %v8850_v1 = vpop.f32.mrf.mxu0  ;;  %v6448_v34 = vcombine.low %v2181_v52, %v2185_v3 }
 0x11e   : > { %v1232_v44 = vpop.f32.mrf.mxu1 }
 0x11f   : > { %v995_v55 = vpop.f32.mrf.mxu0  ;;  %6464 = vmatmul.mubr.msk.bf16.gmra.mxu0 %vm857_vm2, %v6447_v23 }
 0x120   : > { %v8853_v26 = vadd.f32 %v1220_v43, %v995_v55  ;;  %2415 = vmatprep.mubr.bf16.mxu0 %v11530_v40  ;;  %v1234_v13 = vpop.f32.mrf.mxu1  ;;  %v2186_v43 = vrot.slane %v2184_v33, 4  ;;  %v2194_v33 = vrot.slane %v8155_v0, 6 }
 0x121   : > { %v997_v57 = vpop.f32.mrf.mxu0 }
 0x122   : > { %v8861_v18 = vadd.f32 %v1222_v8, %v997_v57  ;;  %v8863_v23 = vpop.f32.mrf.mxu1  ;;  %v2188_v8 = vsel %vm8725_vm13, %v2186_v43, %v2187_v4  ;;  %v2196_v59 = vrot.slane %v2194_v33, 4  ;;  %v2197_v4 = vrot.slane %v8197_v5, 6 }
 0x123   : > { %v999_v20 = vpop.f32.mrf.mxu0 }
 0x124   : > { %v8865_v55 = vadd.f32 %v1224_v35, %v999_v20  ;;  %v1240_v60 = vpop.f32.mrf.mxu1  ;;  %v2191_v35 = vsel %vm8725_vm13, %v2189_v61, %v2190_v2 }
 0x125   : > { %v8868_v17 = vpop.f32.mrf.mxu0  ;;  %v6449_v20 = vcombine.low %v2188_v8, %v2191_v35 }
 0x126   : > { %v1242_v15 = vpop.f32.mrf.mxu1 }
 0x127   : > { %v1005_v63 = vpop.f32.mrf.mxu0  ;;  %6465 = vmatmul.mubr.msk.bf16.gmra.mxu0 %vm857_vm2, %v6448_v34 }
 0x128   : > { %v8871_v46 = vadd.f32 %v1230_v27, %v1005_v63  ;;  %2425 = vmatprep.mubr.bf16.mxu0 %v11530_v40  ;;  %v1244_v52 = vpop.f32.mrf.mxu1  ;;  %v6435_v63 = vrot.slane %v8148_v51, 10  ;;  %v2198_v51 = vsel %vm8725_vm13, %v2196_v59, %v2197_v4 }
 0x129   : > { %v1007_v53 = vpop.f32.mrf.mxu0 }
 0x12a   : > { %v8879_v3 = vadd.f32 %v1232_v44, %v1007_v53  ;;  %v8881_v34 = vpop.f32.mrf.mxu1 }
 0x12b   : > { %v1009_v57 = vpop.f32.mrf.mxu0  ;;  %11613 = vst [vmem:[#allocation17_spill] sm:$0xff] %v8881_v34 }
 0x12c   : > { %v8883_v27 = vadd.f32 %v1234_v13, %v1009_v57  ;;  %v1250_v61 = vpop.f32.mrf.mxu1  ;;  %v2195_v13 = vsel %vm8725_vm13, %v6435_v63, %v2194_v33  ;;  %v2204_v33 = vrot.slane %v8246_v19, 6 }
 0x12d   : > { %v8887_v43 = vpop.f32.mrf.mxu0  ;;  %v6450_v57 = vcombine.low %v2195_v13, %v2198_v51 }
 0x12e   : > { %v1252_v0 = vpop.f32.mrf.mxu1 }
 0x12f   : > { %v1015_v2 = vpop.f32.mrf.mxu0  ;;  %6466 = vmatmul.mubr.msk.bf16.gmra.mxu0 %vm857_vm2, %v6449_v20  ;;  %v2199_v20 = vrot.slane %v2197_v4, 4 }
 0x130   : > { %v8890_v44 = vadd.f32 %v1240_v60, %v1015_v2  ;;  %2435 = vmatprep.mubr.bf16.mxu0 %v11530_v40  ;;  %v1254_v35 = vpop.f32.mrf.mxu1  ;;  %v2200_v60 = vrot.slane %v11588_v56, 6  ;;  %v6436_v2 = vrot.slane %v11590_v9, 10  ;;  %v2207_v9 = vrot.slane %v8301_v12, 6 }
 0x131   : > { %v1017_v8 = vpop.f32.mrf.mxu0 }
 0x132   : > { %v8897_v5 = vadd.f32 %v1242_v15, %v1017_v8  ;;  %v8899_v34 = vpop.f32.mrf.mxu1  ;;  %v2205_v56 = vsel %vm8725_vm13, %v6436_v2, %v2204_v33 }
 0x133   : > { %v1019_v53 = vpop.f32.mrf.mxu0  ;;  %11615 = vst [vmem:[#allocation19_spill] sm:$0xff] %v8899_v34  ;;  %v2209_v34 = vrot.slane %v2207_v9, 4 }
 0x134   : > { %11614 = vst [vmem:[#allocation18_spill] sm:$0xff] %v8897_v5  ;;  %v8901_v7 = vadd.f32 %v1244_v52, %v1019_v53  ;;  %v1260_v59 = vpop.f32.mrf.mxu1  ;;  %v2201_v52 = vsel %vm8725_vm13, %v2199_v20, %v2200_v60 }
 0x135   : > { %v8906_v63 = vpop.f32.mrf.mxu0  ;;  %v6451_v53 = vcombine.low %v2201_v52, %v2205_v56 }
 0x136   : > { %11616 = vst [vmem:[#allocation20_spill] sm:$0xff] %v8906_v63  ;;  %v1262_v15 = vpop.f32.mrf.mxu1  ;;  %v2210_v63 = vrot.slane %v8321_v54, 6 }
 0x137   : > { %v1025_v36 = vpop.f32.mrf.mxu0  ;;  %6467 = vmatmul.mubr.msk.bf16.gmra.mxu0 %vm857_vm2, %v6450_v57 }
 0x138   : > { %v8909_v8 = vadd.f32 %v1250_v61, %v1025_v36  ;;  %2445 = vmatprep.mubr.bf16.mxu0 %v11530_v40  ;;  %v1264_v4 = vpop.f32.mrf.mxu1  ;;  %v2206_v61 = vrot.slane %v2204_v33, 4 }
 0x139   : > { %v1027_v19 = vpop.f32.mrf.mxu0 }
 0x13a   : > { %v8917_v13 = vadd.f32 %v1252_v0, %v1027_v19  ;;  %v8919_v57 = vpop.f32.mrf.mxu1  ;;  %v2208_v0 = vsel %vm8725_vm13, %v2206_v61, %v2207_v9 }
 0x13b   : > { %v1029_v51 = vpop.f32.mrf.mxu0  ;;  %11617 = vst [vmem:[#allocation21_spill] sm:$0xff] %v8919_v57 }
 0x13c   : > { %v8921_v36 = vadd.f32 %v1254_v35, %v1029_v51  ;;  %v1270_v60 = vpop.f32.mrf.mxu1  ;;  %v2211_v35 = vsel %vm8725_vm13, %v2209_v34, %v2210_v63 }
 0x13d   : > { %v8924_v20 = vpop.f32.mrf.mxu0  ;;  %v6452_v19 = vcombine.low %v2208_v0, %v2211_v35 }
 0x13e   : > { %11618 = vst [vmem:[#allocation22_spill] sm:$0xff] %v8924_v20  ;;  %v1272_v12 = vpop.f32.mrf.mxu1 }
 0x13f   : > { %v1035_v2 = vpop.f32.mrf.mxu0  ;;  %6468 = vmatmul.mubr.msk.bf16.gmra.mxu0 %vm857_vm2, %v6451_v53 }
 0x140   : > { %v8927_v22 = vadd.f32 %v1260_v59, %v1035_v2  ;;  %2455 = vmatprep.mubr.bf16.mxu0 %v11530_v40  ;;  %v1274_v52 = vpop.f32.mrf.mxu1 }
 0x141   : > { %v1037_v33 = vpop.f32.mrf.mxu0 }
 0x142   : > { %v8934_v54 = vadd.f32 %v1262_v15, %v1037_v33  ;;  %v8936_v51 = vpop.f32.mrf.mxu1 }
 0x143   : > { %v1039_v56 = vpop.f32.mrf.mxu0  ;;  %11619 = vst [vmem:[#allocation23_spill] sm:$0xff] %v8936_v51 }
 0x144   : > { %v8938_v53 = vadd.f32 %v1264_v4, %v1039_v56  ;;  %v1962_v2 = vpop.f32.mrf.mxu1 }
 0x145   : > { %v8940_v59 = vpop.f32.mrf.mxu0 }
 0x146   : > { %11620 = vst [vmem:[#allocation24_spill] sm:$0xff] %v8940_v59  ;;  %v1964_v9 = vpop.f32.mrf.mxu1 }
 0x147   : > { %v1045_v40 = vpop.f32.mrf.mxu0  ;;  %6469 = vmatmul.mubr.msk.bf16.gmra.mxu0 %vm857_vm2, %v6452_v19 }
 0x148   : > { %v8943_v61 = vadd.f32 %v1270_v60, %v1045_v40  ;;  %v1966_v63 = vpop.f32.mrf.mxu1 }
 0x149   : > { %v1047_v34 = vpop.f32.mrf.mxu0 }
 0x14a   : > { %v8945_v58 = vadd.f32 %v1272_v12, %v1047_v34  ;;  %v8947_v33 = vpop.f32.mrf.mxu1 }
 0x14b   : > { %v1049_v15 = vpop.f32.mrf.mxu0 }
 0x14c   : > { %v8949_v0 = vadd.f32 %v1274_v52, %v1049_v15  ;;  %v1972_v35 = vpop.f32.mrf.mxu1 }
 0x14d   : > { %v8951_v4 = vpop.f32.mrf.mxu0 }
 0x14e   : > { %11621 = vst [vmem:[#allocation25_spill] sm:$0xff] %v8951_v4  ;;  %v1974_v19 = vpop.f32.mrf.mxu1 }
 0x14f   : > { %v1497_v56 = vpop.f32.mrf.mxu0 }
 0x150   : > { %v1616_v20 = vadd.f32 %v1497_v56, %v8741_v25  ;;  %v1976_v52 = vpop.f32.mrf.mxu1 }
 0x151   : > { %v1499_v51 = vpop.f32.mrf.mxu0 }
 0x152   : > { %v1617_v60 = vadd.f32 %v1499_v51, %v8749_v49  ;;  %v8955_v40 = vadd.f32 %v1962_v2, %v1616_v20  ;;  %v8965_v56 = vpop.f32.mrf.mxu1 }
 0x153   : > { %v1501_v57 = vpop.f32.mrf.mxu0 }
 0x154   : > { %v1618_v12 = vadd.f32 %v1501_v57, %v8753_v21  ;;  %v8958_v34 = vadd.f32 %v1964_v9, %v1617_v60 }
 0x155   : > { %v8960_v59 = vpop.f32.mrf.mxu0 }
 0x156   : > { %v8962_v15 = vadd.f32 %v1966_v63, %v1618_v12 }
 0x157   : > { %v1507_v4 = vpop.f32.mrf.mxu0 }
 0x158   : > { %v1620_v5 = vadd.f32 %v1507_v4, %v8759_v6  ;;  %v1982_v9 = vpop.f32.mrf.mxu1 }
 0x159   : > { %v1509_v25 = vpop.f32.mrf.mxu0 }
 0x15a   : > { %v1621_v49 = vadd.f32 %v1509_v25, %v8767_v16  ;;  %v8968_v20 = vadd.f32 %v1972_v35, %v1620_v5  ;;  %v1984_v12 = vpop.f32.mrf.mxu1 }
 0x15b   : > { %v1511_v51 = vpop.f32.mrf.mxu0 }
 0x15c   : > { %v1622_v21 = vadd.f32 %v1511_v51, %v8771_v62  ;;  %v8971_v57 = vadd.f32 %v1974_v19, %v1621_v49 }
 0x15d   : > { %v8973_v2 = vpop.f32.mrf.mxu0 }
 0x15e   : > { %v8975_v63 = vadd.f32 %v1976_v52, %v1622_v21 }
 0x15f   : > { %v1517_v60 = vpop.f32.mrf.mxu0 }
 0x160   : > { %v1624_v6 = vadd.f32 %v1517_v60, %v8778_v42 }
 0x161   : > { %v1519_v4 = vpop.f32.mrf.mxu0 }
 0x162   : > { %v1625_v28 = vadd.f32 %v1519_v4, %v8785_v45  ;;  %v8979_v16 = vadd.f32 %v1982_v9, %v1624_v6 }
 0x163   : > { %v1521_v5 = vpop.f32.mrf.mxu0 }
 0x164   : > { %v8982_v35 = vadd.f32 %v1521_v5, %v8790_v38  ;;  %v8984_v62 = vadd.f32 %v1984_v12, %v1625_v28 }
 0x165   : > { %v8986_v19 = vpop.f32.mrf.mxu0 }
 0x166   : > { %11622 = vst [vmem:[#allocation26_spill] sm:$0xff] %v8982_v35 }
 0x167   : > { %v1527_v25 = vpop.f32.mrf.mxu0 }
 0x168   : > { %v8989_v52 = vadd.f32 %v1527_v25, %v8797_v11 }
 0x169   : > { %v1529_v49 = vpop.f32.mrf.mxu0 }
 0x16a   : > { %11623 = vst [vmem:[#allocation27_spill] sm:$0xff] %v8989_v52  ;;  %v8992_v42 = vadd.f32 %v1529_v49, %v8805_v48  ;;  %v9008_v48 = vpop.f32.mrf.mxu1 }
 0x16b   : > { %v1531_v51 = vpop.f32.mrf.mxu0  ;;  %11626 = vst [vmem:[#allocation30_spill] sm:$0xff] %v9008_v48 }
 0x16c   : > { %11624 = vst [vmem:[#allocation28_spill] sm:$0xff] %v8992_v42  ;;  %v8995_v45 = vadd.f32 %v1531_v51, %v8809_v50  ;;  %v9015_v5 = vpop.f32.mrf.mxu1 }
 0x16d   : > { %v8997_v21 = vpop.f32.mrf.mxu0  ;;  %11627 = vst [vmem:[#allocation31_spill] sm:$0xff] %v9015_v5 }
 0x16f   : > { %v1537_v38 = vpop.f32.mrf.mxu0 }
 0x170   : > { %v9000_v28 = vadd.f32 %v1537_v38, %v8815_v47 }
 0x171   : > { %v1539_v9 = vpop.f32.mrf.mxu0 }
 0x172   : > { %11625 = vst [vmem:[#allocation29_spill] sm:$0xff] %v9000_v28  ;;  %v9003_v60 = vadd.f32 %v1539_v9, %v8823_v31 }
 0x173   : > { %v1541_v11 = vpop.f32.mrf.mxu0 }
 0x174   : > { %v9006_v6 = vadd.f32 %v1541_v11, %v8827_v32  ;;  %v9023_v32 = vpop.f32.mrf.mxu1 }
 0x175   : > { %v9010_v4 = vpop.f32.mrf.mxu0  ;;  %11628 = vst [vmem:[#allocation32_spill] sm:$0xff] %v9023_v32 }
 0x177   : > { %v1547_v50 = vpop.f32.mrf.mxu0 }
 0x178   : > { %v9013_v12 = vadd.f32 %v1547_v50, %v8834_v10  ;;  %v9030_v10 = vpop.f32.mrf.mxu1 }
 0x179   : > { %v1549_v47 = vpop.f32.mrf.mxu0  ;;  %11629 = vst [vmem:[#allocation33_spill] sm:$0xff] %v9030_v10 }
 0x17a   : > { %v9018_v25 = vadd.f32 %v1549_v47, %v8841_v37 }
 0x17b   : > { %v1551_v31 = vpop.f32.mrf.mxu0 }
 0x17c   : > { %v9021_v49 = vadd.f32 %v1551_v31, %v8846_v14  ;;  %v9038_v14 = vpop.f32.mrf.mxu1 }
 0x17d   : > { %v9025_v51 = vpop.f32.mrf.mxu0  ;;  %11630 = vst [vmem:[#allocation34_spill] sm:$0xff] %v9038_v14 }
 0x17f   : > { %v1557_v38 = vpop.f32.mrf.mxu0 }
 0x180   : > { %v9028_v9 = vadd.f32 %v1557_v38, %v8853_v26  ;;  %v9045_v26 = vpop.f32.mrf.mxu1 }
 0x181   : > { %v1559_v11 = vpop.f32.mrf.mxu0 }
 0x182   : > { %v9033_v50 = vadd.f32 %v1559_v11, %v8861_v18 }
 0x183   : > { %v1561_v37 = vpop.f32.mrf.mxu0 }
 0x184   : > { %v9036_v47 = vadd.f32 %v1561_v37, %v8865_v55  ;;  %v9053_v55 = vpop.f32.mrf.mxu1 }
 0x185   : > { %v9040_v31 = vpop.f32.mrf.mxu0  ;;  %11631 = vst [vmem:[#allocation35_spill] sm:$0xff] %v9053_v55 }
 0x187   : > { %v1567_v32 = vpop.f32.mrf.mxu0 }
 0x188   : > { %v9043_v52 = vadd.f32 %v1567_v32, %v8871_v46  ;;  %v9060_v46 = vpop.f32.mrf.mxu1 }
 0x189   : > { %v1569_v38 = vpop.f32.mrf.mxu0 }
 0x18a   : > { %v9048_v48 = vadd.f32 %v1569_v38, %v8879_v3  ;;  %v9067_v38 = vpop.f32.mrf.mxu1 }
 0x18b   : > { %v1571_v18 = vpop.f32.mrf.mxu0 }
 0x18c   : > { %v9051_v11 = vadd.f32 %v1571_v18, %v8883_v27  ;;  %v9074_v55 = vpop.f32.mrf.mxu1 }
 0x18d   : > { %v9055_v37 = vpop.f32.mrf.mxu0 }
 0x18f   : > { %v1577_v35 = vpop.f32.mrf.mxu0 }
 0x190   : > { %v9058_v10 = vadd.f32 %v1577_v35, %v8890_v44 }
 0x191   : > { %v9062_v32 = vpop.f32.mrf.mxu0 }
 0x193   : > { %v1581_v42 = vpop.f32.mrf.mxu0 }
 0x194   : > { %v9065_v3 = vadd.f32 %v1581_v42, %v8901_v7  ;;  %v9082_v7 = vpop.f32.mrf.mxu1 }
 0x195   : > { %v9069_v27 = vpop.f32.mrf.mxu0 }
 0x196   : > { %11632 = vst [vmem:[#allocation36_spill] sm:$0xff] %v9065_v3  ;;  %11633 = vst [vmem:[#allocation37_spill] sm:$0xff] %v9069_v27 }
 0x197   : > { %v1587_v18 = vpop.f32.mrf.mxu0 }
 0x198   : > { %v9072_v5 = vadd.f32 %v1587_v18, %v8909_v8  ;;  %v9089_v8 = vpop.f32.mrf.mxu1 }
 0x199   : > { %v1589_v44 = vpop.f32.mrf.mxu0 }
 0x19a   : > { %11634 = vst [vmem:[#allocation38_spill] sm:$0xff] %v9072_v5  ;;  %v9077_v35 = vadd.f32 %v1589_v44, %v8917_v13 }
 0x19b   : > { %v1591_v28 = vpop.f32.mrf.mxu0 }
 0x19c   : > { %11635 = vst [vmem:[#allocation39_spill] sm:$0xff] %v9077_v35  ;;  %v9080_v14 = vadd.f32 %v1591_v28, %v8921_v36  ;;  %v9097_v36 = vpop.f32.mrf.mxu1 }
 0x19d   : > { %v9084_v42 = vpop.f32.mrf.mxu0 }
 0x19e   : > { %11636 = vst [vmem:[#allocation40_spill] sm:$0xff] %v9080_v14  ;;  %11637 = vst [vmem:[#allocation41_spill] sm:$0xff] %v9084_v42 }
 0x19f   : > { %v1597_v3 = vpop.f32.mrf.mxu0 }
 0x1a0   : > { %v9087_v27 = vadd.f32 %v1597_v3, %v8927_v22  ;;  %v9104_v22 = vpop.f32.mrf.mxu1 }
 0x1a1   : > { %v1599_v18 = vpop.f32.mrf.mxu0 }
 0x1a2   : > { %11638 = vst [vmem:[#allocation42_spill] sm:$0xff] %v9087_v27  ;;  %v9092_v5 = vadd.f32 %v1599_v18, %v8934_v54 }
 0x1a3   : > { %v1601_v13 = vpop.f32.mrf.mxu0 }
 0x1a4   : > { %11639 = vst [vmem:[#allocation43_spill] sm:$0xff] %v9092_v5  ;;  %v9095_v44 = vadd.f32 %v1601_v13, %v8938_v53  ;;  %v9112_v53 = vpop.f32.mrf.mxu1  ;;  %v1167_v5 = vadd.f32 %v8735_v41, %v8756_v30  ;;  %v1177_v30 = vadd.f32 %v8751_v24, %v8775_v39 }
 0x1a5   : > { %v9099_v28 = vpop.f32.mrf.mxu0 }
 0x1a6   : > { %11640 = vst [vmem:[#allocation44_spill] sm:$0xff] %v9095_v44  ;;  %11641 = vst [vmem:[#allocation45_spill] sm:$0xff] %v9099_v28 }
 0x1a7   : > { %v1607_v35 = vpop.f32.mrf.mxu0 }
 0x1a8   : > { %v9102_v14 = vadd.f32 %v1607_v35, %v8943_v61  ;;  %v1619_v61 = vadd.f32 %v8960_v59, %v1167_v5  ;;  %v1623_v5 = vadd.f32 %v8973_v2, %v1177_v30 }
 0x1a9   : > { %v1609_v3 = vpop.f32.mrf.mxu0 }
 0x1aa   : > { %11642 = vst [vmem:[#allocation46_spill] sm:$0xff] %v9102_v14  ;;  %v9107_v27 = vadd.f32 %v1609_v3, %v8945_v58  ;;  %v9122_v14 = vpop.f32.mrf.mxu1 }
 0x1ab   : > { %v1611_v54 = vpop.f32.mrf.mxu0 }
 0x1ac   : > { %11643 = vst [vmem:[#allocation47_spill] sm:$0xff] %v9107_v27  ;;  %v9110_v18 = vadd.f32 %v1611_v54, %v8949_v0  ;;  %v2084_v54 = vadd.f32 %v8947_v33, %v1619_v61  ;;  %v9131_v42 = vpop.f32.mrf.mxu1  ;;  %v2088_v61 = vadd.f32 %v8965_v56, %v1623_v5 }
 0x1ad   : > { %v9114_v13 = vpop.f32.mrf.mxu0 }
 0x1ae   : > { %11644 = vst [vmem:[#allocation48_spill] sm:$0xff] %v9110_v18  ;;  %11645 = vst [vmem:[#allocation49_spill] sm:$0xff] %v9114_v13  ;;  %v2516_v13 = vlaneseq }
 0x1af   : > { %v2347_v44 = vpop.f32.mrf.mxu0 }
 0x1b0   : > { %v9120_v35 = vadd.f32 %v2347_v44, %v8955_v40  ;;  %v2028_v44 = vpop.f32.mrf.mxu1 }
 0x1b1   : > { %v2349_v58 = vpop.f32.mrf.mxu0 }
 0x1b2   : > { %11646 = vst [vmem:[#allocation50_spill] sm:$0xff] %v9120_v35  ;;  %v9125_v3 = vadd.f32 %v2349_v58, %v8958_v34  ;;  %v2032_v24 = vpop.f32.mrf.mxu1 }
 0x1b3   : > { %v2351_v0 = vpop.f32.mrf.mxu0 }
 0x1b4   : > { %11647 = vst [vmem:[#allocation51_spill] sm:$0xff] %v9125_v3  ;;  %v9129_v27 = vadd.f32 %v2351_v0, %v8962_v15 }
 0x1b5   : > { %v2353_v41 = vpop.f32.mrf.mxu0 }
 0x1b6   : > { %11648 = vst [vmem:[#allocation52_spill] sm:$0xff] %v9129_v27  ;;  %v9135_v59 = vadd.f32 %v2353_v41, %v2084_v54 }
 0x1b7   : > { %v2357_v40 = vpop.f32.mrf.mxu0 }
 0x1b8   : > { %11649 = vst [vmem:[#allocation53_spill] sm:$0xff] %v9135_v59  ;;  %v9139_v34 = vadd.f32 %v2357_v40, %v8968_v20  ;;  %v2034_v20 = vpop.f32.mrf.mxu1 }
 0x1b9   : > { %v2359_v58 = vpop.f32.mrf.mxu0 }
 0x1ba   : > { %11650 = vst [vmem:[#allocation54_spill] sm:$0xff] %v9139_v34  ;;  %v9142_v33 = vadd.f32 %v2359_v58, %v8971_v57  ;;  %v2036_v58 = vpop.f32.mrf.mxu1 }
 0x1bb   : > { %v2361_v15 = vpop.f32.mrf.mxu0 }
 0x1bc   : > { %11651 = vst [vmem:[#allocation55_spill] sm:$0xff] %v9142_v33  ;;  %v9146_v0 = vadd.f32 %v2361_v15, %v8975_v63  ;;  %v2038_v5 = vpop.f32.mrf.mxu1 }
 0x1bd   : > { %v2363_v39 = vpop.f32.mrf.mxu0 }
 0x1be   : > { %11652 = vst [vmem:[#allocation56_spill] sm:$0xff] %v9146_v0  ;;  %v9148_v54 = vadd.f32 %v2363_v39, %v2088_v61  ;;  %v2042_v39 = vpop.f32.mrf.mxu1 }
 0x1bf   : > { %v2367_v41 = vpop.f32.mrf.mxu0 }
 0x1c0   : > { %11653 = vst [vmem:[#allocation57_spill] sm:$0xff] %v9148_v54  ;;  %v9151_v2 = vadd.f32 %v2367_v41, %v8979_v16  ;;  %v2044_v35 = vpop.f32.mrf.mxu1 }
 0x1c1   : > { %v2369_v30 = vpop.f32.mrf.mxu0 }
 0x1c2   : > { %11654 = vst [vmem:[#allocation58_spill] sm:$0xff] %v9151_v2  ;;  %v9154_v40 = vadd.f32 %v2369_v30, %v8984_v62  ;;  %v9174_v3 = vpop.f32.mrf.mxu1 }
 0x1c3   : > { %v9156_v57 = vpop.f32.mrf.mxu0  ;;  %11664 = vst [vmem:[#allocation68_spill] sm:$0xff] %v9174_v3  ;;  %v9192_v3 = vshrl.u32 %v2516_v13, 7  ;;  %v2514_v13 = vld [vmem:[%s11427_s2] sm:$0x3] }
 0x1c4   : > { %11655 = vst [vmem:[#allocation59_spill] sm:$0xff] %v9154_v40  ;;  %11656 = vst [vmem:[#allocation60_spill] sm:$0xff] %v9156_v57  ;;  %v9180_v33 = vpop.f32.mrf.mxu1  ;;  %v1227_v57 = vadd.f32 %v8843_v29, %v8868_v17  ;;  %v2110_v29 = vadd.f32 %v2034_v20, %v9048_v48  ;;  %v11672_v20 = vld [vmem:[#allocation18_spill] sm:$0xff] }
 0x1c5   : > { %v9158_v56 = vpop.f32.mrf.mxu0  ;;  %11665 = vst [vmem:[#allocation69_spill] sm:$0xff] %v9180_v33  ;;  %11668 = vst [vmem:[#allocation72_spill] sm:$0xff] %v9192_v3 }
 0x1c6   : > { %11657 = vst [vmem:[#allocation61_spill] sm:$0xff] %v9158_v56  ;;  %v9186_v2 = vpop.f32.mrf.mxu1  ;;  %v1237_v56 = vadd.f32 %v8863_v23, %v8887_v43  ;;  %v11670_v23 = vld [vmem:[#allocation15_spill] sm:$0xff] }
 0x1c7   : > { %v9160_v63 = vpop.f32.mrf.mxu0  ;;  %11666 = vst [vmem:[#allocation70_spill] sm:$0xff] %v9186_v2  ;;  %v2109_v2 = vadd.f32 %v2032_v24, %v9043_v52  ;;  %v1217_v43 = vadd.f32 %v11670_v23, %v8850_v1  ;;  %v1649_v1 = vadd.f32 %v9062_v32, %v11672_v20 }
 0x1c8   : > { %11658 = vst [vmem:[#allocation62_spill] sm:$0xff] %v9160_v63  ;;  %v9190_v40 = vpop.f32.mrf.mxu1  ;;  %v1647_v17 = vadd.f32 %v9055_v37, %v1237_v56 }
 0x1c9   : > { %v9162_v15 = vpop.f32.mrf.mxu0  ;;  %11667 = vst [vmem:[#allocation71_spill] sm:$0xff] %v9190_v40  ;;  %v1643_v40 = vadd.f32 %v9040_v31, %v1227_v57  ;;  %v11671_v57 = vsub.s32 1, %v9192_v3  ;;  %v1639_v37 = vadd.f32 %v9025_v51, %v1217_v43  ;;  %v2107_v51 = vadd.f32 %v9131_v42, %v9036_v47 }
 0x1ca   : > { %11659 = vst [vmem:[#allocation63_spill] sm:$0xff] %v9162_v15  ;;  %v9196_v33 = vpop.f32.mrf.mxu1  ;;  %v2114_v43 = vadd.f32 %v2044_v35, %v1649_v1 }
 0x1cb   : > { %v9164_v61 = vpop.f32.mrf.mxu0  ;;  %11669 = vst [vmem:[#allocation73_spill] sm:$0xff] %v9196_v33 }
 0x1cc   : > { %11660 = vst [vmem:[#allocation64_spill] sm:$0xff] %v9164_v61  ;;  %v9211_v52 = vpop.f32.mrf.mxu1  ;;  %v2111_v61 = vadd.f32 %v2036_v58, %v9051_v11 }
 0x1cd   : > { %v9166_v16 = vpop.f32.mrf.mxu0 }
 0x1ce   : > { %11661 = vst [vmem:[#allocation65_spill] sm:$0xff] %v9166_v16  ;;  %v9220_v16 = vrot.slane %v2514_v13, %v11671_v57  ;;  %v11675_v57 = vld [vmem:[#allocation16_spill] sm:$0xff] }
 0x1cf   : > { %v9168_v41 = vpop.f32.mrf.mxu0 }
 0x1d0   : > { %11662 = vst [vmem:[#allocation66_spill] sm:$0xff] %v9168_v41  ;;  %v11499_v41 = vsub.s32 0, %v9192_v3  ;;  %v11674_v3 = vld [vmem:[#allocation10_spill] sm:$0xff] }
 0x1d1   : > { %v9170_v62 = vpop.f32.mrf.mxu0 }
 0x1d2   : > { %11663 = vst [vmem:[#allocation67_spill] sm:$0xff] %v9170_v62  ;;  %v9216_v31 = vrot.slane %v2514_v13, %v11499_v41  ;;  %v11673_v41 = vld [vmem:[#allocation6_spill] sm:$0xff] }
 0x1d3   : > { %v9172_v30 = vpop.f32.mrf.mxu0  ;;  %v1187_v13 = vadd.f32 %v11674_v3, %v11673_v41  ;;  %v2104_v3 = vadd.f32 %v9104_v22, %v1639_v37  ;;  %v2106_v41 = vadd.f32 %v9122_v14, %v9033_v50  ;;  %v2103_v22 = vadd.f32 %v9097_v36, %v9021_v49 }
 0x1d4   : > { %v2105_v50 = vadd.f32 %v9112_v53, %v9028_v9  ;;  %v2102_v49 = vadd.f32 %v9089_v8, %v9018_v25  ;;  %v2101_v25 = vadd.f32 %v9082_v7, %v9013_v12 }
 0x1d5   : > { %v9176_v34 = vpop.f32.mrf.mxu0 }
 0x1d7   : > { %v9178_v27 = vpop.f32.mrf.mxu0 }
 0x1d9   : > { %v9182_v18 = vpop.f32.mrf.mxu0 }
 0x1db   : > { %v9184_v59 = vpop.f32.mrf.mxu0 }
 0x1dc   : > { %v2488_v9 = vadd.f32 %v9184_v59, %v2103_v22  ;;  %v11687_v22 = vld [vmem:[#allocation64_spill] sm:$0xff] }
 0x1dd   : > { %v2403_v0 = vpop.f32.mrf.mxu0 }
 0x1de   : > { %v2489_v35 = vadd.f32 %v2403_v0, %v2104_v3 }
 0x1df   : > { %v9188_v28 = vpop.f32.mrf.mxu0 }
 0x1e0   : > { %v2490_v53 = vadd.f32 %v9188_v28, %v2105_v50  ;;  %v2487_v28 = vadd.f32 %v9182_v18, %v2102_v49  ;;  %v2098_v18 = vadd.f32 %v9060_v46, %v9003_v60  ;;  %v11680_v60 = vld [vmem:[#allocation29_spill] sm:$0xff]  ;;  %v11681_v46 = vld [vmem:[#allocation35_spill] sm:$0xff] }
 0x1e1   : > { %v2409_v54 = vpop.f32.mrf.mxu0 }
 0x1e2   : > { %v2491_v37 = vadd.f32 %v2409_v54, %v2106_v41 }
 0x1e3   : > { %v2411_v63 = vpop.f32.mrf.mxu0 }
 0x1e4   : > { %v2492_v47 = vadd.f32 %v2411_v63, %v2107_v51 }
 0x1e5   : > { %v2413_v15 = vpop.f32.mrf.mxu0 }
 0x1e6   : > { %v9275_v0 = vadd.f32 %v9216_v31, %v2492_v47  ;;  %v11684_v47 = vld [vmem:[#allocation31_spill] sm:$0xff] }
 0x1e7   : > { %v2417_v62 = vpop.f32.mrf.mxu0 }
 0x1e8   : > { %v2494_v33 = vadd.f32 %v2417_v62, %v2109_v2  ;;  %v2108_v2 = vadd.f32 %v2028_v44, %v1643_v40  ;;  %v2112_v62 = vadd.f32 %v2038_v5, %v1647_v17  ;;  %v9237_v44 = vpop.f32.mrf.mxu1  ;;  %v2113_v40 = vadd.f32 %v2042_v39, %v9058_v10  ;;  %v11677_v39 = vld [vmem:[#allocation14_spill] sm:$0xff] }
 0x1e9   : > { %v2419_v24 = vpop.f32.mrf.mxu0 }
 0x1ea   : > { %v2495_v48 = vadd.f32 %v2419_v24, %v2110_v29  ;;  %v9226_v23 = vadd.f32 %v9216_v31, %v2494_v33  ;;  %v11676_v29 = vld [vmem:[#allocation7_spill] sm:$0xff]  ;;  %v2493_v33 = vadd.f32 %v2413_v15, %v2108_v2  ;;  %v9259_v14 = vpop.f32.mrf.mxu1 }
 0x1eb   : > { %v2421_v56 = vpop.f32.mrf.mxu0  ;;  %v1207_v24 = vadd.f32 %v11676_v29, %v11675_v57  ;;  %v9295_v29 = vadd.f32 %v9220_v16, %v2489_v35 }
 0x1ec   : > { %v9229_v11 = vadd.f32 %v9220_v16, %v2495_v48  ;;  %v2496_v58 = vadd.f32 %v2421_v56, %v2111_v61  ;;  %v9262_v20 = vadd.f32 %v9220_v16, %v2493_v33  ;;  %v9316_v33 = vadd.f32 %v9216_v31, %v2490_v53  ;;  %v11692_v53 = vld [vmem:[#allocation32_spill] sm:$0xff] }
 0x1ed   : > { %v2423_v32 = vpop.f32.mrf.mxu0  ;;  %v1635_v61 = vadd.f32 %v9010_v4, %v1207_v24  ;;  %v11678_v4 = vld [vmem:[#allocation9_spill] sm:$0xff]  ;;  %v9298_v24 = vadd.f32 %v9220_v16, %v2491_v37 }
 0x1ee   : > { %v2497_v5 = vadd.f32 %v2423_v32, %v2112_v62  ;;  %v7144_v17 = vpack.i.bf16 %v9229_v11, %v9226_v23  ;;  %v9247_v42 = vadd.f32 %v9216_v31, %v2496_v58  ;;  %v1197_v2 = vadd.f32 %v11678_v4, %v11677_v39  ;;  %v11685_v39 = vld [vmem:[#allocation28_spill] sm:$0xff]  ;;  %v11686_v4 = vld [vmem:[#allocation33_spill] sm:$0xff] }
 0x1ef   : > { %v2427_v48 = vpop.f32.mrf.mxu0  ;;  %v2100_v58 = vadd.f32 %v9074_v55, %v1635_v61  ;;  %v9288_v55 = vpop.f32.mrf.mxu1  ;;  %v7164_v12 = vpack.i.bf16 %v9262_v20, %v9275_v0  ;;  %v2486_v32 = vadd.f32 %v9178_v27, %v2101_v25 }
 0x1f0   : > { %v9250_v10 = vadd.f32 %v9220_v16, %v2497_v5  ;;  %v2498_v15 = vadd.f32 %v2427_v48, %v2113_v40  ;;  %7145 = vrot.lane.b32.xlu0 %v7144_v17, %s7680_s15  ;;  %v1631_v62 = vadd.f32 %v8997_v21, %v1197_v2  ;;  %v2099_v21 = vadd.f32 %v9067_v38, %v9006_v6  ;;  %v11682_v5 = vld [vmem:[#allocation65_spill] sm:$0xff]  ;;  %v11683_v17 = vld [vmem:[#allocation67_spill] sm:$0xff] }
 0x1f1   : > { %v2429_v63 = vpop.f32.mrf.mxu0  ;;  %v2485_v8 = vadd.f32 %v9176_v34, %v2100_v58  ;;  %v1627_v38 = vadd.f32 %v8986_v19, %v1187_v13  ;;  %v9313_v40 = vadd.f32 %v9216_v31, %v2488_v9  ;;  %v11679_v19 = vld [vmem:[#allocation34_spill] sm:$0xff]  ;;  %v9324_v13 = vpop.f32.mrf.mxu1  ;;  %v2483_v61 = vadd.f32 %v11683_v17, %v2098_v18  ;;  %v11691_v9 = vld [vmem:[#allocation27_spill] sm:$0xff] }
 0x1f2   : > { %v2499_v1 = vadd.f32 %v2429_v63, %v2114_v43  ;;  %v7149_v56 = vpack.i.bf16 %v9250_v10, %v9247_v42  ;;  %v9278_v54 = vadd.f32 %v9216_v31, %v2498_v15  ;;  %v2096_v7 = vadd.f32 %v9045_v26, %v1631_v62  ;;  %v11688_v63 = vld [vmem:[#allocation66_spill] sm:$0xff] }
 0x1f3   : > { %v9271_v36 = vpop.f32.mrf.mxu0  ;;  %v2484_v34 = vadd.f32 %v9172_v30, %v2099_v21  ;;  %v2095_v26 = vadd.f32 %v11679_v19, %v8995_v45  ;;  %v2097_v30 = vadd.f32 %v11681_v46, %v11680_v60  ;;  %v9331_v41 = vadd.f32 %v9220_v16, %v2485_v8  ;;  %v11689_v62 = vld [vmem:[#allocation26_spill] sm:$0xff]  ;;  %v2072_v25 = vpop.f32.mrf.mxu1  ;;  %v11693_v8 = vld [vmem:[#allocation61_spill] sm:$0xff]  ;;  %v11695_v19 = vld [vmem:[#allocation60_spill] sm:$0xff] }
 0x1f4   : > { %v9281_v57 = vadd.f32 %v9220_v16, %v2499_v1  ;;  %7150 = vrot.lane.b32.xlu0 %v7149_v56, %s7680_s15  ;;  %v2481_v27 = vadd.f32 %v11682_v5, %v2096_v7  ;;  %v9334_v43 = vadd.f32 %v9220_v16, %v2487_v28  ;;  %v7159_v45 = vpack.i.bf16 %v9298_v24, %v9316_v33  ;;  %v11690_v58 = vld [vmem:[#allocation30_spill] sm:$0xff] }
 0x1f5   : > { %v9292_v59 = vpop.f32.mrf.mxu0  ;;  %v7174_v48 = vpack.i.bf16 %v9295_v29, %v9313_v40  ;;  %v2092_v15 = vadd.f32 %v11684_v47, %v1627_v38  ;;  %v2094_v2 = vadd.f32 %v11686_v4, %v11685_v39  ;;  %v2480_v50 = vadd.f32 %v11687_v22, %v2095_v26  ;;  %v11696_v46 = vld [vmem:[#allocation62_spill] sm:$0xff]  ;;  %v2074_v17 = vpop.f32.mrf.mxu1  ;;  %v11703_v22 = vld [vmem:[#allocation24_spill] sm:$0xff] }
 0x1f6   : > { %v7154_v6 = vpack.i.bf16 %v9281_v57, %v9278_v54  ;;  %v2482_v37 = vadd.f32 %v11688_v63, %v2097_v30  ;;  %v9348_v1 = vadd.f32 %v9216_v31, %v2484_v34  ;;  %v9351_v56 = vadd.f32 %v9216_v31, %v2486_v32 }
 0x1f7   : > { %v9309_v51 = vpop.f32.mrf.mxu0  ;;  %v2091_v49 = vadd.f32 %v11690_v58, %v11689_v62  ;;  %v2093_v21 = vadd.f32 %v11692_v53, %v11691_v9  ;;  %v2477_v28 = vadd.f32 %v11693_v8, %v2092_v15  ;;  %v9364_v7 = vadd.f32 %v9220_v16, %v2481_v27  ;;  %v11706_v62 = vld [vmem:[#allocation23_spill] sm:$0xff]  ;;  %v11707_v53 = vld [vmem:[#allocation57_spill] sm:$0xff] }
 0x1f8   : > { %7155 = vrot.lane.b32.xlu1 %v7154_v6, %s7680_s15  ;;  %7165 = vrot.lane.b32.xlu0 %v7164_v12, %s7680_s15  ;;  %v11694_v6 = vld [vmem:[#allocation63_spill] sm:$0xff]  ;;  %v9367_v18 = vadd.f32 %v9220_v16, %v2483_v61  ;;  %v7169_v34 = vpack.i.bf16 %v9334_v43, %v9351_v56  ;;  %v7184_v32 = vpack.i.bf16 %v9331_v41, %v9348_v1 }
 0x1f9   : > { %v9328_v3 = vpop.f32.mrf.mxu0  ;;  %v2479_v12 = vadd.f32 %v11694_v6, %v2094_v2  ;;  %v2476_v26 = vadd.f32 %v11695_v19, %v2091_v49  ;;  %v2478_v30 = vadd.f32 %v11696_v46, %v2093_v21  ;;  %v9378_v5 = vadd.f32 %v9216_v31, %v2480_v50  ;;  %v11704_v50 = vld [vmem:[#allocation21_spill] sm:$0xff]  ;;  %v2076_v49 = vpop.f32.mrf.mxu1  ;;  %v11708_v8 = vld [vmem:[#allocation59_spill] sm:$0xff] }
 0x1fa   : > { %v9381_v27 = vadd.f32 %v9216_v31, %v2482_v37  ;;  %v1267_v63 = vadd.f32 %v11704_v50, %v11703_v22  ;;  %v11705_v37 = vld [vmem:[#allocation25_spill] sm:$0xff]  ;;  %v9411_v21 = vadd.f32 %v9220_v16, %v11707_v53  ;;  %v11715_v50 = vld [vmem:[#allocation20_spill] sm:$0xff]  ;;  %v11717_v53 = vld [vmem:[#allocation22_spill] sm:$0xff] }
 0x1fb   : > { %v9344_v35 = vpop.f32.mrf.mxu0  ;;  %11697 = vst [vmem:[#allocation15_spill] sm:$0xff] %v9378_v5  ;;  %v7194_v15 = vpack.i.bf16 %v9364_v7, %v9378_v5  ;;  %v9398_v4 = vadd.f32 %v9216_v31, %v2476_v26  ;;  %v9401_v2 = vadd.f32 %v9216_v31, %v2478_v30  ;;  %v1277_v58 = vadd.f32 %v11706_v62, %v11705_v37  ;;  %v11710_v26 = vld [vmem:[#allocation49_spill] sm:$0xff]  ;;  %v11711_v30 = vld [vmem:[#allocation56_spill] sm:$0xff] }
 0x1fc   : > { %7160 = vrot.lane.b32.xlu1 %v7159_v45, %s7680_s15  ;;  %7175 = vrot.lane.b32.xlu0 %v7174_v48, %s7680_s15  ;;  %11698 = vst [vmem:[#allocation18_spill] sm:$0xff] %v9381_v27  ;;  %v9388_v45 = vadd.f32 %v9220_v16, %v2477_v28  ;;  %v9391_v48 = vadd.f32 %v9220_v16, %v2479_v12  ;;  %v11716_v37 = vld [vmem:[#allocation17_spill] sm:$0xff] }
 0x1fd   : > { %v9361_v38 = vpop.f32.mrf.mxu0  ;;  %v7179_v47 = vpack.i.bf16 %v9367_v18, %v9381_v27  ;;  %11701 = vst [vmem:[#allocation16_spill] sm:$0xff] %v9398_v4  ;;  %11702 = vst [vmem:[#allocation7_spill] sm:$0xff] %v9401_v2  ;;  %v9415_v28 = vadd.f32 %v9220_v16, %v11708_v8  ;;  %v1663_v46 = vadd.f32 %v11710_v26, %v1277_v58  ;;  %v11719_v58 = vld [vmem:[#allocation53_spill] sm:$0xff] }
 0x1fe   : > { %11699 = vst [vmem:[#allocation6_spill] sm:$0xff] %v9388_v45  ;;  %11700 = vst [vmem:[#allocation10_spill] sm:$0xff] %v9391_v48  ;;  %v7189_v6 = vpack.i.bf16 %v9391_v48, %v9401_v2  ;;  %v7204_v12 = vpack.i.bf16 %v9388_v45, %v9398_v4  ;;  %v1247_v62 = vadd.f32 %v11716_v37, %v11715_v50  ;;  %v11720_v4 = vld [vmem:[#allocation48_spill] sm:$0xff]  ;;  %v11722_v50 = vld [vmem:[#allocation41_spill] sm:$0xff] }
 0x1ff   : > { %v9374_v60 = vpop.f32.mrf.mxu0  ;;  %v9439_v26 = vadd.f32 %v9220_v16, %v11719_v58  ;;  %v2127_v2 = vadd.f32 %v2076_v49, %v11720_v4  ;;  %v11724_v48 = vld [vmem:[#allocation52_spill] sm:$0xff] }
 0x200   : > { %7170 = vrot.lane.b32.xlu1 %v7169_v34, %s7680_s15  ;;  %7185 = vrot.lane.b32.xlu0 %v7184_v32, %s7680_s15  ;;  %v11709_v34 = vld [vmem:[#allocation45_spill] sm:$0xff]  ;;  %v9455_v5 = vadd.f32 %v9216_v31, %v11724_v48 }
 0x201   : > { %v9385_v61 = vpop.f32.mrf.mxu0  ;;  %v1659_v32 = vadd.f32 %v11709_v34, %v1267_v63  ;;  %v11718_v63 = vld [vmem:[#allocation19_spill] sm:$0xff]  ;;  %v2078_v34 = vpop.f32.mrf.mxu1 }
 0x202   : > { %v1257_v8 = vadd.f32 %v11718_v63, %v11717_v53  ;;  %v11723_v63 = vld [vmem:[#allocation47_spill] sm:$0xff]  ;;  %v2128_v49 = vadd.f32 %v2078_v34, %v1663_v46  ;;  %v7224_v46 = vpack.i.bf16 %v9439_v26, %v9455_v5 }
 0x203   : > { %v2451_v39 = vpop.f32.mrf.mxu0  ;;  %v2124_v53 = vadd.f32 %v9324_v13, %v1659_v32  ;;  %v2126_v58 = vadd.f32 %v2074_v17, %v11723_v63  ;;  %v11727_v32 = vld [vmem:[#allocation46_spill] sm:$0xff] }
 0x204   : > { %7180 = vrot.lane.b32.xlu1 %v7179_v47, %s7680_s15  ;;  %7195 = vrot.lane.b32.xlu0 %v7194_v15, %s7680_s15  ;;  %v9425_v47 = vadd.f32 %v9216_v31, %v11711_v30  ;;  %v11713_v15 = vld [vmem:[#allocation58_spill] sm:$0xff]  ;;  %v1655_v37 = vadd.f32 %v11722_v50, %v1257_v8  ;;  %v11726_v8 = vld [vmem:[#allocation44_spill] sm:$0xff]  ;;  %v2125_v17 = vadd.f32 %v2072_v25, %v11727_v32  ;;  %v11728_v50 = vld [vmem:[#allocation51_spill] sm:$0xff] }
 0x205   : > { %v2453_v9 = vpop.f32.mrf.mxu0  ;;  %v9429_v22 = vadd.f32 %v9216_v31, %v11713_v15  ;;  %v11721_v15 = vld [vmem:[#allocation55_spill] sm:$0xff]  ;;  %v2123_v13 = vadd.f32 %v9288_v55, %v11726_v8  ;;  %v9468_v48 = vadd.f32 %v9220_v16, %v11728_v50  ;;  %v11730_v25 = vld [vmem:[#allocation50_spill] sm:$0xff] }
 0x206   : > { %11712 = vst [vmem:[#allocation14_spill] sm:$0xff] %v9425_v47  ;;  %v9444_v45 = vadd.f32 %v9220_v16, %v11721_v15  ;;  %v11725_v15 = vld [vmem:[#allocation54_spill] sm:$0xff]  ;;  %v2509_v34 = vadd.f32 %v2453_v9, %v2124_v53  ;;  %v9479_v8 = vadd.f32 %v9216_v31, %v11730_v25 }
 0x207   : > { %v2457_v19 = vpop.f32.mrf.mxu0  ;;  %11714 = vst [vmem:[#allocation9_spill] sm:$0xff] %v9429_v22  ;;  %v9459_v27 = vadd.f32 %v9216_v31, %v11725_v15  ;;  %v2508_v32 = vadd.f32 %v2451_v39, %v2123_v13 }
 0x208   : > { %7190 = vrot.lane.b32.xlu1 %v7189_v6, %s7680_s15  ;;  %7205 = vrot.lane.b32.xlu0 %v7204_v12, %s7680_s15  ;;  %v7199_v6 = vpack.i.bf16 %v9415_v28, %v9429_v22  ;;  %v7214_v12 = vpack.i.bf16 %v9411_v21, %v9425_v47  ;;  %v2510_v50 = vadd.f32 %v2457_v19, %v2125_v17  ;;  %v11734_v17 = vld [vmem:[#allocation37_spill] sm:$0xff] }
 0x209   : > { %v2459_v30 = vpop.f32.mrf.mxu0  ;;  %v7219_v39 = vpack.i.bf16 %v9468_v48, %v9479_v8 }
 0x20a   : > { %v2511_v15 = vadd.f32 %v2459_v30, %v2126_v58  ;;  %v11732_v30 = vld [vmem:[#allocation73_spill] sm:$0xff] }
 0x20b   : > { %v2461_v4 = vpop.f32.mrf.mxu0 }
 0x20c   : > { %v2512_v22 = vadd.f32 %v2461_v4, %v2127_v2  ;;  %7200 = vrot.lane.b32.xlu1 %v7199_v6, %s7680_s15  ;;  %7215 = vrot.lane.b32.xlu0 %v7214_v12, %s7680_s15  ;;  %v7209_v6 = vpack.i.bf16 %v9444_v45, %v9459_v27  ;;  %v2120_v12 = vadd.f32 %v9211_v52, %v1655_v37  ;;  %v11729_v4 = vld [vmem:[#allocation43_spill] sm:$0xff]  ;;  %v11731_v52 = vld [vmem:[#allocation40_spill] sm:$0xff] }
 0x20d   : > { %v2463_v63 = vpop.f32.mrf.mxu0  ;;  %v2122_v55 = vadd.f32 %v9259_v14, %v11729_v4  ;;  %v2119_v37 = vadd.f32 %v11732_v30, %v11731_v52  ;;  %v11733_v14 = vld [vmem:[#allocation42_spill] sm:$0xff] }
 0x20e   : > { %v2513_v2 = vadd.f32 %v2463_v63, %v2128_v49  ;;  %v9482_v47 = vadd.f32 %v9216_v31, %v2512_v22  ;;  %v2121_v53 = vadd.f32 %v9237_v44, %v11733_v14  ;;  %v2505_v58 = vadd.f32 %v9361_v38, %v2120_v12  ;;  %v11736_v44 = vld [vmem:[#allocation71_spill] sm:$0xff]  ;;  %v11738_v12 = vld [vmem:[#allocation70_spill] sm:$0xff]  ;;  %v11741_v14 = vld [vmem:[#allocation68_spill] sm:$0xff] }
 0x20f   : > { %v2507_v19 = vadd.f32 %v9385_v61, %v2122_v55  ;;  %v9498_v22 = vadd.f32 %v9220_v16, %v2509_v34  ;;  %v9501_v49 = vadd.f32 %v9220_v16, %v2511_v15  ;;  %v1651_v63 = vadd.f32 %v11734_v17, %v1247_v62  ;;  %v11737_v15 = vld [vmem:[#allocation38_spill] sm:$0xff] }
 0x210   : > { %v9485_v9 = vadd.f32 %v9220_v16, %v2513_v2  ;;  %7210 = vrot.lane.b32.xlu1 %v7209_v6, %s7680_s15  ;;  %7225 = vrot.lane.b32.xlu0 %v7224_v46, %s7680_s15  ;;  %v11735_v46 = vld [vmem:[#allocation39_spill] sm:$0xff]  ;;  %v2504_v38 = vadd.f32 %v9344_v35, %v2119_v37  ;;  %v2506_v6 = vadd.f32 %v9374_v60, %v2121_v53  ;;  %v11740_v37 = vld [vmem:[#allocation36_spill] sm:$0xff] }
 0x211   : > { %v2118_v2 = vadd.f32 %v11736_v44, %v11735_v46  ;;  %v9511_v61 = vadd.f32 %v9216_v31, %v2508_v32  ;;  %v9514_v34 = vadd.f32 %v9216_v31, %v2510_v50  ;;  %v2117_v62 = vadd.f32 %v11738_v12, %v11737_v15  ;;  %v11739_v32 = vld [vmem:[#allocation69_spill] sm:$0xff] }
 0x212   : > { %v7234_v13 = vpack.i.bf16 %v9485_v9, %v9482_v47  ;;  %v9522_v55 = vadd.f32 %v9220_v16, %v2505_v58  ;;  %v9525_v35 = vadd.f32 %v9220_v16, %v2507_v19  ;;  %v2116_v50 = vadd.f32 %v11739_v32, %v1651_v63  ;;  %v7336_v44 = vld [vmem:[%s11428_s3 + $0x4] ss:$8 sps:$4 sm:$0xff]  }
 0x213   : > { %v2503_v4 = vadd.f32 %v9328_v3, %v2118_v2  ;;  %v7244_v60 = vpack.i.bf16 %v9498_v22, %v9511_v61  ;;  %v7229_v25 = vpack.i.bf16 %v9501_v49, %v9514_v34  ;;  %v2502_v52 = vadd.f32 %v9309_v51, %v2117_v62  ;;  %6486 = vmatprep.mubr.msk.bf16.mxu1 %vm3190_vm14, %v7336_v44 }
 0x214   : > { %7235 = vrot.lane.b32.xlu0 %v7234_v13, %s7680_s15  ;;  %7220 = vrot.lane.b32.xlu1 %v7219_v39, %s7680_s15  ;;  %v9534_v30 = vadd.f32 %v9216_v31, %v2504_v38  ;;  %v9537_v3 = vadd.f32 %v9216_v31, %v2506_v6  ;;  %v2115_v53 = vadd.f32 %v11741_v14, %v11740_v37 }
 0x215   : > { %v2501_v58 = vadd.f32 %v9292_v59, %v2116_v50  ;;  %v9545_v39 = vadd.f32 %v9220_v16, %v2503_v4  ;;  %v9553_v17 = vadd.f32 %v9216_v31, %v2502_v52 }
 0x216   : > { %v7254_v51 = vpack.i.bf16 %v9522_v55, %v9534_v30  ;;  %v7239_v19 = vpack.i.bf16 %v9525_v35, %v9537_v3  ;;  %v2500_v13 = vadd.f32 %v9271_v36, %v2115_v53 }
 0x217   : > { %11742 = vst [vmem:[#allocation34_spill] sm:$0xff] %v9553_v17  ;;  %v9558_v59 = vadd.f32 %v9220_v16, %v2501_v58  ;;  %v7249_v63 = vpack.i.bf16 %v9545_v39, %v9553_v17 }
 0x218   : > { %7245 = vrot.lane.b32.xlu0 %v7244_v60, %s7680_s15  ;;  %7230 = vrot.lane.b32.xlu1 %v7229_v25, %s7680_s15  ;;  %v9563_v46 = vadd.f32 %v9216_v31, %v2500_v13  ;;  %v7681_v25 = vmov 65535  }
 0x219   : > { %11743 = vst [vmem:[#allocation29_spill] sm:$0xff] %v9558_v59  ;;  %v3216_v32 = vsel %vm2887_vm0, 4294967295, %v7681_v25 }
 0x21a   : > { %11744 = vst [vmem:[#allocation35_spill] sm:$0xff] %v9563_v46  ;;  %v7259_v36 = vpack.i.bf16 %v9558_v59, %v9563_v46 }
 0x21c   : > { %7255 = vrot.lane.b32.xlu0 %v7254_v51, %s7680_s15  ;;  %7240 = vrot.lane.b32.xlu1 %v7239_v19, %s7680_s15 }
 0x220   : > { %7250 = vrot.lane.b32.xlu1 %v7249_v63, %s7680_s15  ;;  %v9591_v63 = vsel %vm3215_vm1, %v3216_v32, 0 }
 0x221   : > { %11745 = vst [vmem:[#allocation65_spill] sm:$0xff] %v9591_v63 }
 0x224   : > { %7260 = vrot.lane.b32.xlu1 %v7259_v36, %s7680_s15 }
 0x262   : > { %v7146_v16 = vpop.permute.xlu0 %7145 }
 0x263   : > { %v7148_v2 = vunpack.i.h.bf16 %v7146_v16  ;;  %v7147_v38 = vunpack.i.l.bf16 %v7146_v16 }
 0x265   : > { %v9574_v31 = vmax.f32 %v9229_v11, %v7148_v2  ;;  %v2733_v15 = vsel %vm2718_vm15, %v7147_v38, %v7148_v2 }
 0x266   : > { %v7151_v6 = vpop.permute.xlu0 %7150  ;;  %v9584_v11 = vmax.f32 %v9226_v23, %v2733_v15 }
 0x267   : > { %v7153_v12 = vunpack.i.h.bf16 %v7151_v6  ;;  %v7152_v62 = vunpack.i.l.bf16 %v7151_v6  ;;  %v2944_v50 = vrot.slane %v9574_v31, 1 }
 0x268   : > { %v2942_v16 = vrot.slane %v9584_v11, 1 }
 0x269   : > { %v9578_v4 = vmax.f32 %v9250_v10, %v7153_v12  ;;  %v2734_v60 = vsel %vm2718_vm15, %v7152_v62, %v7153_v12 }
 0x26a   : > { %v9587_v52 = vmax.f32 %v9247_v42, %v2734_v60  ;;  %v7156_v37 = vpop.permute.xlu1 %7155  ;;  %v7166_v14 = vpop.permute.xlu0 %7165 }
 0x26b   : > { %v2948_v53 = vrot.slane %v9578_v4, 1  ;;  %v7158_v10 = vunpack.i.h.bf16 %v7156_v37  ;;  %v7157_v58 = vunpack.i.l.bf16 %v7156_v37  ;;  %v7168_v51 = vunpack.i.h.bf16 %v7166_v14 }
 0x26c   : > { %v11510_v19 = vrot.slane %v9587_v52, 1  ;;  %v7167_v13 = vunpack.i.l.bf16 %v7166_v14 }
 0x26d   : > { %v9594_v36 = vmax.f32 %v9281_v57, %v7158_v10  ;;  %v2735_v23 = vsel %vm2718_vm15, %v7157_v58, %v7158_v10  ;;  %v9598_v42 = vmax.f32 %v9262_v20, %v7168_v51  ;;  %v9601_v44 = vsel %vm2887_vm0, %v2944_v50, %v2948_v53 }
 0x26e   : > { %v9605_v2 = vmax.f32 %v9278_v54, %v2735_v23  ;;  %v2732_v38 = vsel %vm2718_vm15, %v7167_v13, %v7168_v51  ;;  %v7161_v6 = vpop.permute.xlu1 %7160  ;;  %v7176_v15 = vpop.permute.xlu0 %7175  ;;  %v9618_v54 = vsel %vm2887_vm0, %v2942_v16, %v11510_v19 }
 0x26f   : > { %11746 = vst [vmem:[#allocation67_spill] sm:$0xff] %v9594_v36  ;;  %v11511_v12 = vrot.slane %v9594_v36, 1  ;;  %v2940_v20 = vrot.slane %v9598_v42, 1  ;;  %v9613_v62 = vmax.f32 %v9275_v0, %v2732_v38  ;;  %v7163_v60 = vunpack.i.h.bf16 %v7161_v6 }
 0x270   : > { %v7162_v25 = vunpack.i.l.bf16 %v7161_v6  ;;  %v7178_v32 = vunpack.i.h.bf16 %v7176_v15  ;;  %v7177_v37 = vunpack.i.l.bf16 %v7176_v15 }
 0x271   : > { %v9622_v10 = vsel %vm2887_vm0, %v2940_v20, %v2944_v50  ;;  %v2938_v58 = vrot.slane %v9613_v62, 1  ;;  %v9626_v51 = vmax.f32 %v9298_v24, %v7163_v60  ;;  %v2953_v15 = vsel %vm2887_vm0, %v2948_v53, %v11511_v12 }
 0x272   : > { %v2731_v0 = vsel %vm2718_vm15, %v7162_v25, %v7163_v60  ;;  %v9630_v13 = vmax.f32 %v9295_v29, %v7178_v32  ;;  %v2730_v23 = vsel %vm2718_vm15, %v7177_v37, %v7178_v32  ;;  %v7171_v38 = vpop.permute.xlu1 %7170  ;;  %v7186_v6 = vpop.permute.xlu0 %7185  ;;  %v7358_v29 = vld [vmem:[%s11429_s4 + $0x70] ss:$8 sps:$4 sm:$0xff]   ;;  %v7360_v25 = vld [vmem:[%s11429_s4 + $0x74] ss:$8 sps:$4 sm:$0xff]  }
 0x273   : > { %v9637_v50 = vsel %vm2887_vm0, %v2938_v58, %v2942_v16  ;;  %v2936_v19 = vrot.slane %v9626_v51, 1  ;;  %v9641_v24 = vmax.f32 %v9316_v33, %v2731_v0  ;;  %v9644_v60 = vmax.f32 %v9313_v40, %v2730_v23  ;;  %v7363_v40 = vld [vmem:[%s11429_s4 + $0x64] ss:$8 sps:$4 sm:$0xff]   ;;  %4068 = vmatprep.subr.bf16.mxu0 %v7360_v25 }
 0x274   : > { %v2932_v16 = vrot.slane %v9630_v13, 1  ;;  %v7173_v32 = vunpack.i.h.bf16 %v7171_v38  ;;  %v7172_v37 = vunpack.i.l.bf16 %v7171_v38  ;;  %v7188_v12 = vunpack.i.h.bf16 %v7186_v6  ;;  %4069 = vmatpush1.bf16.msra.mxu0 %v7358_v29  ;;  %v7366_v29 = vld [vmem:[%s11429_s4 + $0x54] ss:$8 sps:$4 sm:$0xff]  }
 0x275   : > { %v9659_v33 = vsel %vm2887_vm0, %v2936_v19, %v2940_v20  ;;  %v2934_v0 = vrot.slane %v9641_v24, 1  ;;  %v2930_v23 = vrot.slane %v9644_v60, 1  ;;  %v7361_v20 = vld [vmem:[%s11429_s4 + $0x60] ss:$8 sps:$4 sm:$0xff]   ;;  %4070 = vmatprep.subr.bf16.mxu0 %v7363_v40  ;;  %v3061_v40 = vmax.f32 %v9578_v4, %v2953_v15 }
 0x276   : > { %v9666_v14 = vsel %vm2887_vm0, %v2932_v16, %v2936_v19  ;;  %v9669_v38 = vmax.f32 %v9334_v43, %v7173_v32  ;;  %v2729_v57 = vsel %vm2718_vm15, %v7172_v37, %v7173_v32  ;;  %v7181_v36 = vpop.permute.xlu1 %7180  ;;  %v3055_v25 = vmax.f32 %v9626_v51, %v9659_v33  ;;  %v7196_v53 = vpop.permute.xlu0 %7195 }
 0x277   : > { %v9678_v63 = vsel %vm2887_vm0, %v2934_v0, %v2938_v58  ;;  %v9683_v43 = vmax.f32 %v9351_v56, %v2729_v57  ;;  %v9691_v51 = vsel %vm2887_vm0, %v2930_v23, %v2934_v0  ;;  %v9695_v37 = vmax.f32 %v9331_v41, %v7188_v12  ;;  %v7364_v41 = vld [vmem:[%s11429_s4 + $0x50] ss:$8 sps:$4 sm:$0xff]  }
 0x278   : > { %v2928_v58 = vrot.slane %v9669_v38, 1  ;;  %v7187_v57 = vunpack.i.l.bf16 %v7186_v6  ;;  %v7183_v33 = vunpack.i.h.bf16 %v7181_v36  ;;  %v7182_v32 = vunpack.i.l.bf16 %v7181_v36  ;;  %4071 = vmatpush1.bf16.msra.mxu0 %v7361_v20  ;;  %v7372_v20 = vld [vmem:[%s11429_s4 + $0x44] ss:$8 sps:$4 sm:$0xff]   ;;  %v11751_v6 = vld [vmem:[#allocation15_spill] sm:$0xff] }
 0x279   : > { %v2926_v56 = vrot.slane %v9683_v43, 1  ;;  %v2924_v46 = vrot.slane %v9695_v37, 1  ;;  %v7198_v59 = vunpack.i.h.bf16 %v7196_v53  ;;  %4072 = vmatprep.subr.bf16.mxu0 %v7366_v29 }
 0x27a   : > { %v9700_v19 = vsel %vm2887_vm0, %v2928_v58, %v2932_v16  ;;  %v9703_v0 = vpop.permute.xlu1 %7190  ;;  %v2728_v15 = vsel %vm2718_vm15, %v7187_v57, %v7188_v12  ;;  %v11747_v16 = vmax.f32 %v9574_v31, %v9601_v44  ;;  %v9728_v12 = vmax.f32 %v9367_v18, %v7183_v33 }
 0x27b   : > { %v9711_v4 = vsel %vm2887_vm0, %v2926_v56, %v2930_v23  ;;  %v3051_v17 = vmax.f32 %v9669_v38, %v9700_v19  ;;  %v9725_v23 = vmax.f32 %v9348_v1, %v2728_v15  ;;  %v9731_v31 = vsel %vm2887_vm0, %v2924_v46, %v2928_v58  ;;  %v7206_v38 = vpop.permute.xlu0 %7205  ;;  %v11748_v1 = vld [vmem:[#allocation18_spill] sm:$0xff] }
 0x27c   : > { %v3109_v36 = vpack.c.bf16 %v3061_v40, %v11747_v16  ;;  %v2727_v44 = vsel %vm2718_vm15, %v7182_v32, %v7183_v33  ;;  %v9735_v29 = vmax.f32 %v9364_v7, %v7198_v59  ;;  %v7197_v57 = vunpack.i.l.bf16 %v7196_v53  ;;  %4073 = vmatpush1.bf16.msra.mxu0 %v7364_v41  ;;  %v7370_v7 = vld [vmem:[%s11429_s4 + $0x40] ss:$8 sps:$4 sm:$0xff]  }
 0x27d   : > { %v2922_v19 = vrot.slane %v9725_v23, 1  ;;  %v2920_v40 = vrot.slane %v9728_v12, 1  ;;  %v9740_v15 = vmax.f32 %v11748_v1, %v2727_v44  ;;  %v11749_v18 = vrot.slane %v9605_v2, 1  ;;  %4074 = vmatprep.subr.bf16.mxu0 %v7372_v20  ;;  %v7378_v1 = vld [vmem:[%s11429_s4 + $0x34] ss:$8 sps:$4 sm:$0xff]  }
 0x27e   : > { %3224 = vmatprep.subr.bf16.mxu1 %v3109_v36  ;;  %v11750_v58 = vrot.slane %v9587_v52, 1  ;;  %v7201_v36 = vpop.permute.xlu1 %7200  ;;  %v2916_v53 = vrot.slane %v9735_v29, 1  ;;  %v2726_v32 = vsel %vm2718_vm15, %v7197_v57, %v7198_v59  ;;  %v3058_v33 = vmax.f32 %v9584_v11, %v9618_v54 }
 0x27f   : > { %v9759_v41 = vsel %vm2887_vm0, %v2922_v19, %v2926_v56  ;;  %v9766_v59 = vmax.f32 %v11751_v6, %v2726_v32  ;;  %v11752_v6 = vmax.f32 %v9598_v42, %v9622_v10  ;;  %v7376_v32 = vld [vmem:[%s11429_s4 + $0x30] ss:$8 sps:$4 sm:$0xff]   ;;  %v7384_v42 = vld [vmem:[%s11429_s4 + $0x24] ss:$8 sps:$4 sm:$0xff]  }
 0x280   : > { %v2951_v16 = vsel %vm2887_vm0, %v11750_v58, %v11749_v18  ;;  %v9762_v18 = vsel %vm2887_vm0, %v2920_v40, %v2924_v46  ;;  %v2918_v58 = vrot.slane %v9740_v15, 1  ;;  %v9773_v54 = vsel %vm2887_vm0, %v2916_v53, %v2920_v40  ;;  %4075 = vmatpush1.bf16.msra.mxu0 %v7370_v7  ;;  %v11756_v56 = vld [vmem:[#allocation10_spill] sm:$0xff] }
 0x281   : > { %v3060_v44 = vmax.f32 %v9587_v52, %v2951_v16  ;;  %v2914_v57 = vrot.slane %v9766_v59, 1  ;;  %v3107_v16 = vpack.c.bf16 %v11752_v6, %v3055_v25  ;;  %v7216_v52 = vpop.permute.xlu0 %7215  ;;  %4076 = vmatprep.subr.bf16.mxu0 %v7378_v1  ;;  %v7207_v25 = vunpack.i.l.bf16 %v7206_v38 }
 0x282   : > { %v9778_v46 = vsel %vm2887_vm0, %v2918_v58, %v2922_v19  ;;  %v7192_v19 = vunpack.i.l.bf16 %v9703_v0  ;;  %v11753_v7 = vmax.f32 %v9641_v24, %v9678_v63  ;;  %v9805_v40 = vpop.permute.xlu1 %7210  ;;  %v11758_v24 = vld [vmem:[#allocation7_spill] sm:$0xff] }
 0x283   : > { %v3108_v20 = vpack.c.bf16 %v3060_v44, %v3058_v33  ;;  %v7193_v33 = vunpack.i.h.bf16 %v9703_v0  ;;  %v7208_v44 = vunpack.i.h.bf16 %v7206_v38  ;;  %v11755_v0 = vmax.f32 %v9630_v13, %v9666_v14  ;;  %v7382_v13 = vld [vmem:[%s11429_s4 + $0x20] ss:$8 sps:$4 sm:$0xff]  }
 0x284   : > { %v9808_v11 = vsel %vm2887_vm0, %v2914_v57, %v2918_v58  ;;  %v7203_v14 = vunpack.i.h.bf16 %v7201_v36  ;;  %4077 = vmatpush1.bf16.msra.mxu0 %v7376_v32 }
 0x285   : > { %3225 = vmatpush1.bf16.msra.mxu1 %v3108_v20  ;;  %v11754_v20 = vmax.f32 %v9613_v62, %v9637_v50  ;;  %v3105_v1 = vpack.c.bf16 %v11755_v0, %v3051_v17  ;;  %v9811_v10 = vmax.f32 %v11756_v56, %v7193_v33  ;;  %v2725_v38 = vsel %vm2718_vm15, %v7192_v19, %v7193_v33  ;;  %v11759_v33 = vld [vmem:[#allocation16_spill] sm:$0xff] }
 0x286   : > { %3226 = vmatprep.subr.bf16.mxu1 %v3107_v16  ;;  %v11757_v16 = vld [vmem:[#allocation6_spill] sm:$0xff]  ;;  %v9818_v62 = vmax.f32 %v11758_v24, %v2725_v38  ;;  %v2724_v50 = vsel %vm2718_vm15, %v7207_v25, %v7208_v44  ;;  %v7202_v17 = vunpack.i.l.bf16 %v7201_v36  ;;  %4078 = vmatprep.subr.bf16.mxu0 %v7384_v42  ;;  %v9834_v32 = vmax.f32 %v9415_v28, %v7203_v14  ;;  %v7226_v24 = vpop.permute.xlu0 %7225 }
 0x287   : > { %v3106_v6 = vpack.c.bf16 %v11754_v20, %v11753_v7  ;;  %v9815_v63 = vmax.f32 %v11757_v16, %v7208_v44  ;;  %v2912_v58 = vrot.slane %v9811_v10, 1  ;;  %v9827_v19 = vmax.f32 %v11759_v33, %v2724_v50  ;;  %v7390_v44 = vld [vmem:[%s11429_s4 + $0x14] ss:$8 sps:$4 sm:$0xff]  }
 0x288   : > { %v7218_v7 = vunpack.i.h.bf16 %v7216_v52  ;;  %v2910_v36 = vrot.slane %v9818_v62, 1  ;;  %v2723_v25 = vsel %vm2718_vm15, %v7202_v17, %v7203_v14  ;;  %v7217_v20 = vunpack.i.l.bf16 %v7216_v52  ;;  %4079 = vmatpush1.bf16.msra.mxu0 %v7382_v13  ;;  %v7388_v14 = vld [vmem:[%s11429_s4 + $0x10] ss:$8 sps:$4 sm:$0xff]   ;;  %v7396_v13 = vld [vmem:[%s11429_s4 + $0x4] ss:$8 sps:$4 sm:$0xff]  }
 0x289   : > { %v2908_v56 = vrot.slane %v9815_v63, 1  ;;  %3227 = vmatpush1.bf16.msra.mxu1 %v3106_v6  ;;  %v2917_v0 = vsel %vm2887_vm0, %v2912_v58, %v2916_v53  ;;  %v2906_v42 = vrot.slane %v9827_v19, 1  ;;  %v11760_v6 = vld [vmem:[#allocation9_spill] sm:$0xff]  ;;  %v2904_v52 = vrot.slane %v9834_v32, 1  ;;  %v9852_v53 = vpop.permute.xlu1 %7220  ;;  %4080 = vmatprep.subr.bf16.mxu0 %v7390_v44 }
 0x28a   : > { %3228 = vmatprep.subr.bf16.mxu1 %v3105_v1  ;;  %v9843_v16 = vmax.f32 %v11760_v6, %v2723_v25  ;;  %v3043_v28 = vmax.f32 %v9811_v10, %v2917_v0  ;;  %v9849_v50 = vsel %vm2887_vm0, %v2910_v36, %v2914_v57  ;;  %v9864_v57 = vmax.f32 %v9411_v21, %v7218_v7 }
 0x28b   : > { %v9839_v38 = vsel %vm2887_vm0, %v2908_v56, %v2912_v58  ;;  %v9860_v58 = vsel %vm2887_vm0, %v2906_v42, %v2910_v36  ;;  %v3042_v33 = vmax.f32 %v9818_v62, %v9849_v50  ;;  %v2909_v25 = vsel %vm2887_vm0, %v2904_v52, %v2908_v56  ;;  %v11763_v62 = vld [vmem:[#allocation14_spill] sm:$0xff] }
 0x28c   : > { %v2902_v10 = vrot.slane %v9843_v16, 1  ;;  %v2722_v0 = vsel %vm2718_vm15, %v7217_v20, %v7218_v7  ;;  %v11761_v36 = vmax.f32 %v9683_v43, %v9711_v4  ;;  %v11762_v6 = vmax.f32 %v9644_v60, %v9691_v51  ;;  %4081 = vmatpush1.bf16.msra.mxu0 %v7388_v14  ;;  %v7394_v20 = vld [vmem:[%s11429_s4] ss:$8 sps:$4 sm:$0xff]  }
 0x28d   : > { %v3040_v44 = vmax.f32 %v9827_v19, %v9860_v58  ;;  %v2900_v1 = vrot.slane %v9864_v57, 1  ;;  %v9886_v50 = vmax.f32 %v11763_v62, %v2722_v0  ;;  %v3039_v56 = vmax.f32 %v9834_v32, %v2909_v25  ;;  %4082 = vmatprep.subr.bf16.mxu0 %v7396_v13 }
 0x28e   : > { %v3104_v21 = vpack.c.bf16 %v11762_v6, %v11761_v36  ;;  %v9882_v17 = vsel %vm2887_vm0, %v2902_v10, %v2906_v42  ;;  %v11764_v43 = vmax.f32 %v9728_v12, %v9762_v18  ;;  %v11765_v60 = vmax.f32 %v9695_v37, %v9731_v31  ;;  %v7236_v18 = vpop.permute.xlu0 %7235  ;;  %v7231_v36 = vpop.permute.xlu1 %7230 }
 0x28f   : > { %v7213_v4 = vunpack.i.h.bf16 %v9805_v40  ;;  %v7212_v7 = vunpack.i.l.bf16 %v9805_v40  ;;  %v9901_v42 = vsel %vm2887_vm0, %v2900_v1, %v2904_v52  ;;  %v2898_v32 = vrot.slane %v9886_v50, 1 }
 0x290   : > { %3229 = vmatpush1.bf16.msra.mxu1 %v3104_v21  ;;  %v3103_v51 = vpack.c.bf16 %v11765_v60, %v11764_v43  ;;  %v7228_v25 = vunpack.i.h.bf16 %v7226_v24  ;;  %v7227_v12 = vunpack.i.l.bf16 %v7226_v24  ;;  %v3038_v37 = vmax.f32 %v9843_v16, %v9882_v17  ;;  %4083 = vmatpush1.bf16.msra.mxu0 %v7394_v20 }
 0x291   : > { %v9907_v31 = vmax.f32 %v9444_v45, %v7213_v4  ;;  %v2721_v40 = vsel %vm2718_vm15, %v7212_v7, %v7213_v4  ;;  %v11766_v14 = vmax.f32 %v9740_v15, %v9778_v46  ;;  %v11767_v52 = vmax.f32 %v9725_v23, %v9759_v41 }
 0x292   : > { %3230 = vmatprep.subr.bf16.mxu1 %v3103_v51  ;;  %v3037_v24 = vmax.f32 %v9864_v57, %v9901_v42  ;;  %v9919_v13 = vmax.f32 %v9459_v27, %v2721_v40  ;;  %v9922_v16 = vmax.f32 %v9439_v26, %v7228_v25  ;;  %v2720_v45 = vsel %vm2718_vm15, %v7227_v12, %v7228_v25  ;;  %v7246_v60 = vpop.permute.xlu0 %7245  ;;  %v7241_v7 = vpop.permute.xlu1 %7240 }
 0x293   : > { %v3102_v0 = vpack.c.bf16 %v11767_v52, %v11766_v14  ;;  %v9926_v17 = vsel %vm2887_vm0, %v2898_v32, %v2902_v10  ;;  %v2896_v15 = vrot.slane %v9907_v31, 1  ;;  %v9930_v23 = vmax.f32 %v9455_v5, %v2720_v45 }
 0x294   : > { %v11768_v41 = vmax.f32 %v9735_v29, %v9773_v54  ;;  %v2894_v27 = vrot.slane %v9919_v13, 1  ;;  %v2892_v26 = vrot.slane %v9922_v16, 1  ;;  %v7238_v57 = vunpack.i.h.bf16 %v7236_v18 }
 0x295   : > { %3231 = vmatpush1.bf16.msra.mxu1 %v3102_v0  ;;  %v7237_v6 = vunpack.i.l.bf16 %v7236_v18  ;;  %v2901_v10 = vsel %vm2887_vm0, %v2896_v15, %v2900_v1  ;;  %v2889_v21 = vrot.slane %v9930_v23, 1  ;;  %v7223_v5 = vunpack.i.h.bf16 %v9852_v53 }
 0x296   : > { %v3101_v46 = vpack.c.bf16 %v11768_v41, %v3043_v28  ;;  %v7222_v62 = vunpack.i.l.bf16 %v9852_v53  ;;  %v3036_v29 = vmax.f32 %v9886_v50, %v9926_v17  ;;  %v2899_v54 = vsel %vm2887_vm0, %v2894_v27, %v2898_v32 }
 0x297   : > { %v9945_v28 = vsel %vm2887_vm0, %v2892_v26, %v2896_v15  ;;  %v2838_v43 = vmax.f32 %v9485_v9, %v7238_v57  ;;  %v3035_v1 = vmax.f32 %v9907_v31, %v2901_v10  ;;  %v3034_v51 = vmax.f32 %v9919_v13, %v2899_v54  ;;  %v7251_v15 = vpop.permute.xlu1 %7250 }
 0x298   : > { %3232 = vmatprep.subr.bf16.mxu1 %v3101_v46  ;;  %v9951_v4 = vsel %vm2887_vm0, %v2889_v21, %v2894_v27  ;;  %v2742_v53 = vsel %vm2718_vm15, %v7237_v6, %v7238_v57  ;;  %v3033_v50 = vmax.f32 %v9922_v16, %v9945_v28  ;;  %v2792_v32 = vmax.f32 %v9468_v48, %v7223_v5 }
 0x299   : > { %v2980_v20 = vrot.slane %v2838_v43, 1  ;;  %v2837_v42 = vmax.f32 %v9482_v47, %v2742_v53  ;;  %v2719_v9 = vsel %vm2718_vm15, %v7222_v62, %v7223_v5  ;;  %v11769_v25 = vmax.f32 %v9766_v59, %v9808_v11 }
 0x29a   : > { %v11770_v18 = vmax.f32 %v9815_v63, %v9839_v38  ;;  %v7248_v40 = vunpack.i.h.bf16 %v7246_v60  ;;  %v3032_v14 = vmax.f32 %v9930_v23, %v9951_v4  ;;  %v2891_v0 = vrot.slane %v2792_v32, 1 }
 0x29b   : > { %v3100_v12 = vpack.c.bf16 %v11769_v25, %v3042_v33  ;;  %v2978_v52 = vrot.slane %v2837_v42, 1  ;;  %v2791_v47 = vmax.f32 %v9479_v8, %v2719_v9  ;;  %v7247_v13 = vunpack.i.l.bf16 %v7246_v60 }
 0x29c   : > { %v3099_v31 = vpack.c.bf16 %v11770_v18, %v3039_v56  ;;  %v9969_v48 = vmax.f32 %v9498_v22, %v7248_v40  ;;  %v7233_v16 = vunpack.i.h.bf16 %v7231_v36  ;;  %v7232_v59 = vunpack.i.l.bf16 %v7231_v36  ;;  %v7256_v56 = vpop.permute.xlu0 %7255 }
 0x29d   : > { %3233 = vmatpush1.bf16.msra.mxu1 %v3100_v12  ;;  %v3077_v11 = vmax.f32 %v2838_v43, %v2980_v20  ;;  %v2893_v33 = vsel %vm2887_vm0, %v2891_v0, %v2892_v26  ;;  %v2888_v63 = vrot.slane %v2791_v47, 1  ;;  %v3098_v38 = vpack.c.bf16 %v3040_v44, %v3038_v37  ;;  %v11771_v12 = vld [vmem:[#allocation34_spill] sm:$0xff] }
 0x29e   : > { %3234 = vmatprep.subr.bf16.mxu1 %v3099_v31  ;;  %v3076_v45 = vmax.f32 %v2837_v42, %v2978_v52  ;;  %v3031_v17 = vmax.f32 %v2792_v32, %v2893_v33  ;;  %v2740_v8 = vsel %vm2718_vm15, %v7247_v13, %v7248_v40  ;;  %v2836_v22 = vmax.f32 %v9501_v49, %v7233_v16 }
 0x29f   : > { %v2890_v23 = vsel %vm2887_vm0, %v2888_v63, %v2889_v21  ;;  %v9979_v36 = vmax.f32 %v9511_v61, %v2740_v8  ;;  %v2741_v41 = vsel %vm2718_vm15, %v7232_v59, %v7233_v16  ;;  %v3097_v46 = vpack.c.bf16 %v3037_v24, %v3035_v1  ;;  %v11773_v63 = vld [vmem:[#allocation35_spill] sm:$0xff] }
 0x2a0   : > { %v2972_v27 = vrot.slane %v9969_v48, 1  ;;  %v2976_v19 = vrot.slane %v2836_v22, 1  ;;  %v2835_v58 = vmax.f32 %v9514_v34, %v2741_v41  ;;  %v7258_v44 = vunpack.i.h.bf16 %v7256_v56 }
 0x2a1   : > { %3235 = vmatpush1.bf16.msra.mxu1 %v3098_v38  ;;  %v3030_v37 = vmax.f32 %v2791_v47, %v2890_v23  ;;  %v7257_v26 = vunpack.i.l.bf16 %v7256_v56  ;;  %v7243_v49 = vunpack.i.h.bf16 %v7241_v7  ;;  %v7242_v57 = vunpack.i.l.bf16 %v7241_v7  ;;  %v11774_v56 = vld [vmem:[#allocation65_spill] sm:$0xff] }
 0x2a2   : > { %3236 = vmatprep.subr.bf16.mxu1 %v3097_v46  ;;  %v2981_v6 = vsel %vm2887_vm0, %v2976_v19, %v2980_v20  ;;  %v2974_v10 = vrot.slane %v2835_v58, 1  ;;  %v9986_v61 = vmax.f32 %v9522_v55, %v7258_v44  ;;  %v3096_v21 = vpack.c.bf16 %v3036_v29, %v3034_v51  ;;  %v7261_v55 = vpop.permute.xlu1 %7260 }
 0x2a3   : > { %v2970_v24 = vrot.slane %v9979_v36, 1  ;;  %v2738_v5 = vsel %vm2718_vm15, %v7257_v26, %v7258_v44  ;;  %v2832_v34 = vmax.f32 %v9525_v35, %v7243_v49  ;;  %v2739_v62 = vsel %vm2718_vm15, %v7242_v57, %v7243_v49  ;;  %v11775_v57 = vld [vmem:[#allocation67_spill] sm:$0xff] }
 0x2a4   : > { %v3075_v54 = vmax.f32 %v2836_v22, %v2981_v6  ;;  %v2979_v28 = vsel %vm2887_vm0, %v2974_v10, %v2978_v52  ;;  %v9994_v43 = vmax.f32 %v9534_v30, %v2738_v5  ;;  %v2831_v60 = vmax.f32 %v9537_v3, %v2739_v62 }
 0x2a5   : > { %3237 = vmatpush1.bf16.msra.mxu1 %v3096_v21  ;;  %v2964_v29 = vrot.slane %v9986_v61, 1  ;;  %v2968_v1 = vrot.slane %v2832_v34, 1  ;;  %v7253_v51 = vunpack.i.h.bf16 %v7251_v15  ;;  %v7252_v4 = vunpack.i.l.bf16 %v7251_v15 }
 0x2a6   : > { %v3074_v53 = vmax.f32 %v2835_v58, %v2979_v28  ;;  %v2966_v7 = vrot.slane %v2831_v60, 1  ;;  %v3095_v35 = vpack.c.bf16 %v3033_v50, %v3031_v17  ;;  %v3094_v20 = vpack.c.bf16 %v3032_v14, %v3030_v37  ;;  %v11772_v50 = vld [vmem:[#allocation29_spill] sm:$0xff] }
 0x2a7   : > { %v2973_v42 = vsel %vm2887_vm0, %v2968_v1, %v2972_v27  ;;  %v2828_v32 = vmax.f32 %v9545_v39, %v7253_v51  ;;  %v2737_v30 = vsel %vm2718_vm15, %v7252_v4, %v7253_v51  ;;  %v7263_v9 = vunpack.i.h.bf16 %v7261_v55 }
 0x2a8   : > { %v2962_v3 = vrot.slane %v9994_v43, 1  ;;  %v3071_v25 = vmax.f32 %v2832_v34, %v2973_v42  ;;  %v2827_v18 = vmax.f32 %v11771_v12, %v2737_v30  ;;  %3238 = vmatprep.subr.bf16.mxu1 %v3095_v35  ;;  %v7262_v31 = vunpack.i.l.bf16 %v7261_v55  ;;  %v7420_v42 = vld [vmem:[%s11429_s4 + $0xb4] ss:$8 sps:$4 sm:$0xff]   ;;  %v7367_v30 = vld [vmem:[%s11429_s4 + $0x160] ss:$8 sps:$4 sm:$0xff]  }
 0x2a9   : > { %v2971_v40 = vsel %vm2887_vm0, %v2966_v7, %v2970_v24  ;;  %v2960_v52 = vrot.slane %v2828_v32, 1  ;;  %3239 = vmatpush1.bf16.msra.mxu1 %v3094_v20  ;;  %v2826_v14 = vmax.f32 %v11772_v50, %v7263_v9  ;;  %v3117_v0 = vpack.c.bf16 %v3077_v11, %v3075_v54  ;;  %v7334_v20 = vld [vmem:[%s11428_s3] ss:$8 sps:$4 sm:$0xff]   ;;  %v7381_v12 = vld [vmem:[%s11429_s4 + $0x144] ss:$8 sps:$4 sm:$0xff]  }
 0x2aa   : > { %v2958_v47 = vrot.slane %v2827_v18, 1  ;;  %v2736_v39 = vsel %vm2718_vm15, %v7262_v31, %v7263_v9  ;;  %v3116_v13 = vpack.c.bf16 %v3076_v45, %v3074_v53  ;;  %v2977_v16 = vsel %vm2887_vm0, %v2972_v27, %v2976_v19  ;;  %v7400_v27 = vld [vmem:[%s11429_s4 + $0xe0] ss:$8 sps:$4 sm:$0xff]   ;;  %v7402_v19 = vld [vmem:[%s11429_s4 + $0xe4] ss:$8 sps:$4 sm:$0xff]  }
 0x2ab   : > { %v2965_v59 = vsel %vm2887_vm0, %v2960_v52, %v2964_v29  ;;  %v2956_v33 = vrot.slane %v2826_v14, 1  ;;  %v2825_v38 = vmax.f32 %v11773_v63, %v2736_v39  ;;  %v3222_v17 = vand.u32 %v11774_v56, %v3117_v0  ;;  %v7406_v53 = vld [vmem:[%s11429_s4 + $0xd0] ss:$8 sps:$4 sm:$0xff]   ;;  %v7375_v9 = vld [vmem:[%s11429_s4 + $0x154] ss:$8 sps:$4 sm:$0xff]  }
 0x2ac   : > { %v3070_v8 = vmax.f32 %v2831_v60, %v2971_v40  ;;  %v3067_v22 = vmax.f32 %v2828_v32, %v2965_v59  ;;  %v3219_v15 = vand.u32 %v11774_v56, %v3116_v13  ;;  %v3073_v23 = vmax.f32 %v9969_v48, %v2977_v16  ;;  %v7408_v60 = vld [vmem:[%s11429_s4 + $0xd4] ss:$8 sps:$4 sm:$0xff]   ;;  %v7340_v31 = vld [vmem:[%s11428_s3 + $0x24] ss:$8 sps:$4 sm:$0xff]   ;;  %v7379_v40 = vld [vmem:[%s11429_s4 + $0x140] ss:$8 sps:$4 sm:$0xff]  }
 0x2ad   : > { %v2963_v11 = vsel %vm2887_vm0, %v2958_v47, %v2962_v3  ;;  %v2954_v41 = vrot.slane %v2825_v38, 1  ;;  %v2961_v45 = vsel %vm2887_vm0, %v2956_v33, %v2960_v52  ;;  %3248 = vmatprep.subr.bf16.mxu1 %v3222_v17  ;;  %v2975_v46 = vsel %vm2887_vm0, %v2970_v24, %v2974_v10  ;;  %v7337_v32 = vld [vmem:[%s11428_s3 + $0x14] ss:$8 sps:$4 sm:$0xff]   ;;  %v7385_v50 = vld [vmem:[%s11429_s4 + $0x130] ss:$8 sps:$4 sm:$0xff]  }
 0x2ae   : > { %3249 = vmatpush2.bf16.msra.mxu1 %v3219_v15  ;;  %v3115_v58 = vpack.c.bf16 %v3073_v23, %v3071_v25  ;;  %v3072_v48 = vmax.f32 %v9979_v36, %v2975_v46  ;;  %v2969_v44 = vsel %vm2887_vm0, %v2964_v29, %v2968_v1  ;;  %v3065_v37 = vmax.f32 %v2826_v14, %v2961_v45  ;;  %v7373_v25 = vld [vmem:[%s11429_s4 + $0x150] ss:$8 sps:$4 sm:$0xff]   ;;  %v7387_v52 = vld [vmem:[%s11429_s4 + $0x134] ss:$8 sps:$4 sm:$0xff]   ;;  %v7393_v14 = vld [vmem:[%s11429_s4 + $0x124] ss:$8 sps:$4 sm:$0xff]  }
 0x2af   : > { %v3069_v26 = vmax.f32 %v9986_v61, %v2969_v44  ;;  %v2967_v49 = vsel %vm2887_vm0, %v2962_v3, %v2966_v7  ;;  %v11776_v6 = vrot.slane %v11775_v57, 1  ;;  %v3066_v21 = vmax.f32 %v2827_v18, %v2963_v11  ;;  %v7414_v7 = vld [vmem:[%s11429_s4 + $0xc4] ss:$8 sps:$4 sm:$0xff]   ;;  %v7418_v3 = vld [vmem:[%s11429_s4 + $0xb0] ss:$8 sps:$4 sm:$0xff]  }
 0x2b0   : > { %v2959_v24 = vsel %vm2887_vm0, %v2954_v41, %v2958_v47  ;;  %3250 = vmatprep.subr.bf16.mxu1 %v3115_v58  ;;  %v3114_v5 = vpack.c.bf16 %v3072_v48, %v3070_v8  ;;  %v11777_v36 = vrot.slane %v9605_v2, 1  ;;  %v4066_v61 = vand.u32 %v7402_v19, %v11774_v56  ;;  %v7339_v18 = vld [vmem:[%s11428_s3 + $0x10] ss:$8 sps:$4 sm:$0xff]   ;;  %v7342_v0 = vld [vmem:[%s11428_s3 + $0x20] ss:$8 sps:$4 sm:$0xff]  }
 0x2b1   : > { %v2957_v10 = vsel %vm2887_vm0, %v11776_v6, %v2956_v33  ;;  %v3113_v62 = vpack.c.bf16 %v3069_v26, %v3067_v22  ;;  %v4063_v28 = vand.u32 %v7400_v27, %v11774_v56  ;;  %v3068_v55 = vmax.f32 %v9994_v43, %v2967_v49  ;;  %v7369_v43 = vld [vmem:[%s11429_s4 + $0x164] ss:$8 sps:$4 sm:$0xff]   ;;  %v7343_v47 = vld [vmem:[%s11428_s3 + $0x34] ss:$8 sps:$4 sm:$0xff]   ;;  %v7391_v39 = vld [vmem:[%s11429_s4 + $0x120] ss:$8 sps:$4 sm:$0xff]  }
 0x2b2   : > { %v3063_v34 = vmax.f32 %v11775_v57, %v2957_v10  ;;  %v2955_v54 = vsel %vm2887_vm0, %v11777_v36, %v2954_v41  ;;  %3251 = vmatpush2.bf16.msra.mxu1 %v3114_v5  ;;  %4086 = vmatprep.subr.bf16.mxu0 %v4066_v61  ;;  %v3064_v1 = vmax.f32 %v2825_v38, %v2959_v24  ;;  %v7399_v13 = vld [vmem:[%s11429_s4 + $0x114] ss:$8 sps:$4 sm:$0xff]   ;;  %v7397_v16 = vld [vmem:[%s11429_s4 + $0x110] ss:$8 sps:$4 sm:$0xff]   ;;  %v7405_v59 = vld [vmem:[%s11429_s4 + $0x104] ss:$8 sps:$4 sm:$0xff]  }
 0x2b3   : > { %3252 = vmatprep.subr.bf16.mxu1 %v3113_v62  ;;  %v3112_v51 = vpack.c.bf16 %v3068_v55, %v3066_v21  ;;  %v3062_v4 = vmax.f32 %v9605_v2, %v2955_v54  ;;  %4087 = vmatpush2.bf16.msra.mxu0 %v4063_v28  ;;  %v7412_v2 = vld [vmem:[%s11429_s4 + $0xc0] ss:$8 sps:$4 sm:$0xff]   ;;  %v7345_v33 = vld [vmem:[%s11428_s3 + $0x30] ss:$8 sps:$4 sm:$0xff]   ;;  %v7346_v63 = vld [vmem:[%s11428_s3 + $0x44] ss:$8 sps:$4 sm:$0xff]  }
 0x2b4   : > { %v3111_v29 = vpack.c.bf16 %v3065_v37, %v3063_v34  ;;  %4088 = vmatprep.subr.bf16.mxu0 %v7408_v60  ;;  %v7403_v38 = vld [vmem:[%s11429_s4 + $0x100] ss:$8 sps:$4 sm:$0xff]   ;;  %v7411_v17 = vld [vmem:[%s11429_s4 + $0xf4] ss:$8 sps:$4 sm:$0xff]   ;;  %v7409_v22 = vld [vmem:[%s11429_s4 + $0xf0] ss:$8 sps:$4 sm:$0xff]  }
 0x2b5   : > { %v3110_v35 = vpack.c.bf16 %v3064_v1, %v3062_v4  ;;  %v7417_v8 = vld [vmem:[%s11429_s4 + $0x1d4] ss:$8 sps:$4 sm:$0xff]   ;;  %v7415_v15 = vld [vmem:[%s11429_s4 + $0x1d0] ss:$8 sps:$4 sm:$0xff]   ;;  %v7348_v11 = vld [vmem:[%s11428_s3 + $0x40] ss:$8 sps:$4 sm:$0xff]  }
 0x2b6   : > { %3253 = vmatpush2.bf16.msra.mxu1 %v3112_v51  ;;  %v3815_v23 = vand.u32 %v7417_v8, %v11774_v56  ;;  %v7349_v41 = vld [vmem:[%s11428_s3 + $0x54] ss:$8 sps:$4 sm:$0xff]   ;;  %v3812_v45 = vand.u32 %v7415_v15, %v11774_v56  ;;  %v7351_v46 = vld [vmem:[%s11428_s3 + $0x50] ss:$8 sps:$4 sm:$0xff]   ;;  %v7352_v27 = vld [vmem:[%s11428_s3 + $0x64] ss:$8 sps:$4 sm:$0xff]  }
 0x2b7   : > { %3254 = vmatprep.subr.bf16.mxu1 %v3111_v29  ;;  %4089 = vmatpush2.bf16.msra.mxu0 %v7406_v53  ;;  %v7354_v19 = vld [vmem:[%s11428_s3 + $0x60] ss:$8 sps:$4 sm:$0xff]   ;;  %v7355_v58 = vld [vmem:[%s11428_s3 + $0x74] ss:$8 sps:$4 sm:$0xff]   ;;  %v7357_v48 = vld [vmem:[%s11428_s3 + $0x70] ss:$8 sps:$4 sm:$0xff]  }
 0x2b8   : > { %4090 = vmatprep.subr.bf16.mxu0 %v7414_v7  ;;  %v7423_v44 = vld [vmem:[%s11429_s4 + $0x1c4] ss:$8 sps:$4 sm:$0xff]   ;;  %v7421_v37 = vld [vmem:[%s11429_s4 + $0x1c0] ss:$8 sps:$4 sm:$0xff]   ;;  %v7429_v57 = vld [vmem:[%s11429_s4 + $0x1b4] ss:$8 sps:$4 sm:$0xff]  }
 0x2b9   : > { %v7426_v26 = vld [vmem:[%s11429_s4 + $0xa4] ss:$8 sps:$4 sm:$0xff]   ;;  %v7424_v49 = vld [vmem:[%s11429_s4 + $0xa0] ss:$8 sps:$4 sm:$0xff]   ;;  %v7427_v6 = vld [vmem:[%s11429_s4 + $0x1b0] ss:$8 sps:$4 sm:$0xff]  }
 0x2ba   : > { %3255 = vmatpush2.bf16.msra.mxu1 %v3110_v35  ;;  %v7432_v10 = vld [vmem:[%s11429_s4 + $0x94] ss:$8 sps:$4 sm:$0xff]   ;;  %v7430_v21 = vld [vmem:[%s11429_s4 + $0x90] ss:$8 sps:$4 sm:$0xff]   ;;  %v7435_v24 = vld [vmem:[%s11429_s4 + $0x1a4] ss:$8 sps:$4 sm:$0xff]  }
 0x2bb   : > { %3817 = vmatprep.subr.bf16.mxu1 %v7369_v43  ;;  %4091 = vmatpush2.bf16.msra.mxu0 %v7412_v2  ;;  %v7433_v5 = vld [vmem:[%s11429_s4 + $0x1a0] ss:$8 sps:$4 sm:$0xff]   ;;  %v7438_v34 = vld [vmem:[%s11429_s4 + $0x84] ss:$8 sps:$4 sm:$0xff]   ;;  %v7441_v36 = vld [vmem:[%s11429_s4 + $0x194] ss:$8 sps:$4 sm:$0xff]  }
 0x2bc   : > { %4092 = vmatprep.subr.bf16.mxu0 %v7420_v42  ;;  %v7436_v62 = vld [vmem:[%s11429_s4 + $0x80] ss:$8 sps:$4 sm:$0xff]   ;;  %v7439_v54 = vld [vmem:[%s11429_s4 + $0x190] ss:$8 sps:$4 sm:$0xff]   ;;  %v7444_v61 = vld [vmem:[%s11429_s4 + $0x344] ss:$8 sps:$4 sm:$0xff]  }
 0x2bd   : > { %3257 = vmatmul.mubr.bf16.vlgmr.msra.gmra.mxu1 %v7334_v20  ;;  %v7447_v28 = vld [vmem:[%s11429_s4 + $0x184] ss:$8 sps:$4 sm:$0xff]   ;;  %v7445_v60 = vld [vmem:[%s11429_s4 + $0x180] ss:$8 sps:$4 sm:$0xff]   ;;  %v7453_v55 = vld [vmem:[%s11429_s4 + $0x174] ss:$8 sps:$4 sm:$0xff]  }
 0x2be   : > { %6487 = vmatprep.mubr.msk.bf16.mxu1 %vm3190_vm14, %v7337_v32  ;;  %3818 = vmatpush1.bf16.msra.mxu1 %v7367_v30  ;;  %v7451_v29 = vld [vmem:[%s11429_s4 + $0x170] ss:$8 sps:$4 sm:$0xff]   ;;  %v7459_v1 = vld [vmem:[%s11429_s4 + $0x254] ss:$8 sps:$4 sm:$0xff]  }
 0x2bf   : > { %3819 = vmatprep.subr.bf16.mxu1 %v7375_v9  ;;  %4093 = vmatpush2.bf16.msra.mxu0 %v7418_v3 }
 0x2c0   : > { %4094 = vmatprep.subr.bf16.mxu0 %v7426_v26 }
 0x2c2   : > { %3820 = vmatpush1.bf16.msra.mxu1 %v7373_v25 }
 0x2c3   : > { %3821 = vmatprep.subr.bf16.mxu1 %v7381_v12  ;;  %4095 = vmatpush2.bf16.msra.mxu0 %v7424_v49 }
 0x2c4   : > { %4096 = vmatprep.subr.bf16.mxu0 %v7432_v10  ;;  %v7454_v10 = vld [vmem:[%s11429_s4 + $0x320] ss:$8 sps:$4 sm:$0xff]  }
 0x2c5   : > { %3267 = vmatmul.mubr.bf16.gmra.mxu1 %v7339_v18 }
 0x2c6   : > { %6488 = vmatprep.mubr.msk.bf16.mxu1 %vm3190_vm14, %v7340_v31  ;;  %3822 = vmatpush1.bf16.msra.mxu1 %v7379_v40 }
 0x2c7   : > { %3823 = vmatprep.subr.bf16.mxu1 %v7387_v52  ;;  %4097 = vmatpush2.bf16.msra.mxu0 %v7430_v21 }
 0x2c8   : > { %4098 = vmatprep.subr.bf16.mxu0 %v7438_v34 }
 0x2ca   : > { %3824 = vmatpush1.bf16.msra.mxu1 %v7385_v50 }
 0x2cb   : > { %3825 = vmatprep.subr.bf16.mxu1 %v7393_v14  ;;  %4099 = vmatpush2.bf16.msra.mxu0 %v7436_v62  ;;  %v7462_v62 = vld [vmem:[%s11429_s4 + $0x314] ss:$8 sps:$4 sm:$0xff]  }
 0x2cc   : > { %4792 = vmatprep.subr.bf16.mxu0 %v7444_v61 }
 0x2cd   : > { %3277 = vmatmul.mubr.bf16.gmra.mxu1 %v7342_v0  ;;  %v7442_v0 = vld [vmem:[%s11429_s4 + $0x340] ss:$8 sps:$4 sm:$0xff]  }
 0x2ce   : > { %6489 = vmatprep.mubr.msk.bf16.mxu1 %vm3190_vm14, %v7343_v47  ;;  %3826 = vmatpush1.bf16.msra.mxu1 %v7391_v39 }
 0x2cf   : > { %3827 = vmatprep.subr.bf16.mxu1 %v7399_v13  ;;  %v7450_v13 = vld [vmem:[%s11429_s4 + $0x334] ss:$8 sps:$4 sm:$0xff]  }
 0x2d2   : > { %3828 = vmatpush1.bf16.msra.mxu1 %v7397_v16 }
 0x2d3   : > { %3829 = vmatprep.subr.bf16.mxu1 %v7405_v59 }
 0x2d5   : > { %3287 = vmatmul.mubr.bf16.gmra.mxu1 %v7345_v33 }
 0x2d6   : > { %6490 = vmatprep.mubr.msk.bf16.mxu1 %vm3190_vm14, %v7346_v63  ;;  %3830 = vmatpush1.bf16.msra.mxu1 %v7403_v38 }
 0x2d7   : > { %3831 = vmatprep.subr.bf16.mxu1 %v7411_v17 }
 0x2da   : > { %3832 = vmatpush1.bf16.msra.mxu1 %v7409_v22 }
 0x2db   : > { %3835 = vmatprep.subr.bf16.mxu1 %v3815_v23 }
 0x2dd   : > { %3297 = vmatmul.mubr.bf16.gmra.mxu1 %v7348_v11  ;;  %v7448_v11 = vld [vmem:[%s11429_s4 + $0x330] ss:$8 sps:$4 sm:$0xff]  }
 0x2de   : > { %6491 = vmatprep.mubr.msk.bf16.mxu1 %vm3190_vm14, %v7349_v41  ;;  %3836 = vmatpush2.bf16.msra.mxu1 %v3812_v45 }
 0x2df   : > { %3837 = vmatprep.subr.bf16.mxu1 %v7423_v44  ;;  %v7537_v44 = vld [vmem:[%s11429_s4 + $0x264] ss:$8 sps:$4 sm:$0xff]  }
 0x2e2   : > { %3838 = vmatpush2.bf16.msra.mxu1 %v7421_v37 }
 0x2e3   : > { %3839 = vmatprep.subr.bf16.mxu1 %v7429_v57 }
 0x2e5   : > { %3307 = vmatmul.mubr.bf16.gmra.mxu1 %v7351_v46 }
 0x2e6   : > { %6492 = vmatprep.mubr.msk.bf16.mxu1 %vm3190_vm14, %v7352_v27  ;;  %3840 = vmatpush2.bf16.msra.mxu1 %v7427_v6 }
 0x2e7   : > { %3841 = vmatprep.subr.bf16.mxu1 %v7435_v24 }
 0x2ea   : > { %3842 = vmatpush2.bf16.msra.mxu1 %v7433_v5 }
 0x2eb   : > { %3843 = vmatprep.subr.bf16.mxu1 %v7441_v36 }
 0x2ed   : > { %3317 = vmatmul.mubr.bf16.gmra.mxu1 %v7354_v19  ;;  %v7456_v19 = vld [vmem:[%s11429_s4 + $0x324] ss:$8 sps:$4 sm:$0xff]  }
 0x2ee   : > { %6493 = vmatprep.mubr.msk.bf16.mxu1 %vm3190_vm14, %v7355_v58  ;;  %3844 = vmatpush2.bf16.msra.mxu1 %v7439_v54 }
 0x2ef   : > { %3845 = vmatprep.subr.bf16.mxu1 %v7447_v28 }
 0x2f2   : > { %3846 = vmatpush2.bf16.msra.mxu1 %v7445_v60 }
 0x2f3   : > { %3847 = vmatprep.subr.bf16.mxu1 %v7453_v55 }
 0x2f5   : > { %3327 = vmatmul.mubr.bf16.gmra.mxu1 %v7357_v48 }
 0x2f6   : > { %3848 = vmatpush2.bf16.msra.mxu1 %v7451_v29 }
 0x2f7   : > { %4398 = vmatprep.subr.bf16.mxu1 %v7459_v1  ;;  %v7460_v1 = vld [vmem:[%s11429_s4 + $0x310] ss:$8 sps:$4 sm:$0xff]  }
 0x37d   : > { %v3258_v51 = vpop.f32.mrf.mxu1 }
 0x37e   : > { %v3337_v53 = vmax.f32 %v3258_v51, 0.0 }
 0x37f   : > { %v3260_v4 = vpop.f32.mrf.mxu1 }
 0x380   : > { %v3338_v7 = vmax.f32 %v3260_v4, 0.0 }
 0x381   : > { %v3262_v43 = vpop.f32.mrf.mxu1 }
 0x382   : > { %v10223_v35 = vpack.c.bf16 %v3338_v7, %v3337_v53  ;;  %v3339_v9 = vmax.f32 %v3262_v43, 0.0  ;;  %v7457_v43 = vld [vmem:[%s11429_s4 + $0x250] ss:$8 sps:$4 sm:$0xff]  }
 0x383   : > { %v3264_v2 = vpop.f32.mrf.mxu1 }
 0x384   : > { %v3340_v20 = vmax.f32 %v3264_v2, 0.0  ;;  %v3480_v32 = vshrl.u32 %v10223_v35, 16  ;;  %v3483_v30 = vshll.u32 %v10223_v35, 16  ;;  %v6776_v63 = vrot.slane %v10223_v35, 10  ;;  %v7468_v2 = vld [vmem:[%s11429_s4 + $0x304] ss:$8 sps:$4 sm:$0xff]  }
 0x385   : > { %v3268_v42 = vpop.f32.mrf.mxu1 }
 0x386   : > { %v3341_v3 = vmax.f32 %v3268_v42, 0.0  ;;  %v10227_v12 = vpack.c.bf16 %v3340_v20, %v3339_v9  ;;  %v3482_v40 = vrot.slane %v3480_v32, 4  ;;  %v3485_v52 = vrot.slane %v3483_v30, 5  ;;  %v7465_v9 = vld [vmem:[%s11429_s4 + $0x244] ss:$8 sps:$4 sm:$0xff]  }
 0x387   : > { %v3270_v25 = vpop.f32.mrf.mxu1 }
 0x388   : > { %v3342_v18 = vmax.f32 %v3270_v25, 0.0  ;;  %v6952_v47 = vpack.c.bf16 %v3341_v3, %v3337_v53  ;;  %v4883_v16 = vrot.slane %v10227_v12, 6  ;;  %v3489_v22 = vshll.u32 %v10227_v12, 16 }
 0x389   : > { %v3272_v31 = vpop.f32.mrf.mxu1  ;;  %v3486_v41 = vor.u32 %v3485_v52, %v3482_v40 }
 0x38a   : > { %v10233_v50 = vpack.c.bf16 %v3342_v18, %v3341_v3  ;;  %v6953_v14 = vpack.c.bf16 %v3342_v18, %v3338_v7  ;;  %v3343_v38 = vmax.f32 %v3272_v31, 0.0  ;;  %v10261_v37 = vsel %vm8725_vm13, %v6776_v63, %v4883_v16  ;;  %v10315_v16 = vld [vmem:[%s11429_s4 + $0x3b4] ss:$8 sps:$4 sm:$0xff]  }
 0x38b   : > { %v3274_v39 = vpop.f32.mrf.mxu1  ;;  %v3491_v57 = vrot.slane %v3489_v22, 5  ;;  %v3487_v21 = vrot.slane %v3486_v41, 4  ;;  %v10333_v41 = vld [vmem:[%s11429_s4 + $0x2c0] ss:$8 sps:$4 sm:$0xff]  }
 0x38c   : > { %v3494_v59 = vshrl.u32 %v10233_v50, 16  ;;  %v3497_v33 = vshll.u32 %v10233_v50, 16  ;;  %6620 = vmatprep.mubr.msk.bf16.mxu0 %vm3798_vm3, %v6953_v14  ;;  %v3344_v17 = vmax.f32 %v3274_v39, 0.0  ;;  %v7466_v14 = vld [vmem:[%s11429_s4 + $0x300] ss:$8 sps:$4 sm:$0xff]  }
 0x38d   : > { %v3278_v8 = vpop.f32.mrf.mxu1  ;;  %4101 = vmatmul.mubr.bf16.vlgmr.msra.gmra.mxu0 %v6952_v47  ;;  %v3492_v29 = vsel %vm7886_vm4, %v3487_v21, %v3491_v57  ;;  %v7463_v39 = vld [vmem:[%s11429_s4 + $0x240] ss:$8 sps:$4 sm:$0xff]   ;;  %v4491_v57 = vshrl.u32 %v10227_v12, 16 }
 0x38e   : > { %v3496_v15 = vrot.slane %v3494_v59, 4  ;;  %v3499_v23 = vrot.slane %v3497_v33, 5  ;;  %4793 = vmatpush1.bf16.msra.mxu0 %v7442_v0  ;;  %v10254_v45 = vpack.c.bf16 %v3344_v17, %v3343_v38  ;;  %v3345_v46 = vmax.f32 %v3278_v8, 0.0  ;;  %v7471_v17 = vld [vmem:[%s11429_s4 + $0x234] ss:$8 sps:$4 sm:$0xff]  }
 0x38f   : > { %v3280_v27 = vpop.f32.mrf.mxu1  ;;  %4794 = vmatprep.subr.bf16.mxu0 %v7450_v13  ;;  %v7474_v13 = vld [vmem:[%s11429_s4 + $0x2f4] ss:$8 sps:$4 sm:$0xff]   ;;  %v10326_v8 = vld [vmem:[%s11429_s4 + $0x3b0] ss:$8 sps:$4 sm:$0xff]  }
 0x390   : > { %v3346_v58 = vmax.f32 %v3280_v27, 0.0  ;;  %v3500_v48 = vor.u32 %v3499_v23, %v3496_v15  ;;  %v3503_v26 = vshll.u32 %v10254_v45, 16 }
 0x391   : > { %v3282_v49 = vpop.f32.mrf.mxu1 }
 0x392   : > { %v10266_v6 = vpack.c.bf16 %v3346_v58, %v3345_v46  ;;  %4795 = vmatpush1.bf16.msra.mxu0 %v7448_v11  ;;  %v3501_v24 = vrot.slane %v3500_v48, 4  ;;  %v3505_v5 = vrot.slane %v3503_v26, 5  ;;  %v3347_v20 = vmax.f32 %v3282_v49, 0.0  ;;  %v7472_v48 = vld [vmem:[%s11429_s4 + $0x2f0] ss:$8 sps:$4 sm:$0xff]  }
 0x393   : > { %v3284_v34 = vpop.f32.mrf.mxu1  ;;  %4796 = vmatprep.subr.bf16.mxu0 %v7456_v19 }
 0x394   : > { %v3508_v36 = vshrl.u32 %v10266_v6, 16  ;;  %v3506_v28 = vsel %vm7886_vm4, %v3501_v24, %v3505_v5  ;;  %v3511_v60 = vshll.u32 %v10266_v6, 16  ;;  %v3348_v55 = vmax.f32 %v3284_v34, 0.0  ;;  %v7469_v5 = vld [vmem:[%s11429_s4 + $0x230] ss:$8 sps:$4 sm:$0xff]  }
 0x395   : > { %v3288_v54 = vpop.f32.mrf.mxu1  ;;  %v6540_v53 = vcombine.low %v3492_v29, %v3506_v28  ;;  %v6541_v7 = vcombine.high %v3492_v29, %v3506_v28  ;;  %v7480_v34 = vld [vmem:[%s11429_s4 + $0x2e4] ss:$8 sps:$4 sm:$0xff]   ;;  %v4488_v28 = vrot.slane %v3483_v30, 6  ;;  %v11784_v61 = vrot.slane %v10266_v6, 10 }
 0x396   : > { %4797 = vmatpush1.bf16.msra.mxu0 %v7454_v10  ;;  %v3349_v51 = vmax.f32 %v3288_v54, 0.0  ;;  %v3510_v3 = vrot.slane %v3508_v36, 4  ;;  %v3513_v18 = vrot.slane %v3511_v60, 5  ;;  %v10299_v31 = vpack.c.bf16 %v3348_v55, %v3347_v20  ;;  %v7477_v29 = vld [vmem:[%s11429_s4 + $0x224] ss:$8 sps:$4 sm:$0xff]  }
 0x397   : > { %v3290_v4 = vpop.f32.mrf.mxu1  ;;  %4798 = vmatprep.subr.bf16.mxu0 %v7462_v62  ;;  %6578 = vmatprep.mubr.msk.bf16.mxu1 %vm3798_vm3, %v6541_v7  ;;  %v4790_v62 = vand.u32 %v10315_v16, %v11774_v56  ;;  %v4487_v54 = vrot.slane %v3480_v32, 5  ;;  %v4787_v32 = vand.u32 %v10326_v8, %v11774_v56  ;;  %v4393_v7 = vand.u32 %v10333_v41, %v11774_v56  ;;  %v7478_v20 = vld [vmem:[%s11429_s4 + $0x2e0] ss:$8 sps:$4 sm:$0xff]   ;;  %v7495_v16 = vld [vmem:[%s11429_s4 + $0x1f4] ss:$8 sps:$4 sm:$0xff]  }
 0x398   : > { %v3350_v42 = vmax.f32 %v3290_v4, 0.0  ;;  %3850 = vmatmul.mubr.bf16.vlgmr.msra.gmra.mxu1 %v6540_v53  ;;  %v6954_v0 = vpack.c.bf16 %v3349_v51, %v3345_v46  ;;  %v10338_v46 = vld [vmem:[%s11429_s4 + $0x2c4] ss:$8 sps:$4 sm:$0xff]   ;;  %v3517_v27 = vshll.u32 %v10299_v31, 16  ;;  %v3514_v49 = vor.u32 %v3513_v18, %v3510_v3  ;;  %v7475_v53 = vld [vmem:[%s11429_s4 + $0x220] ss:$8 sps:$4 sm:$0xff]  }
 0x399   : > { %v3292_v25 = vpop.f32.mrf.mxu1  ;;  %4399 = vmatpush1.bf16.msra.mxu1 %v7457_v43  ;;  %v4396_v30 = vand.u32 %v10338_v46, %v11774_v56  ;;  %v6624_v3 = vrot.slane %v10223_v35, 9  ;;  %v4494_v18 = vrot.slane %v3489_v22, 6  ;;  %v4498_v35 = vrot.slane %v3497_v33, 6  ;;  %v7483_v22 = vld [vmem:[%s11429_s4 + $0x214] ss:$8 sps:$4 sm:$0xff]  }
 0x39a   : > { %v10301_v40 = vpack.c.bf16 %v3350_v42, %v3349_v51  ;;  %v6955_v52 = vpack.c.bf16 %v3350_v42, %v3346_v58  ;;  %4799 = vmatpush1.bf16.msra.mxu0 %v7460_v1  ;;  %4400 = vmatprep.subr.bf16.mxu1 %v7465_v9  ;;  %v3351_v15 = vmax.f32 %v3292_v25, 0.0  ;;  %v3519_v43 = vrot.slane %v3517_v27, 5  ;;  %v7504_v8 = vld [vmem:[%s11429_s4 + $0x394] ss:$8 sps:$4 sm:$0xff]   ;;  %v7519_v41 = vld [vmem:[%s11429_s4 + $0x2a4] ss:$8 sps:$4 sm:$0xff]  }
 0x39b   : > { %v3294_v47 = vpop.f32.mrf.mxu1  ;;  %4800 = vmatprep.subr.bf16.mxu0 %v7468_v2  ;;  %v3515_v42 = vrot.slane %v3514_v49, 4  ;;  %v4493_v25 = vrot.slane %v4491_v57, 5 }
 0x39c   : > { %v3522_v63 = vshrl.u32 %v10301_v40, 16  ;;  %v3525_v38 = vshll.u32 %v10301_v40, 16  ;;  %6621 = vmatprep.mubr.msk.bf16.mxu0 %vm3798_vm3, %v6955_v52  ;;  %v3352_v23 = vmax.f32 %v3294_v47, 0.0  ;;  %v4143_v47 = vrot.slane %v10227_v12, 5 }
 0x39d   : > { %v10328_v11 = vpop.f32.mrf.mxu1  ;;  %4111 = vmatmul.mubr.bf16.gmra.mxu0 %v6954_v0  ;;  %4401 = vmatpush1.bf16.msra.mxu1 %v7463_v39  ;;  %v7486_v0 = vld [vmem:[%s11429_s4 + $0x2d4] ss:$8 sps:$4 sm:$0xff]   ;;  %v4497_v39 = vrot.slane %v3494_v59, 5  ;;  %v3520_v49 = vsel %vm7886_vm4, %v3515_v42, %v3519_v43  ;;  %v7489_v43 = vld [vmem:[%s11429_s4 + $0x204] ss:$8 sps:$4 sm:$0xff]  }
 0x39e   : > { %v3524_v19 = vrot.slane %v3522_v63, 4  ;;  %v3527_v58 = vrot.slane %v3525_v38, 5  ;;  %4801 = vmatpush1.bf16.msra.mxu0 %v7466_v14  ;;  %v10349_v10 = vpack.c.bf16 %v3352_v23, %v3351_v15  ;;  %v3353_v21 = vmax.f32 %v10328_v11, 0.0  ;;  %4402 = vmatprep.subr.bf16.mxu1 %v7471_v17  ;;  %v7556_v11 = vld [vmem:[%s11429_s4 + $0x3d0] ss:$8 sps:$4 sm:$0xff]  }
 0x39f   : > { %v10352_v24 = vpop.f32.mrf.mxu1  ;;  %4802 = vmatprep.subr.bf16.mxu0 %v7474_v13  ;;  %v4489_v13 = vor.u32 %v4488_v28, %v4487_v54  ;;  %v6625_v17 = vrot.slane %v10233_v50, 9  ;;  %v4501_v15 = vshrl.u32 %v10254_v45, 16 }
 0x3a0   : > { %v3354_v55 = vmax.f32 %v10352_v24, 0.0  ;;  %v3528_v1 = vor.u32 %v3527_v58, %v3524_v19  ;;  %v3531_v51 = vshll.u32 %v10349_v10, 16  ;;  %v7498_v24 = vld [vmem:[%s11429_s4 + $0x3a4] ss:$8 sps:$4 sm:$0xff]  }
 0x3a1   : > { %v3302_v4 = vpop.f32.mrf.mxu1  ;;  %4403 = vmatpush1.bf16.msra.mxu1 %v7469_v5  ;;  %v4503_v42 = vrot.slane %v4501_v15, 5 }
 0x3a2   : > { %v10386_v2 = vpack.c.bf16 %v3354_v55, %v3353_v21  ;;  %4803 = vmatpush1.bf16.msra.mxu0 %v7472_v48  ;;  %v3529_v9 = vrot.slane %v3528_v1, 4  ;;  %v3533_v52 = vrot.slane %v3531_v51, 5  ;;  %4404 = vmatprep.subr.bf16.mxu1 %v7477_v29  ;;  %v7484_v48 = vld [vmem:[%s11429_s4 + $0x2d0] ss:$8 sps:$4 sm:$0xff]   ;;  %v4495_v29 = vor.u32 %v4494_v18, %v4493_v25 }
 0x3a3   : > { %v3304_v14 = vpop.f32.mrf.mxu1  ;;  %4804 = vmatprep.subr.bf16.mxu0 %v7480_v34  ;;  %v7481_v34 = vld [vmem:[%s11429_s4 + $0x210] ss:$8 sps:$4 sm:$0xff]   ;;  %v4147_v1 = vrot.slane %v10254_v45, 5  ;;  %v4490_v25 = vrot.slane %v4489_v13, 4  ;;  %v7487_v13 = vld [vmem:[%s11429_s4 + $0x200] ss:$8 sps:$4 sm:$0xff]  }
 0x3a4   : > { %v3536_v23 = vshrl.u32 %v10386_v2, 16  ;;  %v3534_v12 = vsel %vm7886_vm4, %v3529_v9, %v3533_v52  ;;  %v3539_v33 = vshll.u32 %v10386_v2, 16  ;;  %v3356_v58 = vmax.f32 %v3304_v14, 0.0 }
 0x3a5   : > { %v3308_v19 = vpop.f32.mrf.mxu1  ;;  %4405 = vmatpush1.bf16.msra.mxu1 %v7475_v53  ;;  %v6543_v54 = vcombine.high %v3520_v49, %v3534_v12  ;;  %v6542_v28 = vcombine.low %v3520_v49, %v3534_v12  ;;  %v4499_v53 = vor.u32 %v4498_v35, %v4497_v39  ;;  %v4504_v52 = vrot.slane %v3503_v26, 6 }
 0x3a6   : > { %4805 = vmatpush1.bf16.msra.mxu0 %v7478_v20  ;;  %v3357_v57 = vmax.f32 %v3308_v19, 0.0  ;;  %v3355_v20 = vmax.f32 %v3302_v4, 0.0  ;;  %4406 = vmatprep.subr.bf16.mxu1 %v7483_v22  ;;  %v10430_v14 = vrot.slane %v3536_v23, 4  ;;  %v3541_v4 = vrot.slane %v3539_v33, 5 }
 0x3a7   : > { %v3310_v5 = vpop.f32.mrf.mxu1  ;;  %4806 = vmatprep.subr.bf16.mxu0 %v7486_v0  ;;  %6579 = vmatprep.mubr.msk.bf16.mxu1 %vm3798_vm3, %v6543_v54  ;;  %v4887_v26 = vrot.slane %v10254_v45, 6  ;;  %v10455_v19 = vsel %vm8292_vm7, %v4490_v25, %v4495_v29  ;;  %v7496_v29 = vld [vmem:[%s11429_s4 + $0x3a0] ss:$8 sps:$4 sm:$0xff]   ;;  %v10509_v25 = vrot.slane %v3508_v36, 5 }
 0x3a8   : > { %v3358_v9 = vmax.f32 %v3310_v5, 0.0  ;;  %v10435_v18 = vpack.c.bf16 %v3356_v58, %v3355_v20  ;;  %3860 = vmatmul.mubr.bf16.gmra.mxu1 %v6542_v28  ;;  %v6956_v35 = vpack.c.bf16 %v3357_v57, %v3353_v21  ;;  %v10459_v21 = vsel %vm8453_vm10, %v6624_v3, %v4143_v47  ;;  %v7493_v5 = vld [vmem:[%s11429_s4 + $0x1f0] ss:$8 sps:$4 sm:$0xff]  }
 0x3a9   : > { %v3312_v0 = vpop.f32.mrf.mxu1  ;;  %4407 = vmatpush1.bf16.msra.mxu1 %v7481_v34  ;;  %v4505_v34 = vor.u32 %v4504_v52, %v4503_v42  ;;  %v4511_v20 = vshrl.u32 %v10299_v31, 16  ;;  %v4521_v52 = vshrl.u32 %v10349_v10, 16 }
 0x3aa   : > { %v10437_v22 = vpack.c.bf16 %v3358_v9, %v3357_v57  ;;  %v6957_v39 = vpack.c.bf16 %v3358_v9, %v3354_v55  ;;  %4807 = vmatpush1.bf16.msra.mxu0 %v7484_v48  ;;  %4408 = vmatprep.subr.bf16.mxu1 %v7489_v43  ;;  %v10469_v48 = vsel %vm8453_vm10, %v6625_v17, %v4147_v1  ;;  %v3359_v3 = vmax.f32 %v3312_v0, 0.0 }
 0x3ab   : > { %v3314_v15 = vpop.f32.mrf.mxu1  ;;  %4810 = vmatprep.subr.bf16.mxu0 %v4790_v62  ;;  %v4500_v62 = vrot.slane %v4499_v53, 4  ;;  %v3545_v54 = vshll.u32 %v10435_v18, 16  ;;  %v3542_v1 = vor.u32 %v3541_v4, %v10430_v14  ;;  %v4517_v9 = vrot.slane %v3522_v63, 5  ;;  %v7501_v63 = vld [vmem:[%s11429_s4 + $0x1e4] ss:$8 sps:$4 sm:$0xff]  }
 0x3ac   : > { %v3550_v12 = vshrl.u32 %v10437_v22, 16  ;;  %v3553_v58 = vshll.u32 %v10437_v22, 16  ;;  %6622 = vmatprep.mubr.msk.bf16.mxu0 %vm3798_vm3, %v6957_v39  ;;  %v3360_v47 = vmax.f32 %v3314_v15, 0.0  ;;  %v10513_v4 = vrot.slane %v3511_v60, 6  ;;  %v7502_v60 = vld [vmem:[%s11429_s4 + $0x390] ss:$8 sps:$4 sm:$0xff]  }
 0x3ad   : > { %v10472_v57 = vpop.f32.mrf.mxu1  ;;  %4121 = vmatmul.mubr.bf16.gmra.mxu0 %v6956_v35  ;;  %4409 = vmatpush1.bf16.msra.mxu1 %v7487_v13  ;;  %v7499_v35 = vld [vmem:[%s11429_s4 + $0x1e0] ss:$8 sps:$4 sm:$0xff]   ;;  %v10521_v15 = vsel %vm8292_vm7, %v4500_v62, %v4505_v34  ;;  %v3547_v13 = vrot.slane %v3545_v54, 5 }
 0x3ae   : > { %v3552_v28 = vrot.slane %v3550_v12, 4  ;;  %v3555_v17 = vrot.slane %v3553_v58, 5  ;;  %4811 = vmatpush2.bf16.msra.mxu0 %v4787_v32  ;;  %v10492_v43 = vpack.c.bf16 %v3360_v47, %v3359_v3  ;;  %v3361_v53 = vmax.f32 %v10472_v57, 0.0  ;;  %4410 = vmatprep.subr.bf16.mxu1 %v7495_v16 }
 0x3af   : > { %v10495_v42 = vpop.f32.mrf.mxu1  ;;  %4812 = vmatprep.subr.bf16.mxu0 %v7498_v24  ;;  %v4518_v32 = vrot.slane %v3525_v38, 6  ;;  %v3543_v24 = vrot.slane %v3542_v1, 4  ;;  %v10534_v3 = vrot.slane %v4511_v20, 5  ;;  %v10548_v1 = vrot.slane %v4521_v52, 5  ;;  %v7508_v52 = vld [vmem:[%s11429_s4 + $0x380] ss:$8 sps:$4 sm:$0xff]  }
 0x3b0   : > { %v3362_v14 = vmax.f32 %v10495_v42, 0.0  ;;  %v3556_v0 = vor.u32 %v3555_v17, %v3552_v28  ;;  %v3559_v38 = vshll.u32 %v10492_v43, 16  ;;  %v7510_v28 = vld [vmem:[%s11429_s4 + $0x384] ss:$8 sps:$4 sm:$0xff]   ;;  %v10552_v20 = vrot.slane %v3531_v51, 6 }
 0x3b1   : > { %v3322_v39 = vpop.f32.mrf.mxu1  ;;  %4411 = vmatpush1.bf16.msra.mxu1 %v7493_v5  ;;  %v4519_v5 = vor.u32 %v4518_v32, %v4517_v9  ;;  %v6734_v51 = vcombine.low %v10455_v19, %v10521_v15  ;;  %v3548_v9 = vsel %vm7886_vm4, %v3543_v24, %v3547_v13  ;;  %v4509_v32 = vor.u32 %v10513_v4, %v10509_v25  ;;  %v7513_v25 = vld [vmem:[%s11429_s4 + $0x2b4] ss:$8 sps:$4 sm:$0xff]   ;;  %v7522_v42 = vld [vmem:[%s11429_s4 + $0x364] ss:$8 sps:$4 sm:$0xff]  }
 0x3b2   : > { %v10529_v36 = vpack.c.bf16 %v3362_v14, %v3361_v53  ;;  %4813 = vmatpush2.bf16.msra.mxu0 %v7496_v29  ;;  %v3557_v16 = vrot.slane %v3556_v0, 4  ;;  %v3561_v47 = vrot.slane %v3559_v38, 5  ;;  %v10546_v29 = vrot.slane %v3517_v27, 6  ;;  %4412 = vmatprep.subr.bf16.mxu1 %v7501_v63 }
 0x3b3   : > { %v3324_v34 = vpop.f32.mrf.mxu1  ;;  %4814 = vmatprep.subr.bf16.mxu0 %v7504_v8  ;;  %v3363_v63 = vmax.f32 %v3322_v39, 0.0  ;;  %v6735_v4 = vcombine.high %v10455_v19, %v10521_v15 }
 0x3b4   : > { %v3564_v8 = vshrl.u32 %v10529_v36, 16  ;;  %v3567_v0 = vshll.u32 %v10529_v36, 16  ;;  %v3364_v49 = vmax.f32 %v3324_v34, 0.0  ;;  %v3562_v17 = vsel %vm7886_vm4, %v3557_v16, %v3561_v47 }
 0x3b5   : > { %v3328_v62 = vpop.f32.mrf.mxu1  ;;  %4413 = vmatpush1.bf16.msra.mxu1 %v7499_v35  ;;  %v6545_v47 = vcombine.high %v3548_v9, %v3562_v17  ;;  %v6544_v27 = vcombine.low %v3548_v9, %v3562_v17  ;;  %v4515_v39 = vor.u32 %v10546_v29, %v10534_v3  ;;  %v4520_v35 = vrot.slane %v4519_v5, 4 }
 0x3b6   : > { %4815 = vmatpush2.bf16.msra.mxu0 %v7502_v60  ;;  %v3365_v34 = vmax.f32 %v3328_v62, 0.0  ;;  %v7516_v60 = vld [vmem:[%s11429_s4 + $0x374] ss:$8 sps:$4 sm:$0xff]   ;;  %4416 = vmatprep.subr.bf16.mxu1 %v4396_v30  ;;  %v3566_v13 = vrot.slane %v3564_v8, 4  ;;  %v3569_v24 = vrot.slane %v3567_v0, 5  ;;  %v10585_v62 = vpack.c.bf16 %v3364_v49, %v3363_v63 }
 0x3b7   : > { %v3330_v16 = vpop.f32.mrf.mxu1  ;;  %4816 = vmatprep.subr.bf16.mxu0 %v7510_v28  ;;  %6580 = vmatprep.mubr.msk.bf16.mxu1 %vm3798_vm3, %v6545_v47  ;;  %v4525_v30 = vor.u32 %v10552_v20, %v10548_v1  ;;  %v4527_v28 = vrot.slane %v3536_v23, 5  ;;  %v4528_v3 = vrot.slane %v3539_v33, 6  ;;  %v7511_v49 = vld [vmem:[%s11429_s4 + $0x2b0] ss:$8 sps:$4 sm:$0xff]   ;;  %v4895_v23 = vrot.slane %v10349_v10, 6 }
 0x3b8   : > { %v3366_v59 = vmax.f32 %v3330_v16, 0.0  ;;  %v7514_v1 = vld [vmem:[%s11429_s4 + $0x370] ss:$8 sps:$4 sm:$0xff]   ;;  %3870 = vmatmul.mubr.bf16.gmra.mxu1 %v6544_v27  ;;  %v4531_v20 = vshrl.u32 %v10435_v18, 16  ;;  %v6958_v33 = vpack.c.bf16 %v3365_v34, %v3361_v53  ;;  %v4537_v5 = vrot.slane %v3550_v12, 5 }
 0x3b9   : > { %v3332_v46 = vpop.f32.mrf.mxu1  ;;  %4417 = vmatpush2.bf16.msra.mxu1 %v4393_v7  ;;  %v4538_v27 = vrot.slane %v3553_v58, 6  ;;  %v3573_v7 = vshll.u32 %v10585_v62, 16  ;;  %v3570_v12 = vor.u32 %v3569_v24, %v3566_v13  ;;  %v7517_v63 = vld [vmem:[%s11429_s4 + $0x2a0] ss:$8 sps:$4 sm:$0xff]   ;;  %v10638_v16 = vsel %vm8292_vm7, %v4520_v35, %v4525_v30  ;;  %v7528_v24 = vld [vmem:[%s11429_s4 + $0x354] ss:$8 sps:$4 sm:$0xff]  }
 0x3ba   : > { %v10594_v17 = vpack.c.bf16 %v3366_v59, %v3365_v34  ;;  %v6959_v29 = vpack.c.bf16 %v3366_v59, %v3362_v14  ;;  %4817 = vmatpush2.bf16.msra.mxu0 %v7508_v52  ;;  %v4510_v14 = vrot.slane %v4509_v32, 4  ;;  %4418 = vmatprep.subr.bf16.mxu1 %v7513_v25  ;;  %v3367_v52 = vmax.f32 %v3332_v46, 0.0  ;;  %v7520_v34 = vld [vmem:[%s11429_s4 + $0x360] ss:$8 sps:$4 sm:$0xff]   ;;  %v7525_v46 = vld [vmem:[%s11429_s4 + $0x294] ss:$8 sps:$4 sm:$0xff]  }
 0x3bb   : > { %v3334_v59 = vpop.f32.mrf.mxu1  ;;  %4818 = vmatprep.subr.bf16.mxu0 %v7516_v60  ;;  %v4529_v60 = vor.u32 %v4528_v3, %v4527_v28  ;;  %v10640_v47 = vrot.slane %v4531_v20, 5  ;;  %v10644_v25 = vrot.slane %v3545_v54, 6  ;;  %v6780_v35 = vrot.slane %v10386_v2, 10 }
 0x3bc   : > { %v3578_v57 = vshrl.u32 %v10594_v17, 16  ;;  %v3581_v53 = vshll.u32 %v10594_v17, 16  ;;  %6623 = vmatprep.mubr.msk.bf16.mxu0 %vm3798_vm3, %v6959_v29  ;;  %v3368_v9 = vmax.f32 %v3334_v59, 0.0  ;;  %v10658_v54 = vsel %vm8292_vm7, %v4510_v14, %v4515_v39 }
 0x3bd   : > { %4131 = vmatmul.mubr.bf16.gmra.mxu0 %v6958_v33  ;;  %4419 = vmatpush2.bf16.msra.mxu1 %v7511_v49  ;;  %v4539_v28 = vor.u32 %v4538_v27, %v4537_v5  ;;  %v4899_v3 = vrot.slane %v10435_v18, 6  ;;  %v3575_v29 = vrot.slane %v3573_v7, 5  ;;  %v6781_v20 = vrot.slane %v10437_v22, 10  ;;  %v7526_v33 = vld [vmem:[%s11429_s4 + $0x350] ss:$8 sps:$4 sm:$0xff]  }
 0x3be   : > { %v3580_v58 = vrot.slane %v3578_v57, 4  ;;  %v3583_v32 = vrot.slane %v3581_v53, 5  ;;  %4819 = vmatpush2.bf16.msra.mxu0 %v7514_v1  ;;  %6772 = vmatprep.mubr.msk.bf16.mxu0 %vm3798_vm3, %v6735_v4  ;;  %v4541_v4 = vshrl.u32 %v10492_v43, 16  ;;  %v10647_v13 = vpack.c.bf16 %v3368_v9, %v3367_v52 }
 0x3bf   : > { %4820 = vmatprep.subr.bf16.mxu0 %v7522_v42  ;;  %4420 = vmatprep.subr.bf16.mxu1 %v7519_v41  ;;  %v3571_v1 = vrot.slane %v3570_v12, 4  ;;  %v6737_v39 = vcombine.high %v10658_v54, %v10638_v16  ;;  %v10670_v42 = vrot.slane %v4529_v60, 4  ;;  %v4544_v5 = vrot.slane %v3559_v38, 6  ;;  %v7523_v41 = vld [vmem:[%s11429_s4 + $0x290] ss:$8 sps:$4 sm:$0xff]  }
 0x3c0   : > { %v3584_v30 = vor.u32 %v3583_v32, %v3580_v58  ;;  %v3587_v49 = vshll.u32 %v10647_v13, 16  ;;  %v4543_v14 = vrot.slane %v4541_v4, 5  ;;  %v4535_v52 = vor.u32 %v10644_v25, %v10640_v47  ;;  %v7531_v38 = vld [vmem:[%s11429_s4 + $0x284] ss:$8 sps:$4 sm:$0xff]  }
 0x3c1   : > { %4421 = vmatpush2.bf16.msra.mxu1 %v7517_v63  ;;  %v4903_v9 = vrot.slane %v10492_v43, 6  ;;  %v6782_v12 = vrot.slane %v10529_v36, 10  ;;  %v4540_v58 = vrot.slane %v4539_v28, 4  ;;  %v11782_v32 = vrot.slane %v10233_v50, 10 }
 0x3c2   : > { %4821 = vmatpush2.bf16.msra.mxu0 %v7520_v34  ;;  %v3585_v59 = vrot.slane %v3584_v30, 4  ;;  %v3589_v27 = vrot.slane %v3587_v49, 5  ;;  %4422 = vmatprep.subr.bf16.mxu1 %v7525_v46  ;;  %v4907_v34 = vrot.slane %v10585_v62, 6  ;;  %v4911_v60 = vrot.slane %v10647_v13, 6 }
 0x3c3   : > { %4822 = vmatprep.subr.bf16.mxu0 %v7528_v24  ;;  %v10692_v63 = vsel %vm8725_vm13, %v11782_v32, %v4887_v26  ;;  %v3576_v47 = vsel %vm7886_vm4, %v3571_v1, %v3575_v29  ;;  %v7529_v26 = vld [vmem:[%s11429_s4 + $0x280] ss:$8 sps:$4 sm:$0xff]   ;;  %v4545_v46 = vor.u32 %v4544_v5, %v4543_v14  ;;  %v11783_v30 = vrot.slane %v10299_v31, 6 }
 0x3c4   : > { %v3590_v25 = vsel %vm7886_vm4, %v3585_v59, %v3589_v27  ;;  %v6814_v50 = vcombine.low %v10261_v37, %v10692_v63  ;;  %v6815_v45 = vcombine.high %v10261_v37, %v10692_v63  ;;  %v11785_v29 = vrot.slane %v10301_v40, 10 }
 0x3c5   : > { %v6547_v4 = vcombine.high %v3576_v47, %v3590_v25  ;;  %v6546_v24 = vcombine.low %v3576_v47, %v3590_v25  ;;  %4423 = vmatpush2.bf16.msra.mxu1 %v7523_v41  ;;  %v10713_v28 = vsel %vm8725_vm13, %v11784_v61, %v11783_v30  ;;  %v4557_v59 = vrot.slane %v3578_v57, 5 }
 0x3c6   : > { %4823 = vmatpush2.bf16.msra.mxu0 %v7526_v33  ;;  %v10721_v1 = vsel %vm8725_vm13, %v11785_v29, %v4895_v23  ;;  %v10725_v33 = vsel %vm8725_vm13, %v6780_v35, %v4899_v3  ;;  %v4558_v14 = vrot.slane %v3581_v53, 6  ;;  %v6783_v5 = vrot.slane %v10594_v17, 10  ;;  %4424 = vmatprep.subr.bf16.mxu1 %v7531_v38  ;;  %v7534_v23 = vld [vmem:[%s11429_s4 + $0x274] ss:$8 sps:$4 sm:$0xff]  }
 0x3c7   : > { %6581 = vmatprep.mubr.msk.bf16.mxu1 %vm3798_vm3, %v6547_v4  ;;  %v6817_v27 = vcombine.high %v10713_v28, %v10721_v1  ;;  %v4561_v35 = vshrl.u32 %v10647_v13, 16  ;;  %v6816_v57 = vcombine.low %v10713_v28, %v10721_v1  ;;  %v10746_v53 = vsel %vm8725_vm13, %v6781_v20, %v4903_v9 }
 0x3c8   : > { %3880 = vmatmul.mubr.bf16.gmra.mxu1 %v6546_v24  ;;  %v10750_v3 = vsel %vm8725_vm13, %v6782_v12, %v4907_v34  ;;  %v4547_v41 = vrot.slane %v3564_v8, 5  ;;  %v11786_v38 = vcombine.high %v10459_v21, %v10469_v48  ;;  %v6819_v19 = vcombine.high %v10725_v33, %v10746_v53 }
 0x3c9   : > { %4825 = vmatmul.mubr.bf16.vlgmr.msra.gmra.mxu0 %v6734_v51  ;;  %v6818_v15 = vcombine.low %v10725_v33, %v10746_v53  ;;  %v10765_v51 = vsel %vm8725_vm13, %v6783_v5, %v4911_v60  ;;  %v4548_v8 = vrot.slane %v3567_v0, 6  ;;  %v4551_v20 = vshrl.u32 %v10585_v62, 16  ;;  %4425 = vmatpush2.bf16.msra.mxu1 %v7529_v26  ;;  %v7535_v26 = vld [vmem:[%s11429_s4 + $0x260] ss:$8 sps:$4 sm:$0xff]   ;;  %v7585_v53 = vld [vmem:[%s11431_s6 + $0x74] ss:$8 sps:$4 sm:$0xff]  }
 0x3ca   : > { %6700 = vmatprep.mubr.msk.bf16.mxu1 %vm3798_vm3, %v11786_v38  ;;  %6773 = vmatprep.mubr.msk.bf16.mxu0 %vm3798_vm3, %v6737_v39  ;;  %v7532_v39 = vld [vmem:[%s11429_s4 + $0x270] ss:$8 sps:$4 sm:$0xff]   ;;  %v6821_v9 = vcombine.high %v10750_v3, %v10765_v51  ;;  %v6820_v12 = vcombine.low %v10750_v3, %v10765_v51  ;;  %v4563_v32 = vrot.slane %v4561_v35, 5  ;;  %v4564_v0 = vrot.slane %v3587_v49, 6  ;;  %v7588_v3 = vld [vmem:[%s11431_s6 + $0x64] ss:$8 sps:$4 sm:$0xff]  }
 0x3cb   : > { %4426 = vmatprep.subr.bf16.mxu1 %v7534_v23  ;;  %v4546_v34 = vsel %vm8292_vm7, %v4540_v58, %v4545_v46  ;;  %v4559_v60 = vor.u32 %v4558_v14, %v4557_v59  ;;  %v4155_v47 = vrot.slane %v10349_v10, 5  ;;  %v6736_v25 = vcombine.low %v10658_v54, %v10638_v16  ;;  %5582 = vmatprep.subr.bf16.mxu0 %v7585_v53  ;;  %v7586_v51 = vld [vmem:[%s11431_s6 + $0x60] ss:$8 sps:$4 sm:$0xff]  }
 0x3cc   : > { %v4553_v4 = vrot.slane %v4551_v20, 5  ;;  %v4554_v24 = vrot.slane %v3573_v7, 6  ;;  %v4536_v49 = vsel %vm8292_vm7, %v10670_v42, %v4535_v52  ;;  %v4549_v58 = vor.u32 %v4548_v8, %v4547_v41  ;;  %v7540_v7 = vld [vmem:[%s11429_s4 + $0x434] ss:$8 sps:$4 sm:$0xff]  }
 0x3cd   : > { %4427 = vmatpush2.bf16.msra.mxu1 %v7532_v39  ;;  %v4151_v46 = vrot.slane %v10299_v31, 5  ;;  %v6627_v10 = vrot.slane %v10301_v40, 9  ;;  %v6739_v16 = vcombine.high %v4536_v49, %v4546_v34  ;;  %v4560_v54 = vrot.slane %v4559_v60, 4  ;;  %v7538_v31 = vld [vmem:[%s11429_s4 + $0x430] ss:$8 sps:$4 sm:$0xff]  }
 0x3ce   : > { %4428 = vmatprep.subr.bf16.mxu1 %v7537_v44  ;;  %v4565_v30 = vor.u32 %v4564_v0, %v4563_v32  ;;  %v6626_v61 = vrot.slane %v10266_v6, 9  ;;  %v4550_v40 = vrot.slane %v4549_v58, 4  ;;  %v4555_v52 = vor.u32 %v4554_v24, %v4553_v4  ;;  %v7543_v6 = vld [vmem:[%s11429_s4 + $0x424] ss:$8 sps:$4 sm:$0xff]   ;;  %v7547_v0 = vld [vmem:[%s11429_s4 + $0x400] ss:$8 sps:$4 sm:$0xff]  }
 0x3cf   : > { %v4156_v42 = vsel %vm8453_vm10, %v6627_v10, %v4155_v47  ;;  %v6662_v29 = vcombine.low %v10459_v21, %v10469_v48  ;;  %v4163_v23 = vrot.slane %v10492_v43, 5  ;;  %v7541_v21 = vld [vmem:[%s11429_s4 + $0x420] ss:$8 sps:$4 sm:$0xff]   ;;  %v6738_v48 = vcombine.low %v4536_v49, %v4546_v34  ;;  %v7546_v43 = vld [vmem:[%s11429_s4 + $0x414] ss:$8 sps:$4 sm:$0xff]  }
 0x3d0   : > { %v4152_v59 = vsel %vm8453_vm10, %v6626_v61, %v4151_v46  ;;  %v4566_v5 = vsel %vm8292_vm7, %v4560_v54, %v4565_v30  ;;  %v4556_v35 = vsel %vm8292_vm7, %v4550_v40, %v4555_v52  ;;  %v4159_v41 = vrot.slane %v10435_v18, 5  ;;  %v7544_v18 = vld [vmem:[%s11429_s4 + $0x410] ss:$8 sps:$4 sm:$0xff]   ;;  %v7549_v44 = vld [vmem:[%s11429_s4 + $0x404] ss:$8 sps:$4 sm:$0xff]  }
 0x3d1   : > { %4835 = vmatmul.mubr.bf16.gmra.mxu0 %v6736_v25  ;;  %4429 = vmatpush2.bf16.msra.mxu1 %v7535_v26  ;;  %v6665_v14 = vcombine.high %v4152_v59, %v4156_v42  ;;  %v6629_v38 = vrot.slane %v10437_v22, 9  ;;  %v6741_v8 = vcombine.high %v4556_v35, %v4566_v5  ;;  %v6628_v20 = vrot.slane %v10386_v2, 9  ;;  %v7552_v25 = vld [vmem:[%s11429_s4 + $0x3f4] ss:$8 sps:$4 sm:$0xff]   ;;  %v7550_v24 = vld [vmem:[%s11429_s4 + $0x3f0] ss:$8 sps:$4 sm:$0xff]  }
 0x3d2   : > { %6774 = vmatprep.mubr.msk.bf16.mxu0 %vm3798_vm3, %v6739_v16  ;;  %5138 = vmatprep.subr.bf16.mxu1 %v7540_v7  ;;  %v6664_v22 = vcombine.low %v4152_v59, %v4156_v42  ;;  %v4171_v32 = vrot.slane %v10647_v13, 5  ;;  %v6740_v34 = vcombine.low %v4556_v35, %v4566_v5  ;;  %v4167_v60 = vrot.slane %v10585_v62, 5  ;;  %v7558_v58 = vld [vmem:[%s11429_s4 + $0x3d4] ss:$8 sps:$4 sm:$0xff]   ;;  %v7561_v10 = vld [vmem:[%s11429_s4 + $0x3c4] ss:$8 sps:$4 sm:$0xff]  }
 0x3d3   : > { %v4164_v39 = vsel %vm8453_vm10, %v6629_v38, %v4163_v23  ;;  %v4160_v55 = vsel %vm8453_vm10, %v6628_v20, %v4159_v41  ;;  %v6631_v47 = vrot.slane %v10594_v17, 9  ;;  %v6630_v13 = vrot.slane %v10529_v36, 9  ;;  %v7555_v17 = vld [vmem:[%s11429_s4 + $0x3e4] ss:$8 sps:$4 sm:$0xff]   ;;  %v7553_v36 = vld [vmem:[%s11429_s4 + $0x3e0] ss:$8 sps:$4 sm:$0xff]  }
 0x3d4   : > { %4431 = vmatmul.mubr.bf16.vlgmr.msra.gmra.mxu1 %v6662_v29  ;;  %v6667_v2 = vcombine.high %v4160_v55, %v4164_v39  ;;  %v6666_v26 = vcombine.low %v4160_v55, %v4164_v39  ;;  %v7564_v16 = vld [vmem:[%s11429_s4 + $0x4a4] ss:$8 sps:$4 sm:$0xff]   ;;  %v7559_v7 = vld [vmem:[%s11429_s4 + $0x3c0] ss:$8 sps:$4 sm:$0xff]   ;;  %v7567_v42 = vld [vmem:[%s11429_s4 + $0x494] ss:$8 sps:$4 sm:$0xff]  }
 0x3d5   : > { %6701 = vmatprep.mubr.msk.bf16.mxu1 %vm3798_vm3, %v6665_v14  ;;  %5139 = vmatpush1.bf16.msra.mxu1 %v7538_v31  ;;  %v4172_v4 = vsel %vm8453_vm10, %v6631_v47, %v4171_v32  ;;  %v4168_v62 = vsel %vm8453_vm10, %v6630_v13, %v4167_v60  ;;  %v7562_v54 = vld [vmem:[%s11429_s4 + $0x4a0] ss:$8 sps:$4 sm:$0xff]   ;;  %v5136_v30 = vand.u32 %v7564_v16, %v11774_v56  ;;  %v7570_v31 = vld [vmem:[%s11429_s4 + $0x484] ss:$8 sps:$4 sm:$0xff]   ;;  %v7573_v52 = vld [vmem:[%s11429_s4 + $0x474] ss:$8 sps:$4 sm:$0xff]  }
 0x3d6   : > { %5140 = vmatprep.subr.bf16.mxu1 %v7543_v6  ;;  %v6669_v49 = vcombine.high %v4168_v62, %v4172_v4  ;;  %v6668_v46 = vcombine.low %v4168_v62, %v4172_v4  ;;  %v5133_v61 = vand.u32 %v7562_v54, %v11774_v56  ;;  %v7568_v40 = vld [vmem:[%s11429_s4 + $0x480] ss:$8 sps:$4 sm:$0xff]   ;;  %v7571_v29 = vld [vmem:[%s11429_s4 + $0x470] ss:$8 sps:$4 sm:$0xff]   ;;  %v7576_v59 = vld [vmem:[%s11429_s4 + $0x464] ss:$8 sps:$4 sm:$0xff]  }
 0x3d7   : > { %v7574_v6 = vld [vmem:[%s11429_s4 + $0x460] ss:$8 sps:$4 sm:$0xff]   ;;  %v7579_v14 = vld [vmem:[%s11429_s4 + $0x454] ss:$8 sps:$4 sm:$0xff]   ;;  %v7577_v5 = vld [vmem:[%s11429_s4 + $0x450] ss:$8 sps:$4 sm:$0xff]  }
 0x3d8   : > { %v7582_v23 = vld [vmem:[%s11429_s4 + $0x444] ss:$8 sps:$4 sm:$0xff]   ;;  %v7589_v35 = vld [vmem:[%s11431_s6 + $0x50] ss:$8 sps:$4 sm:$0xff]   ;;  %v7597_v39 = vld [vmem:[%s11431_s6 + $0x34] ss:$8 sps:$4 sm:$0xff]  }
 0x3d9   : > { %4845 = vmatmul.mubr.bf16.gmra.mxu0 %v6738_v48  ;;  %5141 = vmatpush1.bf16.msra.mxu1 %v7541_v21  ;;  %v7580_v21 = vld [vmem:[%s11429_s4 + $0x440] ss:$8 sps:$4 sm:$0xff]   ;;  %v7594_v38 = vld [vmem:[%s11431_s6 + $0x44] ss:$8 sps:$4 sm:$0xff]   ;;  %vm5563_vm4 = vcmask 252928  }
 0x3da   : > { %6775 = vmatprep.mubr.msk.bf16.mxu0 %vm3798_vm3, %v6741_v8  ;;  %5142 = vmatprep.subr.bf16.mxu1 %v7546_v43  ;;  %v7592_v8 = vld [vmem:[%s11431_s6 + $0x40] ss:$8 sps:$4 sm:$0xff]  }
 0x3dc   : > { %4441 = vmatmul.mubr.bf16.gmra.mxu1 %v6664_v22  ;;  %v7595_v22 = vld [vmem:[%s11431_s6 + $0x30] ss:$8 sps:$4 sm:$0xff]  }
 0x3dd   : > { %6702 = vmatprep.mubr.msk.bf16.mxu1 %vm3798_vm3, %v6667_v2  ;;  %5143 = vmatpush1.bf16.msra.mxu1 %v7544_v18 }
 0x3de   : > { %5144 = vmatprep.subr.bf16.mxu1 %v7549_v44 }
 0x3e1   : > { %4855 = vmatmul.mubr.bf16.gmra.mxu0 %v6740_v34  ;;  %5145 = vmatpush1.bf16.msra.mxu1 %v7547_v0 }
 0x3e2   : > { %5146 = vmatprep.subr.bf16.mxu1 %v7552_v25 }
 0x3e4   : > { %4451 = vmatmul.mubr.bf16.gmra.mxu1 %v6666_v26 }
 0x3e5   : > { %6703 = vmatprep.mubr.msk.bf16.mxu1 %vm3798_vm3, %v6669_v49  ;;  %5147 = vmatpush1.bf16.msra.mxu1 %v7550_v24 }
 0x3e6   : > { %5148 = vmatprep.subr.bf16.mxu1 %v7555_v17 }
 0x3e9   : > { %5149 = vmatpush1.bf16.msra.mxu1 %v7553_v36 }
 0x3ea   : > { %5150 = vmatprep.subr.bf16.mxu1 %v7558_v58 }
 0x3ec   : > { %4461 = vmatmul.mubr.bf16.gmra.mxu1 %v6668_v46 }
 0x3ed   : > { %5151 = vmatpush1.bf16.msra.mxu1 %v7556_v11  ;;  %6852 = vmatprep.mubr.msk.bf16.mxu1 %vm3798_vm3, %v6815_v45  ;;  %v7565_v45 = vld [vmem:[%s11429_s4 + $0x490] ss:$8 sps:$4 sm:$0xff]  }
 0x3ee   : > { %5152 = vmatprep.subr.bf16.mxu1 %v7561_v10 }
 0x3f1   : > { %5153 = vmatpush1.bf16.msra.mxu1 %v7559_v7 }
 0x3f2   : > { %5156 = vmatprep.subr.bf16.mxu1 %v5136_v30 }
 0x3f5   : > { %5157 = vmatpush2.bf16.msra.mxu1 %v5133_v61 }
 0x3f6   : > { %5158 = vmatprep.subr.bf16.mxu1 %v7567_v42 }
 0x3f9   : > { %5159 = vmatpush2.bf16.msra.mxu1 %v7565_v45 }
 0x3fa   : > { %5160 = vmatprep.subr.bf16.mxu1 %v7570_v31 }
 0x3fd   : > { %5161 = vmatpush2.bf16.msra.mxu1 %v7568_v40 }
 0x3fe   : > { %5162 = vmatprep.subr.bf16.mxu1 %v7573_v52 }
 0x401   : > { %5163 = vmatpush2.bf16.msra.mxu1 %v7571_v29 }
 0x402   : > { %5164 = vmatprep.subr.bf16.mxu1 %v7576_v59 }
 0x405   : > { %5165 = vmatpush2.bf16.msra.mxu1 %v7574_v6 }
 0x406   : > { %5166 = vmatprep.subr.bf16.mxu1 %v7579_v14 }
 0x409   : > { %5167 = vmatpush2.bf16.msra.mxu1 %v7577_v5 }
 0x40a   : > { %5168 = vmatprep.subr.bf16.mxu1 %v7582_v23 }
 0x40d   : > { %5169 = vmatpush2.bf16.msra.mxu1 %v7580_v21 }
 0x410   : > { %5171 = vmatmul.mubr.bf16.vlgmr.msra.gmra.mxu1 %v6814_v50 }
 0x411   : > { %6853 = vmatprep.mubr.msk.bf16.mxu1 %vm3798_vm3, %v6817_v27 }
 0x418   : > { %5181 = vmatmul.mubr.bf16.gmra.mxu1 %v6816_v57  ;;  %v7583_v57 = vld [vmem:[%s11431_s6 + $0x70] ss:$8 sps:$4 sm:$0xff]  }
 0x419   : > { %6854 = vmatprep.mubr.msk.bf16.mxu1 %vm3798_vm3, %v6819_v19  ;;  %5583 = vmatpush1.bf16.msra.mxu0 %v7583_v57 }
 0x41a   : > { %5584 = vmatprep.subr.bf16.mxu0 %v7588_v3 }
 0x41d   : > { %5585 = vmatpush1.bf16.msra.mxu0 %v7586_v51 }
 0x420   : > { %5191 = vmatmul.mubr.bf16.gmra.mxu1 %v6818_v15 }
 0x421   : > { %6855 = vmatprep.mubr.msk.bf16.mxu1 %vm3798_vm3, %v6821_v9 }
 0x428   : > { %5201 = vmatmul.mubr.bf16.gmra.mxu1 %v6820_v12  ;;  %v7591_v12 = vld [vmem:[%s11431_s6 + $0x54] ss:$8 sps:$4 sm:$0xff]  }
 0x429   : > { %5586 = vmatprep.subr.bf16.mxu0 %v7591_v12 }
 0x42a   : > { %5587 = vmatpush1.bf16.msra.mxu0 %v7589_v35 }
 0x42b   : > { %5588 = vmatprep.subr.bf16.mxu0 %v7594_v38 }
 0x42e   : > { %5589 = vmatpush1.bf16.msra.mxu0 %v7592_v8  ;;  %v5227_v8 = vld [vmem:[%s11430_s5] sm:$0x3] }
 0x42f   : > { %5590 = vmatprep.subr.bf16.mxu0 %v7597_v39 }
 0x432   : > { %5591 = vmatpush1.bf16.msra.mxu0 %v7595_v22 }
 0x44d   : > { %v4102_v15 = vpop.f32.mrf.mxu0 }
 0x44f   : > { %v4104_v48 = vpop.f32.mrf.mxu0 }
 0x451   : > { %v4106_v43 = vpop.f32.mrf.mxu0 }
 0x453   : > { %v4108_v18 = vpop.f32.mrf.mxu0 }
 0x458   : > { %v10949_v37 = vpop.f32.mrf.mxu1 }
 0x459   : > { %v4103_v57 = vadd.f32 %v4102_v15, %v10949_v37 }
 0x45a   : > { %v10951_v63 = vpop.f32.mrf.mxu1 }
 0x45b   : > { %v4105_v3 = vadd.f32 %v4104_v48, %v10951_v63  ;;  %v11790_v63 = vld [vmem:[#allocation72_spill] sm:$0xff] }
 0x45c   : > { %v10953_v50 = vpop.f32.mrf.mxu1  ;;  %v11791_v48 = vsub.s32 0, %v11790_v63 }
 0x45d   : > { %v4112_v44 = vpop.f32.mrf.mxu0  ;;  %v4107_v35 = vadd.f32 %v4106_v43, %v10953_v50 }
 0x45e   : > { %v10955_v28 = vpop.f32.mrf.mxu1 }
 0x45f   : > { %v4114_v32 = vpop.f32.mrf.mxu0  ;;  %v4109_v39 = vadd.f32 %v4108_v18, %v10955_v28  ;;  %v7598_v28 = vld [vmem:[%s11431_s6 + $0x20] ss:$8 sps:$4 sm:$0xff]   ;;  %v7600_v18 = vld [vmem:[%s11431_s6 + $0x24] ss:$8 sps:$4 sm:$0xff]  }
 0x460   : > { %5592 = vmatprep.subr.bf16.mxu0 %v7600_v18 }
 0x461   : > { %v4116_v34 = vpop.f32.mrf.mxu0  ;;  %5593 = vmatpush1.bf16.msra.mxu0 %v7598_v28 }
 0x463   : > { %v11009_v47 = vpop.f32.mrf.mxu0 }
 0x468   : > { %v10957_v1 = vpop.f32.mrf.mxu1 }
 0x469   : > { %v4113_v50 = vadd.f32 %v4112_v44, %v10957_v1 }
 0x46a   : > { %v10959_v33 = vpop.f32.mrf.mxu1 }
 0x46c   : > { %v10961_v27 = vpop.f32.mrf.mxu1 }
 0x46d   : > { %v11013_v13 = vpop.f32.mrf.mxu0  ;;  %v4117_v44 = vadd.f32 %v4116_v34, %v10961_v27 }
 0x46e   : > { %v10972_v19 = vpop.f32.mrf.mxu1 }
 0x46f   : > { %v11015_v26 = vpop.f32.mrf.mxu0 }
 0x471   : > { %v11017_v17 = vpop.f32.mrf.mxu0 }
 0x473   : > { %v11019_v36 = vpop.f32.mrf.mxu0 }
 0x478   : > { %v10977_v9 = vpop.f32.mrf.mxu1 }
 0x479   : > { %v4123_v34 = vadd.f32 %v11013_v13, %v10977_v9  ;;  %v7601_v9 = vld [vmem:[%s11431_s6 + $0x10] ss:$8 sps:$4 sm:$0xff]   ;;  %v7603_v13 = vld [vmem:[%s11431_s6 + $0x14] ss:$8 sps:$4 sm:$0xff]  }
 0x47a   : > { %v10985_v41 = vpop.f32.mrf.mxu1  ;;  %5594 = vmatprep.subr.bf16.mxu0 %v7603_v13  ;;  %v7610_v13 = vld [vmem:[%s11431_s6 + $0x80] ss:$8 sps:$4 sm:$0xff]  }
 0x47b   : > { %5595 = vmatpush1.bf16.msra.mxu0 %v7601_v9 }
 0x47c   : > { %v10993_v20 = vpop.f32.mrf.mxu1 }
 0x47d   : > { %v11021_v58 = vpop.f32.mrf.mxu0 }
 0x47e   : > { %v11001_v55 = vpop.f32.mrf.mxu1 }
 0x47f   : > { %v11023_v46 = vpop.f32.mrf.mxu0 }
 0x481   : > { %v11025_v16 = vpop.f32.mrf.mxu0 }
 0x483   : > { %v11027_v54 = vpop.f32.mrf.mxu0 }
 0x484   : > { %11788 = vst [vmem:[#allocation28_spill] sm:$0xff] %v11027_v54 }
 0x488   : > { %v11003_v2 = vpop.f32.mrf.mxu1 }
 0x489   : > { %v4826_v61 = vpop.f32.mrf.mxu0 }
 0x48a   : > { %v11005_v0 = vpop.f32.mrf.mxu1 }
 0x48b   : > { %v4828_v45 = vpop.f32.mrf.mxu0 }
 0x48c   : > { %v11007_v60 = vpop.f32.mrf.mxu1 }
 0x48d   : > { %v4830_v40 = vpop.f32.mrf.mxu0 }
 0x48e   : > { %v11011_v25 = vpop.f32.mrf.mxu1 }
 0x48f   : > { %11787 = vst [vmem:[#allocation31_spill] sm:$0xff] %v11011_v25  ;;  %v4832_v29 = vpop.f32.mrf.mxu0 }
 0x491   : > { %v4836_v6 = vpop.f32.mrf.mxu0 }
 0x493   : > { %v4838_v5 = vpop.f32.mrf.mxu0 }
 0x494   : > { %v4432_v4 = vpop.f32.mrf.mxu1 }
 0x495   : > { %v4840_v21 = vpop.f32.mrf.mxu0  ;;  %v4471_v51 = vadd.f32 %v4432_v4, %v4103_v57  ;;  %v11056_v4 = vrot.slane %v5227_v8, %v11791_v48  ;;  %v11792_v57 = vsub.s32 1, %v11790_v63 }
 0x496   : > { %v4434_v24 = vpop.f32.mrf.mxu1 }
 0x497   : > { %v4842_v12 = vpop.f32.mrf.mxu0  ;;  %v4472_v38 = vadd.f32 %v4434_v24, %v4105_v3  ;;  %v4865_v25 = vadd.f32 %v4826_v61, %v4471_v51  ;;  %v11061_v3 = vrot.slane %v5227_v8, %v11792_v57 }
 0x498   : > { %v4436_v62 = vpop.f32.mrf.mxu1 }
 0x499   : > { %v4473_v54 = vadd.f32 %v4436_v62, %v4107_v35  ;;  %v11052_v37 = vpop.f32.mrf.mxu0  ;;  %v4866_v24 = vadd.f32 %v4828_v45, %v4472_v38 }
 0x49a   : > { %v4438_v49 = vpop.f32.mrf.mxu1 }
 0x49b   : > { %v4474_v15 = vadd.f32 %v4438_v49, %v4109_v39  ;;  %v4115_v49 = vadd.f32 %v4114_v32, %v10959_v33  ;;  %v4867_v1 = vadd.f32 %v4830_v40, %v4473_v54  ;;  %v4119_v33 = vadd.f32 %v11009_v47, %v10972_v19 }
 0x49c   : > { %v4442_v11 = vpop.f32.mrf.mxu1 }
 0x49d   : > { %v4475_v61 = vadd.f32 %v4442_v11, %v4113_v50 }
 0x49e   : > { %v4444_v10 = vpop.f32.mrf.mxu1 }
 0x49f   : > { %v4476_v35 = vadd.f32 %v4444_v10, %v4115_v49  ;;  %v4869_v40 = vadd.f32 %v4836_v6, %v4475_v61  ;;  %v4133_v61 = vadd.f32 %v11021_v58, %v11003_v2 }
 0x4a0   : > { %v4446_v7 = vpop.f32.mrf.mxu1 }
 0x4a1   : > { %v4477_v11 = vadd.f32 %v4446_v7, %v4117_v44  ;;  %v4870_v47 = vadd.f32 %v4838_v5, %v4476_v35  ;;  %v4125_v7 = vadd.f32 %v11015_v26, %v10985_v41  ;;  %v4127_v5 = vadd.f32 %v11017_v17, %v10993_v20 }
 0x4a2   : > { %v4448_v30 = vpop.f32.mrf.mxu1 }
 0x4a4   : > { %v11029_v42 = vpop.f32.mrf.mxu1 }
 0x4a6   : > { %v11031_v31 = vpop.f32.mrf.mxu1 }
 0x4a7   : > { %v4480_v26 = vadd.f32 %v11031_v31, %v4125_v7 }
 0x4a8   : > { %v11033_v52 = vpop.f32.mrf.mxu1 }
 0x4a9   : > { %v4481_v20 = vadd.f32 %v11033_v52, %v4127_v5  ;;  %v7607_v52 = vld [vmem:[%s11431_s6 + $0x90] ss:$8 sps:$4 sm:$0xff]  }
 0x4aa   : > { %v11035_v59 = vpop.f32.mrf.mxu1 }
 0x4ac   : > { %v11037_v14 = vpop.f32.mrf.mxu1 }
 0x4ad   : > { %v4483_v35 = vadd.f32 %v11037_v14, %v4133_v61 }
 0x4ae   : > { %v11039_v23 = vpop.f32.mrf.mxu1 }
 0x4b0   : > { %v11042_v53 = vpop.f32.mrf.mxu1 }
 0x4b1   : > { %11789 = vst [vmem:[#allocation33_spill] sm:$0xff] %v11042_v53 }
 0x4b2   : > { %v11050_v22 = vpop.f32.mrf.mxu1 }
 0x4d0   : > { %v5172_v53 = vpop.f32.mrf.mxu1 }
 0x4d1   : > { %v5211_v43 = vadd.f32 %v5172_v53, %v4865_v25  ;;  %v4848_v25 = vpop.f32.mrf.mxu0  ;;  %v4868_v53 = vadd.f32 %v4832_v29, %v4474_v15  ;;  %v4478_v29 = vadd.f32 %v4448_v30, %v4119_v33  ;;  %v4479_v30 = vadd.f32 %v11029_v42, %v4123_v34  ;;  %v7612_v34 = vld [vmem:[%s11431_s6 + $0x84] ss:$8 sps:$4 sm:$0xff]  }
 0x4d2   : > { %v5174_v62 = vpop.f32.mrf.mxu1 }
 0x4d3   : > { %v5212_v51 = vadd.f32 %v5174_v62, %v4866_v24  ;;  %v11072_v38 = vadd.f32 %v11056_v4, %v5211_v43  ;;  %v4850_v10 = vpop.f32.mrf.mxu0  ;;  %v4871_v43 = vadd.f32 %v4840_v21, %v4477_v11  ;;  %v4872_v28 = vadd.f32 %v4842_v12, %v4478_v29 }
 0x4d4   : > { %v5176_v45 = vpop.f32.mrf.mxu1  ;;  %v4129_v21 = vadd.f32 %v11019_v36, %v11001_v55  ;;  %v4873_v12 = vadd.f32 %v11052_v37, %v4479_v30  ;;  %v7604_v55 = vld [vmem:[%s11431_s6] ss:$8 sps:$4 sm:$0xff]   ;;  %v7606_v36 = vld [vmem:[%s11431_s6 + $0x4] ss:$8 sps:$4 sm:$0xff]   ;;  %v4875_v33 = vadd.f32 %v4850_v10, %v4481_v20 }
 0x4d5   : > { %v11075_v8 = vadd.f32 %v11061_v3, %v5212_v51  ;;  %v5213_v39 = vadd.f32 %v5176_v45, %v4867_v1  ;;  %v4852_v41 = vpop.f32.mrf.mxu0  ;;  %v7609_v45 = vld [vmem:[%s11431_s6 + $0x94] ss:$8 sps:$4 sm:$0xff]   ;;  %5596 = vmatprep.subr.bf16.mxu0 %v7606_v36 }
 0x4d6   : > { %v5178_v32 = vpop.f32.mrf.mxu1  ;;  %v4482_v1 = vadd.f32 %v11035_v59, %v4129_v21  ;;  %v4874_v59 = vadd.f32 %v4848_v25, %v4480_v26  ;;  %5597 = vmatpush1.bf16.msra.mxu0 %v7604_v55  ;;  %v5577_v25 = vand.u32 %v7607_v52, %v11774_v56 }
 0x4d7   : > { %v5214_v54 = vadd.f32 %v5178_v32, %v4868_v53  ;;  %v7264_v27 = vpack.i.bf16 %v11075_v8, %v11072_v38  ;;  %v11084_v63 = vadd.f32 %v11056_v4, %v5213_v39  ;;  %v4856_v51 = vpop.f32.mrf.mxu0  ;;  %v4135_v53 = vadd.f32 %v11023_v46, %v11005_v0 }
 0x4d8   : > { %v5182_v15 = vpop.f32.mrf.mxu1  ;;  %v4876_v14 = vadd.f32 %v4852_v41, %v4482_v1 }
 0x4d9   : > { %v11087_v48 = vadd.f32 %v11061_v3, %v5214_v54  ;;  %v5215_v19 = vadd.f32 %v5182_v15, %v4869_v40  ;;  %7265 = vrot.lane.b32.xlu0 %v7264_v27, %s7680_s15  ;;  %v5580_v54 = vand.u32 %v7609_v45, %v11774_v56  ;;  %v4137_v40 = vadd.f32 %v11025_v16, %v11007_v60  ;;  %v4858_v27 = vpop.f32.mrf.mxu0  ;;  %v11793_v56 = vld [vmem:[#allocation31_spill] sm:$0xff]  ;;  %v11794_v60 = vld [vmem:[#allocation28_spill] sm:$0xff] }
 0x4da   : > { %v5184_v6 = vpop.f32.mrf.mxu1  ;;  %v4484_v0 = vadd.f32 %v11039_v23, %v4135_v53  ;;  %v4139_v16 = vadd.f32 %v11794_v60, %v11793_v56 }
 0x4db   : > { %v5216_v50 = vadd.f32 %v5184_v6, %v4870_v47  ;;  %v7269_v24 = vpack.i.bf16 %v11087_v48, %v11084_v63  ;;  %v11105_v18 = vadd.f32 %v11056_v4, %v5215_v19  ;;  %5610 = vmatprep.subr.bf16.mxu0 %v5580_v54  ;;  %v11795_v19 = vld [vmem:[#allocation33_spill] sm:$0xff]  ;;  %v4877_v6 = vadd.f32 %v4856_v51, %v4483_v35  ;;  %v4860_v30 = vpop.f32.mrf.mxu0 }
 0x4dc   : > { %v5186_v57 = vpop.f32.mrf.mxu1  ;;  %v4485_v47 = vadd.f32 %v11795_v19, %v4137_v40  ;;  %5611 = vmatpush2.bf16.msra.mxu0 %v5577_v25 }
 0x4dd   : > { %v11108_v62 = vadd.f32 %v11061_v3, %v5216_v50  ;;  %v5217_v42 = vadd.f32 %v5186_v57, %v4871_v43  ;;  %7270 = vrot.lane.b32.xlu1 %v7269_v24, %s7680_s15  ;;  %v4878_v43 = vadd.f32 %v4858_v27, %v4484_v0  ;;  %5612 = vmatprep.subr.bf16.mxu0 %v7612_v34  ;;  %v4862_v20 = vpop.f32.mrf.mxu0 }
 0x4de   : > { %v5188_v17 = vpop.f32.mrf.mxu1  ;;  %v4486_v24 = vadd.f32 %v11050_v22, %v4139_v16 }
 0x4df   : > { %v5218_v31 = vadd.f32 %v5188_v17, %v4872_v28  ;;  %v7274_v49 = vpack.i.bf16 %v11108_v62, %v11105_v18  ;;  %v11130_v37 = vadd.f32 %v11056_v4, %v5217_v42  ;;  %v4879_v42 = vadd.f32 %v4860_v30, %v4485_v47 }
 0x4e0   : > { %v5192_v44 = vpop.f32.mrf.mxu1  ;;  %5613 = vmatpush2.bf16.msra.mxu0 %v7610_v13 }
 0x4e1   : > { %v11133_v2 = vadd.f32 %v11061_v3, %v5218_v31  ;;  %v5219_v58 = vadd.f32 %v5192_v44, %v4873_v12  ;;  %7275 = vrot.lane.b32.xlu0 %v7274_v49, %s7680_s15  ;;  %v4880_v49 = vadd.f32 %v4862_v20, %v4486_v24 }
 0x4e2   : > { %v5194_v39 = vpop.f32.mrf.mxu1 }
 0x4e3   : > { %v5220_v32 = vadd.f32 %v5194_v39, %v4874_v59  ;;  %v7279_v11 = vpack.i.bf16 %v11133_v2, %v11130_v37  ;;  %v11153_v10 = vadd.f32 %v11056_v4, %v5219_v58 }
 0x4e4   : > { %v5196_v46 = vpop.f32.mrf.mxu1 }
 0x4e5   : > { %v11156_v29 = vadd.f32 %v11061_v3, %v5220_v32  ;;  %v5221_v15 = vadd.f32 %v5196_v46, %v4875_v33  ;;  %7280 = vrot.lane.b32.xlu1 %v7279_v11, %s7680_s15 }
 0x4e6   : > { %v5198_v23 = vpop.f32.mrf.mxu1 }
 0x4e7   : > { %v5222_v7 = vadd.f32 %v5198_v23, %v4876_v14  ;;  %v7284_v9 = vpack.i.bf16 %v11156_v29, %v11153_v10  ;;  %v11169_v5 = vadd.f32 %v11056_v4, %v5221_v15 }
 0x4e8   : > { %v5202_v50 = vpop.f32.mrf.mxu1 }
 0x4e9   : > { %v11172_v41 = vadd.f32 %v11061_v3, %v5222_v7  ;;  %v5223_v26 = vadd.f32 %v5202_v50, %v4877_v6  ;;  %7285 = vrot.lane.b32.xlu0 %v7284_v9, %s7680_s15 }
 0x4ea   : > { %v5204_v57 = vpop.f32.mrf.mxu1 }
 0x4eb   : > { %v5224_v28 = vadd.f32 %v5204_v57, %v4878_v43  ;;  %v7289_v21 = vpack.i.bf16 %v11172_v41, %v11169_v5  ;;  %v11178_v22 = vadd.f32 %v11056_v4, %v5223_v26 }
 0x4ec   : > { %v5206_v17 = vpop.f32.mrf.mxu1 }
 0x4ed   : > { %v11181_v31 = vadd.f32 %v11061_v3, %v5224_v28  ;;  %v5225_v12 = vadd.f32 %v5206_v17, %v4879_v42  ;;  %7290 = vrot.lane.b32.xlu1 %v7289_v21, %s7680_s15 }
 0x4ee   : > { %v5208_v61 = vpop.f32.mrf.mxu1 }
 0x4ef   : > { %v5226_v51 = vadd.f32 %v5208_v61, %v4880_v49  ;;  %v7294_v1 = vpack.i.bf16 %v11181_v31, %v11178_v22  ;;  %v11187_v44 = vadd.f32 %v11056_v4, %v5225_v12 }
 0x4f1   : > { %v11190_v55 = vadd.f32 %v11061_v3, %v5226_v51  ;;  %7295 = vrot.lane.b32.xlu0 %v7294_v1, %s7680_s15 }
 0x4f3   : > { %v7299_v36 = vpack.i.bf16 %v11190_v55, %v11187_v44 }
 0x4f5   : > { %7300 = vrot.lane.b32.xlu1 %v7299_v36, %s7680_s15  ;;  %s7683_s15 = smov 78  }
 0x54b   : > { %v7266_v52 = vpop.permute.xlu0 %7265 }
 0x54c   : > { %v7268_v58 = vunpack.i.h.bf16 %v7266_v52  ;;  %v7267_v59 = vunpack.i.l.bf16 %v7266_v52 }
 0x54e   : > { %v5303_v45 = vsel %vm2718_vm15, %v7267_v59, %v7268_v58  ;;  %v5328_v35 = vmax.f32 %v11075_v8, %v7268_v58 }
 0x54f   : > { %v7271_v53 = vpop.permute.xlu1 %7270  ;;  %v5327_v3 = vmax.f32 %v11072_v38, %v5303_v45 }
 0x550   : > { %v7273_v4 = vunpack.i.h.bf16 %v7271_v53  ;;  %v7272_v39 = vunpack.i.l.bf16 %v7271_v53  ;;  %v5362_v25 = vrot.slane %v5328_v35, 1 }
 0x551   : > { %v5359_v46 = vrot.slane %v5327_v3, 1 }
 0x552   : > { %v5330_v33 = vmax.f32 %v11087_v48, %v7273_v4  ;;  %v5304_v32 = vsel %vm2718_vm15, %v7272_v39, %v7273_v4 }
 0x553   : > { %v5329_v11 = vmax.f32 %v11084_v63, %v5304_v32  ;;  %v7276_v54 = vpop.permute.xlu0 %7275 }
 0x554   : > { %v5363_v40 = vrot.slane %v5330_v33, 1  ;;  %v7278_v27 = vunpack.i.h.bf16 %v7276_v54  ;;  %v7277_v0 = vunpack.i.l.bf16 %v7276_v54 }
 0x555   : > { %v5360_v14 = vrot.slane %v5329_v11, 1 }
 0x556   : > { %v5364_v34 = vsel %vm2887_vm0, %v5362_v25, %v5363_v40  ;;  %v5332_v8 = vmax.f32 %v11108_v62, %v7278_v27  ;;  %v5305_v15 = vsel %vm2718_vm15, %v7277_v0, %v7278_v27 }
 0x557   : > { %v5361_v38 = vsel %vm2887_vm0, %v5359_v46, %v5360_v14  ;;  %v5331_v48 = vmax.f32 %v11105_v18, %v5305_v15  ;;  %v7281_v56 = vpop.permute.xlu1 %7280  ;;  %v5406_v47 = vmax.f32 %v5328_v35, %v5364_v34 }
 0x558   : > { %v5367_v60 = vrot.slane %v5332_v8, 1  ;;  %v7283_v63 = vunpack.i.h.bf16 %v7281_v56  ;;  %v7282_v16 = vunpack.i.l.bf16 %v7281_v56  ;;  %v5405_v23 = vmax.f32 %v5327_v3, %v5361_v38 }
 0x559   : > { %v5365_v19 = vrot.slane %v5331_v48, 1  ;;  %v5422_v42 = vmax.f32 %v5406_v47, 0.0 }
 0x55a   : > { %v5368_v7 = vsel %vm2887_vm0, %v5363_v40, %v5367_v60  ;;  %v5334_v6 = vmax.f32 %v11133_v2, %v7283_v63  ;;  %v5306_v9 = vsel %vm2718_vm15, %v7282_v16, %v7283_v63  ;;  %v5421_v57 = vmax.f32 %v5405_v23, 0.0 }
 0x55b   : > { %v5366_v62 = vsel %vm2887_vm0, %v5360_v14, %v5365_v19  ;;  %v5333_v13 = vmax.f32 %v11130_v37, %v5306_v9  ;;  %v7286_v30 = vpop.permute.xlu0 %7285  ;;  %v5408_v50 = vmax.f32 %v5330_v33, %v5368_v7 }
 0x55c   : > { %v5407_v18 = vmax.f32 %v5329_v11, %v5366_v62  ;;  %v5371_v43 = vrot.slane %v5334_v6, 1  ;;  %v7288_v24 = vunpack.i.h.bf16 %v7286_v30  ;;  %v7287_v26 = vunpack.i.l.bf16 %v7286_v30 }
 0x55d   : > { %v5369_v28 = vrot.slane %v5333_v13, 1  ;;  %v5424_v21 = vmax.f32 %v5408_v50, 0.0 }
 0x55e   : > { %v5423_v20 = vmax.f32 %v5407_v18, 0.0  ;;  %v5372_v2 = vsel %vm2887_vm0, %v5367_v60, %v5371_v43  ;;  %v5336_v17 = vmax.f32 %v11156_v29, %v7288_v24  ;;  %v5307_v12 = vsel %vm2718_vm15, %v7287_v26, %v7288_v24 }
 0x55f   : > { %v5335_v37 = vmax.f32 %v11153_v10, %v5307_v12  ;;  %v7291_v49 = vpop.permute.xlu1 %7290  ;;  %v5438_v61 = vpack.c.bf16 %v5424_v21, %v5422_v42  ;;  %v5370_v51 = vsel %vm2887_vm0, %v5365_v19, %v5369_v28  ;;  %v5410_v45 = vmax.f32 %v5332_v8, %v5372_v2 }
 0x560   : > { %v5437_v1 = vpack.c.bf16 %v5423_v20, %v5421_v57  ;;  %v5375_v36 = vrot.slane %v5336_v17, 1  ;;  %v7293_v52 = vunpack.i.h.bf16 %v7291_v49  ;;  %v7292_v58 = vunpack.i.l.bf16 %v7291_v49 }
 0x561   : > { %v5373_v59 = vrot.slane %v5335_v37, 1  ;;  %6876 = vmatprep.mubr.msk.bf16.mxu0 %vm5563_vm4, %v5438_v61  ;;  %v5409_v53 = vmax.f32 %v5331_v48, %v5370_v51  ;;  %v5426_v27 = vmax.f32 %v5410_v45, 0.0 }
 0x562   : > { %v5376_v35 = vsel %vm2887_vm0, %v5371_v43, %v5375_v36  ;;  %v5338_v29 = vmax.f32 %v11172_v41, %v7293_v52  ;;  %v5308_v4 = vsel %vm2718_vm15, %v7292_v58, %v7293_v52  ;;  %5615 = vmatmul.mubr.bf16.vlgmr.msra.gmra.mxu0 %v5437_v1  ;;  %v7682_v1 = vmov 0.0  }
 0x563   : > { %v5337_v10 = vmax.f32 %v11169_v5, %v5308_v4  ;;  %v7296_v39 = vpop.permute.xlu0 %7295  ;;  %v5412_v3 = vmax.f32 %v5334_v6, %v5376_v35  ;;  %v5374_v33 = vsel %vm2887_vm0, %v5369_v28, %v5373_v59  ;;  %v5425_v46 = vmax.f32 %v5409_v53, 0.0  ;;  %7023 = vmatprep.subr.mxu0 %v7682_v1  ;;  %7004 = vmatprep.subr.mxu1 %v7682_v1 }
 0x564   : > { %v5379_v32 = vrot.slane %v5338_v29, 1  ;;  %v7298_v11 = vunpack.i.h.bf16 %v7296_v39  ;;  %v7297_v54 = vunpack.i.l.bf16 %v7296_v39  ;;  %v5411_v25 = vmax.f32 %v5333_v13, %v5374_v33  ;;  %7020 = vmatprep.mubr.msk.f32.mxu1 %vm7686_vm5, %v7682_v1 }
 0x565   : > { %v5377_v40 = vrot.slane %v5337_v10, 1  ;;  %v5428_v0 = vmax.f32 %v5412_v3, 0.0 }
 0x566   : > { %v5380_v14 = vsel %vm2887_vm0, %v5375_v36, %v5379_v32  ;;  %v5340_v41 = vmax.f32 %v11181_v31, %v7298_v11  ;;  %v5309_v34 = vsel %vm2718_vm15, %v7297_v54, %v7298_v11  ;;  %v5427_v8 = vmax.f32 %v5411_v25, 0.0  ;;  %v5655_v54 = vld [vmem:[%s11432_s7] sm:$0xff] }
 0x567   : > { %v5339_v5 = vmax.f32 %v11178_v22, %v5309_v34  ;;  %v7301_v15 = vpop.permute.xlu1 %7300  ;;  %v5440_v38 = vpack.c.bf16 %v5428_v0, %v5426_v27  ;;  %v5378_v48 = vsel %vm2887_vm0, %v5373_v59, %v5377_v40  ;;  %v5414_v19 = vmax.f32 %v5336_v17, %v5380_v14 }
 0x568   : > { %v5383_v56 = vrot.slane %v5340_v41, 1  ;;  %v7303_v60 = vunpack.i.h.bf16 %v7301_v15  ;;  %v7302_v63 = vunpack.i.l.bf16 %v7301_v15  ;;  %v5439_v16 = vpack.c.bf16 %v5427_v8, %v5425_v46 }
 0x569   : > { %v5381_v23 = vrot.slane %v5339_v5, 1  ;;  %6877 = vmatprep.mubr.msk.bf16.mxu0 %vm5563_vm4, %v5440_v38  ;;  %v5413_v22 = vmax.f32 %v5335_v37, %v5378_v48  ;;  %v5430_v18 = vmax.f32 %v5414_v19, 0.0 }
 0x56a   : > { %v5384_v47 = vsel %vm2887_vm0, %v5379_v32, %v5383_v56  ;;  %v5342_v31 = vmax.f32 %v11190_v55, %v7303_v60  ;;  %v5310_v7 = vsel %vm2718_vm15, %v7302_v63, %v7303_v60  ;;  %5625 = vmatmul.mubr.bf16.gmra.mxu0 %v5439_v16 }
 0x56b   : > { %v5341_v6 = vmax.f32 %v11187_v44, %v5310_v7  ;;  %v5416_v9 = vmax.f32 %v5338_v29, %v5384_v47  ;;  %v5382_v62 = vsel %vm2887_vm0, %v5377_v40, %v5381_v23  ;;  %v5429_v57 = vmax.f32 %v5413_v22, 0.0 }
 0x56c   : > { %v5387_v13 = vrot.slane %v5342_v31, 1  ;;  %v5415_v30 = vmax.f32 %v5337_v10, %v5382_v62 }
 0x56d   : > { %v5385_v50 = vrot.slane %v5341_v6, 1  ;;  %v5432_v43 = vmax.f32 %v5416_v9, 0.0  ;;  %v6880_v9 = vld [vmem:[%s11432_s7 + $0x8] sm:$0xff] }
 0x56e   : > { %v5388_v24 = vsel %vm2887_vm0, %v5383_v56, %v5387_v13  ;;  %v5420_v26 = vmax.f32 %v5342_v31, %v5387_v13  ;;  %v5431_v28 = vmax.f32 %v5415_v30, 0.0 }
 0x56f   : > { %v5442_v55 = vpack.c.bf16 %v5432_v43, %v5430_v18  ;;  %v5418_v42 = vmax.f32 %v5340_v41, %v5388_v24  ;;  %v5386_v21 = vsel %vm2887_vm0, %v5381_v23, %v5385_v50  ;;  %v5419_v2 = vmax.f32 %v5341_v6, %v5385_v50 }
 0x570   : > { %v5436_v20 = vmax.f32 %v5420_v26, 0.0  ;;  %v5441_v44 = vpack.c.bf16 %v5431_v28, %v5429_v57  ;;  %v5417_v17 = vmax.f32 %v5339_v5, %v5386_v21 }
 0x571   : > { %6878 = vmatprep.mubr.msk.bf16.mxu0 %vm5563_vm4, %v5442_v55  ;;  %v5434_v12 = vmax.f32 %v5418_v42, 0.0  ;;  %v5435_v61 = vmax.f32 %v5419_v2, 0.0 }
 0x572   : > { %5635 = vmatmul.mubr.bf16.gmra.mxu0 %v5441_v44  ;;  %v5433_v49 = vmax.f32 %v5417_v17, 0.0  ;;  %v6885_v44 = vld [vmem:[%s11432_s7 + $0x10] sm:$0xff] }
 0x573   : > { %v5444_v37 = vpack.c.bf16 %v5436_v20, %v5434_v12  ;;  %v6888_v12 = vld [vmem:[%s11432_s7 + $0x18] sm:$0xff] }
 0x574   : > { %v5443_v51 = vpack.c.bf16 %v5435_v61, %v5433_v49  ;;  %v6088_v49 = vld [vmem:[%s11434_s9 + $0x30] sm:$0x3]  ;;  %v6087_v61 = vld [vmem:[%s11434_s9 + $0x28] sm:$0xff] }
 0x575   : > { %6879 = vmatprep.mubr.msk.bf16.mxu0 %vm5563_vm4, %v5444_v37 }
 0x57a   : > { %5645 = vmatmul.mubr.bf16.gmra.mxu0 %v5443_v51 }
 0x57b   : > { %7039 = vmatprep.mubr.msk.f32.mxu0 %vm7686_vm5, %v7682_v1 }
 0x622   : > { %v11240_v36 = vpop.f32.mrf.mxu0 }
 0x623   : > { %5666 = vrot.lane.b32.xlu1 %v11240_v36, %s7683_s15 }
 0x624   : > { %v11244_v52 = vpop.f32.mrf.mxu0 }
 0x626   : > { %v5620_v58 = vpop.f32.mrf.mxu0 }
 0x627   : > { %5668 = vrot.lane.b32.xlu0 %v5620_v58, %s7683_s15 }
 0x628   : > { %v11247_v59 = vpop.f32.mrf.mxu0 }
 0x62a   : > { %v5626_v45 = vpop.f32.mrf.mxu0 }
 0x62b   : > { %5670 = vrot.lane.b32.xlu1 %v5626_v45, %s7683_s15 }
 0x62c   : > { %v5628_v53 = vpop.f32.mrf.mxu0 }
 0x62e   : > { %v5630_v35 = vpop.f32.mrf.mxu0 }
 0x62f   : > { %5672 = vrot.lane.b32.xlu0 %v5630_v35, %s7683_s15  ;;  %5861 = vrot.lane.b32.xlu1 %v5630_v35, %s7684_s25 }
 0x630   : > { %v5632_v29 = vpop.f32.mrf.mxu0 }
 0x632   : > { %v5636_v4 = vpop.f32.mrf.mxu0 }
 0x633   : > { %5865 = vrot.lane.b32.xlu0 %v5636_v4, %s7684_s25  ;;  %5674 = vrot.lane.b32.xlu1 %v5636_v4, %s7683_s15 }
 0x634   : > { %v5638_v10 = vpop.f32.mrf.mxu0 }
 0x636   : > { %v5640_v39 = vpop.f32.mrf.mxu0 }
 0x637   : > { %5676 = vrot.lane.b32.xlu0 %v5640_v39, %s7683_s15  ;;  %5867 = vrot.lane.b32.xlu1 %v5638_v10, %s7684_s25 }
 0x638   : > { %v5642_v3 = vpop.f32.mrf.mxu0 }
 0x63a   : > { %v5646_v33 = vpop.f32.mrf.mxu0 }
 0x63b   : > { %5871 = vrot.lane.b32.xlu0 %v5642_v3, %s7684_s25  ;;  %5869 = vrot.lane.b32.xlu1 %v5640_v39, %s7684_s25 }
 0x63c   : > { %v5648_v32 = vpop.f32.mrf.mxu0 }
 0x63e   : > { %v5650_v11 = vpop.f32.mrf.mxu0 }
 0x63f   : > { %5984 = vrot.lane.b32.xlu0 %v5642_v3, %s7685_s29  ;;  %5678 = vrot.lane.b32.xlu1 %v5646_v33, %s7683_s15 }
 0x640   : > { %7024 = vmatpush3.msk.msra.mxu0 %vm2887_vm0, %v5650_v11  ;;  %v5652_v25 = vpop.f32.mrf.mxu0 }
 0x641   : > { %7025 = vmatprep.subr.mxu0 %v7682_v1 }
 0x642   : > { %7026 = vmatpush3.msra.mxu0 %v5646_v33 }
 0x643   : > { %7027 = vmatprep.subr.mxu0 %v7682_v1  ;;  %5873 = vrot.lane.b32.xlu0 %v5646_v33, %s7684_s25 }
 0x644   : > { %5875 = vrot.lane.b32.xlu1 %v5648_v32, %s7684_s25  ;;  %7028 = vmatpush3.msra.mxu0 %v5640_v39 }
 0x645   : > { %7029 = vmatprep.subr.mxu0 %v7682_v1 }
 0x646   : > { %7030 = vmatpush3.msra.mxu0 %v5636_v4 }
 0x647   : > { %7031 = vmatprep.subr.mxu0 %v7682_v1  ;;  %5680 = vrot.lane.b32.xlu0 %v5650_v11, %s7683_s15  ;;  %s6202_s15 = sshll.u32 %s382_s24, 4  ;;  %s6203_s15 = int_to_ptr.vmem [resolvable:$true] %s6202_s15 }
 0x648   : > { %5986 = vrot.lane.b32.xlu1 %v5648_v32, %s7685_s29  ;;  %7032 = vmatpush3.msra.mxu0 %v5630_v35  ;;  %v6891_v32 = vld [vmem:[%s11433_s8] ss:$0 sm:$0xff]  ;;  %s7617_s14 = scalar_lea.vmem %s6203_s15, 128  ;;  %p7624_p0 = scmp.lt.s32.totalorder %s6203_s15, %s7622_s0 }
 0x649   : > { %7033 = vmatprep.subr.mxu0 %v7682_v1  ;;  %p7618_p11 = scmp.ne.s32.totalorder %s6203_s15, %s7617_s14  ;;  %p7625_p1 = scmp.lt.s32.totalorder %s7623_s21, %s7617_s14 }
 0x64a   : > { %7034 = vmatpush3.msra.mxu0 %v5626_v45 }
 0x64b   : > { %7035 = vmatprep.subr.mxu0 %v7682_v1  ;;  %5863 = vrot.lane.b32.xlu0 %v5632_v29, %s7684_s25  ;;  %p7619_p12 = pnand %p7618_p11, %p7786_p5  ;;  %p7626_p2 = por %p7625_p1, %p7624_p0 }
 0x64c   : > { %5982 = vrot.lane.b32.xlu1 %v5638_v10, %s7685_s29  ;;  %7036 = vmatpush3.msra.mxu0 %v5620_v58 }
 0x64d   : > { %7037 = vmatprep.subr.mxu0 %v7682_v1  ;;  %p7620_p13 = pneg %p7619_p12 }
 0x64e   : > { %7038 = vmatpush3.msra.mxu0 %v11240_v36 }
 0x64f   : > { %5857 = vrot.lane.b32.xlu0 %v5626_v45, %s7684_s25  ;;  %7061 = vmatprep.subr.mxu0 %v7682_v1  ;;  %v6083_v45 = vld [vmem:[%s11434_s9 + $0x8] sm:$0xff]  ;;  %p7627_p3 = pnand %p7626_p2, %p7620_p13 }
 0x650   : > { %5879 = vrot.lane.b32.xlu1 %v5652_v25, %s7684_s25  ;;  %7040 = vmatmul.mubr.msk.f32.vlgmr.msra.gmra.mxu0 %vm3190_vm14, %v5655_v54 }
 0x651   : > { %7077 = vmatprep.mubr.msk.f32.mxu0 %vm7686_vm5, %v7682_v1 }
 0x653   : > { %5877 = vrot.lane.b32.xlu0 %v5650_v11, %s7684_s25 }
 0x654   : > { %5859 = vrot.lane.b32.xlu1 %v5628_v53, %s7684_s25 }
 0x657   : > { %5980 = vrot.lane.b32.xlu0 %v5632_v29, %s7685_s29 }
 0x658   : > { %5853 = vrot.lane.b32.xlu1 %v5620_v58, %s7684_s25  ;;  %v6085_v58 = vld [vmem:[%s11434_s9 + $0x18] sm:$0xff] }
 0x65b   : > { %5988 = vrot.lane.b32.xlu0 %v5652_v25, %s7685_s29 }
 0x65c   : > { %5978 = vrot.lane.b32.xlu1 %v5628_v53, %s7685_s29  ;;  %v6082_v53 = vld [vmem:[%s11434_s9] sm:$0xff] }
 0x65f   : > { %5855 = vrot.lane.b32.xlu0 %v11247_v59, %s7684_s25 }
 0x660   : > { %5851 = vrot.lane.b32.xlu1 %v11244_v52, %s7684_s25 }
 0x663   : > { %5849 = vrot.lane.b32.xlu0 %v11240_v36, %s7684_s25 }
 0x664   : > { %5974 = vrot.lane.b32.xlu1 %v11244_v52, %s7685_s29  ;;  %v6086_v52 = vld [vmem:[%s11434_s9 + $0x20] sm:$0xff] }
 0x667   : > { %5976 = vrot.lane.b32.xlu0 %v11247_v59, %s7685_s29  ;;  %v6084_v59 = vld [vmem:[%s11434_s9 + $0x10] sm:$0xff] }
 0x695   : > { %v5667_v40 = vpop.permute.xlu1 %5666 }
 0x699   : > { %v5669_v27 = vpop.permute.xlu0 %5668 }
 0x69d   : > { %v5671_v0 = vpop.permute.xlu1 %5670 }
 0x6a1   : > { %v5673_v46 = vpop.permute.xlu0 %5672  ;;  %v5862_v14 = vpop.permute.xlu1 %5861 }
 0x6a5   : > { %v5866_v41 = vpop.permute.xlu0 %5865  ;;  %v5675_v34 = vpop.permute.xlu1 %5674 }
 0x6a9   : > { %v5677_v8 = vpop.permute.xlu0 %5676  ;;  %v5868_v5 = vpop.permute.xlu1 %5867 }
 0x6aa   : > { %v5885_v24 = vsel %vm857_vm2, %v5866_v41, %v5868_v5 }
 0x6ad   : > { %v5872_v15 = vpop.permute.xlu0 %5871  ;;  %v5870_v38 = vpop.permute.xlu1 %5869 }
 0x6ae   : > { %v5886_v18 = vsel %vm857_vm2, %v5870_v38, %v5872_v15 }
 0x6b1   : > { %v5985_v48 = vpop.permute.xlu0 %5984  ;;  %v5679_v56 = vpop.permute.xlu1 %5678 }
 0x6b5   : > { %v5874_v60 = vpop.permute.xlu0 %5873 }
 0x6b6   : > { %v5876_v63 = vpop.permute.xlu1 %5875 }
 0x6b7   : > { %v5887_v50 = vsel %vm857_vm2, %v5874_v60, %v5876_v63 }
 0x6b9   : > { %v5681_v16 = vpop.permute.xlu0 %5680 }
 0x6ba   : > { %v5987_v23 = vpop.permute.xlu1 %5986  ;;  %7005 = vmatpush3.msk.msra.mxu1 %vm2887_vm0, %v5681_v16 }
 0x6bb   : > { %7006 = vmatprep.subr.mxu1 %v7682_v1 }
 0x6bc   : > { %7007 = vmatpush3.msra.mxu1 %v5679_v56 }
 0x6bd   : > { %7008 = vmatprep.subr.mxu1 %v7682_v1  ;;  %v5864_v19 = vpop.permute.xlu0 %5863 }
 0x6be   : > { %v5983_v47 = vpop.permute.xlu1 %5982  ;;  %7009 = vmatpush3.msra.mxu1 %v5677_v8  ;;  %v5884_v57 = vsel %vm857_vm2, %v5862_v14, %v5864_v19 }
 0x6bf   : > { %7010 = vmatprep.subr.mxu1 %v7682_v1 }
 0x6c0   : > { %7011 = vmatpush3.msra.mxu1 %v5675_v34 }
 0x6c1   : > { %7012 = vmatprep.subr.mxu1 %v7682_v1  ;;  %v5858_v31 = vpop.permute.xlu0 %5857 }
 0x6c2   : > { %v5880_v7 = vpop.permute.xlu1 %5879  ;;  %7013 = vmatpush3.msra.mxu1 %v5673_v46 }
 0x6c3   : > { %7014 = vmatprep.subr.mxu1 %v7682_v1 }
 0x6c4   : > { %7015 = vmatpush3.msra.mxu1 %v5671_v0 }
 0x6c5   : > { %7016 = vmatprep.subr.mxu1 %v7682_v1  ;;  %v5878_v22 = vpop.permute.xlu0 %5877 }
 0x6c6   : > { %v5860_v6 = vpop.permute.xlu1 %5859  ;;  %7017 = vmatpush3.msra.mxu1 %v5669_v27  ;;  %v5888_v62 = vsel %vm857_vm2, %v5878_v22, %v5880_v7 }
 0x6c7   : > { %7018 = vmatprep.subr.mxu1 %v7682_v1  ;;  %v5883_v55 = vsel %vm857_vm2, %v5858_v31, %v5860_v6 }
 0x6c8   : > { %7019 = vmatpush3.msra.mxu1 %v5667_v40 }
 0x6c9   : > { %7042 = vmatprep.subr.mxu1 %v7682_v1  ;;  %v5981_v13 = vpop.permute.xlu0 %5980  ;;  %7021 = vmatmul.mubr.msk.f32.vlgmr.msra.gmra.mxu1 %vm3190_vm14, %v6880_v9 }
 0x6ca   : > { %v5854_v30 = vpop.permute.xlu1 %5853  ;;  %7043 = vmatpush3.msk.msra.mxu1 %vm2887_vm0, %v5888_v62  ;;  %7058 = vmatprep.mubr.msk.f32.mxu1 %vm7686_vm5, %v7682_v1 }
 0x6cb   : > { %7044 = vmatprep.subr.mxu1 %v7682_v1 }
 0x6cc   : > { %7045 = vmatpush3.msra.mxu1 %v5887_v50 }
 0x6cd   : > { %v5989_v43 = vpop.permute.xlu0 %5988  ;;  %7046 = vmatprep.subr.mxu1 %v7682_v1 }
 0x6ce   : > { %7047 = vmatpush3.msra.mxu1 %v5886_v18  ;;  %7062 = vmatpush3.msk.msra.mxu0 %vm2887_vm0, %v5989_v43  ;;  %v5979_v26 = vpop.permute.xlu1 %5978 }
 0x6cf   : > { %7048 = vmatprep.subr.mxu1 %v7682_v1  ;;  %7063 = vmatprep.subr.mxu0 %v7682_v1 }
 0x6d0   : > { %7049 = vmatpush3.msra.mxu1 %v5885_v24  ;;  %7064 = vmatpush3.msra.mxu0 %v5987_v23 }
 0x6d1   : > { %7065 = vmatprep.subr.mxu0 %v7682_v1  ;;  %v5856_v28 = vpop.permute.xlu0 %5855  ;;  %7050 = vmatprep.subr.mxu1 %v7682_v1 }
 0x6d2   : > { %7051 = vmatpush3.msra.mxu1 %v5884_v57  ;;  %7066 = vmatpush3.msra.mxu0 %v5985_v48  ;;  %v5882_v42 = vsel %vm857_vm2, %v5854_v30, %v5856_v28  ;;  %v5852_v21 = vpop.permute.xlu1 %5851 }
 0x6d3   : > { %7052 = vmatprep.subr.mxu1 %v7682_v1  ;;  %7067 = vmatprep.subr.mxu0 %v7682_v1 }
 0x6d4   : > { %7053 = vmatpush3.msra.mxu1 %v5883_v55  ;;  %7068 = vmatpush3.msra.mxu0 %v5983_v47 }
 0x6d5   : > { %7069 = vmatprep.subr.mxu0 %v7682_v1  ;;  %v5850_v20 = vpop.permute.xlu0 %5849  ;;  %7054 = vmatprep.subr.mxu1 %v7682_v1 }
 0x6d6   : > { %v5881_v2 = vsel %vm857_vm2, %v5850_v20, %v5852_v21  ;;  %7055 = vmatpush3.msra.mxu1 %v5882_v42  ;;  %7070 = vmatpush3.msra.mxu0 %v5981_v13  ;;  %v5975_v37 = vpop.permute.xlu1 %5974  ;;  %vm6096_vm2 = vcmask 408576  }
 0x6d7   : > { %7056 = vmatprep.subr.mxu1 %v7682_v1  ;;  %7071 = vmatprep.subr.mxu0 %v7682_v1 }
 0x6d8   : > { %7057 = vmatpush3.msra.mxu1 %v5881_v2  ;;  %7072 = vmatpush3.msra.mxu0 %v5979_v26 }
 0x6d9   : > { %v5977_v17 = vpop.permute.xlu0 %5976  ;;  %7073 = vmatprep.subr.mxu0 %v7682_v1  ;;  %7059 = vmatmul.mubr.msk.f32.vlgmr.msra.gmra.mxu1 %vm3190_vm14, %v6885_v44 }
 0x6da   : > { %7074 = vmatpush3.msra.mxu0 %v5977_v17  ;;  %7080 = vmatprep.subr.mxu1 %v7682_v1 }
 0x6db   : > { %7075 = vmatprep.subr.mxu0 %v7682_v1  ;;  %7094 = vmatprep.mubr.msk.f32.mxu1 %vm7686_vm5, %v7682_v1 }
 0x6dc   : > { %7076 = vmatpush3.msra.mxu0 %v5975_v37  ;;  %7081 = vmatpush3.msk.msra.mxu1 %vm2129_vm11, %v6088_v49 }
 0x6dd   : > { %7078 = vmatmul.mubr.msk.f32.vlgmr.msra.gmra.mxu0 %vm3190_vm14, %v6888_v12  ;;  %7082 = vmatprep.subr.mxu1 %v7682_v1 }
 0x6de   : > { %7083 = vmatpush3.msra.mxu1 %v6087_v61 }
 0x6df   : > { %7084 = vmatprep.subr.mxu1 %v7682_v1 }
 0x6e0   : > { %7085 = vmatpush3.msra.mxu1 %v6086_v52 }
 0x6e1   : > { %7086 = vmatprep.subr.mxu1 %v7682_v1 }
 0x6e2   : > { %7087 = vmatpush3.msra.mxu1 %v6085_v58 }
 0x6e3   : > { %7088 = vmatprep.subr.mxu1 %v7682_v1 }
 0x6e4   : > { %7089 = vmatpush3.msra.mxu1 %v6084_v59 }
 0x6e5   : > { %7090 = vmatprep.subr.mxu1 %v7682_v1 }
 0x6e6   : > { %7091 = vmatpush3.msra.mxu1 %v6083_v45 }
 0x6e7   : > { %7092 = vmatprep.subr.mxu1 %v7682_v1  ;;  %v6892_v1 = vld [vmem:[%s11435_s10] ss:$0 sm:$0xff] }
 0x6e8   : > { %7093 = vmatpush3.msra.mxu1 %v6082_v53 }
 0x710   : > { %v5835_v51 = vpop.f32.mrf.mxu0 }
 0x712   : > { %v7041_v36 = vpop.f32.mrf.mxu0 }
 0x789   : > { %v5760_v35 = vpop.f32.mrf.mxu1 }
 0x78a   : > { %v5836_v10 = vadd.f32 %v5835_v51, %v5760_v35 }
 0x78b   : > { %v7022_v29 = vpop.f32.mrf.mxu1 }
 0x799   : > { %v5967_v4 = vpop.f32.mrf.mxu1 }
 0x79a   : > { %v5971_v3 = vadd.f32 %v5967_v4, %v5836_v10 }
 0x79b   : > { %v7060_v39 = vpop.f32.mrf.mxu1 }
 0x79d   : > { %v6068_v33 = vpop.f32.mrf.mxu0 }
 0x79e   : > { %v6072_v11 = vadd.f32 %v6068_v33, %v5971_v3 }
 0x79f   : > { %v7079_v54 = vpop.f32.mrf.mxu0 }
 0x7a0   : > { %v6080_v25 = vadd.f32 %v6891_v32, %v6072_v11 }
 0x7a2   : > { %v6081_v40 = vmax.f32 %v6080_v25, 0.0 }
 0x7a4   : > { %7095 = vmatmul.mubr.msk.f32.vlgmr.msra.gmra.mxu1 %vm6096_vm2, %v6081_v40 }
 0x864   : > { %v6170_v27 = vpop.f32.mrf.mxu1 }
 0x865   : > { %v6171_v0 = vadd.f32 %v6892_v1, %v6170_v27 }
 0x866   : > { %v7096_v46 = vpop.f32.mrf.mxu1 }
 0x867   : > { %v6175_v14 = vsel %vm6174_vm6, %v6171_v0, -inf }
 0x868   : > { %6176 = vmax.xlane.f32.xlu0 %v6175_v14 }
 0x8f1   : > { %v6177_v41 = vpop.xlane.xlu0 %6176 }
 0x8f2   : > { %v6178_v34 = vsub.f32 %v6171_v0, %v6177_v41 }
 0x8f4   : > { %v6179_v8 = vmul.f32 1.442695, %v6178_v34 }
 0x8f6   : > { %7613 = vpow2.f32 %v6179_v8 }
 0x903   : > { %v7614_v5 = vpop.eup %7613 }
 0x904   : > { %v6181_v15 = vsel %vm6174_vm6, %v7614_v5, 0.0 }
 0x905   : > { %6182 = vadd.xlane.f32.xlu1 %v6181_v15 }
 0x98e   : > { %v6183_v38 = vpop.xlane.xlu1 %6182 }
 0x98f   : > { %7615 = vlog2.f32 %v6183_v38 }
 0x99c   : > { %v7616_v48 = vpop.eup %7615 }
 0x99d   : > { %v6185_v56 = vmul.f32 0.6931472, %v7616_v48 }
 0x99f   : > { %v6186_v60 = vsub.f32 %v6178_v34, %v6185_v56 }
 0x9a1   : > { %6187 = vst.msk [vmem:[%s382_s24] sm:$0xff] %vm6174_vm6, %v6186_v60 }
 0x9a2   : > { %7630 = shalt.err (!%p7627_p3)
}
 0x9a3   : > { %s7631_s22 = scalar_lea.hbm %s6200_s30, 128  ;;  %s7635_s24 = scalar_lea.hbm %s11436_s11, 256 }
 0x9a4   : > { %p7632_p4 = scmp.ne.s32.totalorder %s6200_s30, %s7631_s22  ;;  %p7636_p9 = scmp.lt.s32.totalorder %s6200_s30, %s11436_s11 }
 0x9a5   : > { %p7637_p10 = scmp.lt.s32.totalorder %s7635_s24, %s7631_s22 }
 0x9a6   : > { %p7633_p7 = pnand %p7632_p4, %p7786_p5 }
 0x9a7   : > { %p7638_p11 = por %p7637_p10, %p7636_p9 }
 0x9a8   : > { %p7634_p8 = pneg %p7633_p7 }
 0x9aa   : > { %p7639_p12 = pnand %p7638_p11, %p7634_p8 }
 0x9ac   : > { %7642 = shalt.err (!%p7639_p12)
}
 0x9ad   : > { %7097 = dma.vmem_to_hbm [thread:$0]  (%p7786_p5), %s6203_s15, 128, %s6200_s30, %s6189_s13  }
 0x9ae PF: > { %p7103_p13 = scmp.ge.s32.totalorder %s7677_s20, 2  ;;  %s6214_s0 = sand.u32 1, %s7665_s17  }
 0x9af   : > { %s6215_s14 = scalar_lea.sflag [#allocation3], %s6214_s0 }
 0x9b0   : > { %p7100_p0 = pnand %p7103_p13, %p7790_p6 }
 0x9b2   : > { %p7101_p1 = pneg %p7100_p0 }
 0x9b4   : > { %7660 = dma.done.wait (%p7101_p1), %s6215_s14, 128  }
 0x9b5   : > { %7662 = vsyncadd (%p7101_p1), %s6215_s14, 4294967168  ;;  %s11796_s12 = sld [smem:[#allocation5_spill]]  ;;  %p21_p2 = scmp.ge.s32.totalorder %s7773_s23, 4  }
 0x9b6   : > { %s11797_s17 = smov %s7669_s18  ;;  %s11798_s18 = smov %s7673_s19 }
 0x9b7   : > { %s11800_s20 = smov %s7773_s23  ;;  %23 = sbr.rel (!%p21_p2) target bundleno = 5 (0x5), region = 110 }
 0x9bb   : > { %s11799_s19 = smov %s11796_s12 }
 0x9bc   :  { %6220 = vsyncpa [#allocation3], 1 }
 0x9bd   :  { %6222 = vsyncpa [#allocation3 + $0x1], 1 }

</bundles_post_ra>
